<compile_context>
chip_gen: v6e
topology: v6e:2x2x1
jax: 0.10.0
libtpu: 0.0.40
codegen_flags: <defaults>
</compile_context>

<pallas_src>
import functools

import jax
import jax.numpy as jnp
from jax.experimental import pallas as pl
from jax.experimental.pallas import tpu as pltpu


def _round8(n):
    return -(-n // 8) * 8


def _pack_offsets(F, H):
    """Static row offsets of the packed constant slabs (8-row aligned blocks)."""
    o_enc_whh = _round8(F)
    o_dec_cat = o_enc_whh + _round8(H)
    o_bias = o_dec_cat + _round8(2 * H)
    rows_g = o_bias + 8
    o_attn_b1 = _round8(3 * H)
    rows_a = o_attn_b1 + 8
    o_fcf_w = _round8(F)
    o_fcf_b = o_fcf_w + _round8(2 * H)
    rows_o = o_fcf_b + 8
    return dict(enc_whh=o_enc_whh, dec_cat=o_dec_cat, bias=o_bias, rows_g=rows_g,
                attn_b1=o_attn_b1, rows_a=rows_a,
                fcf_w=o_fcf_w, fcf_b=o_fcf_b, rows_o=rows_o)


def _num_tensorcores_per_chip():
    try:
        kind = jax.devices()[0].device_kind.lower()
    except Exception:
        return 1
    return 2 if "v7" in kind else 1


def _pick_batch_block(B, W, batch_block):
    if batch_block is not None:
        bb = batch_block
        assert B % bb == 0 and (bb == B or bb % 8 == 0), \
            "batch tile must divide B and be a multiple of 8"
        return bb
    # Megacore (2 TC/chip, v7x): split the batch across both cores when it is
    # large enough.  Single-TC chips (v5e/v6e): one block — extra grid steps are
    # pure per-step overhead there.
    if _num_tensorcores_per_chip() == 2 and B >= 16 and (B // 2) % 8 == 0:
        bb = B // 2
    else:
        bb = B
    # Cap bb so rep/rep_t (2*W*bb^2 f32) stay well inside scoped VMEM
    # (v7x: 64 MiB physical, 32 MiB scoped default).
    while bb > 256 and bb % 16 == 0:
        bb //= 2
    return bb


def darnn_kernel(x_ref,        # (W, B, F)       time-major input block
                 rep_ref,      # (W*B, B)        R: replicate a (B,.) tensor over time
                 rep_t_ref,    # (B, W*B)        R^T: per-batch-row segment sum over time
                 pg_ref,       # (rows_g, 4H)    packed 4H-wide constants
                 pa_ref,       # (rows_a, F)     packed F-wide constants
                 po_ref,       # (rows_o, 1)     packed 1-wide constants
                 y_ref,        # (B, 128)        lane-dense output, column 0 is y_pred
                 henc_ref,     # scratch (W*B, H+1): [enc hidden | ones] per (t,b) row
                 *, H, offs):
    W, B, F = x_ref.shape
    G = 4 * H
    WB = W * B
    f32 = jnp.float32

    def dot(a, b):
        return jnp.dot(a, b, preferred_element_type=f32)

    def lstm_step(gates, c_prev):
        # i/f/o gate columns are pre-scaled by 0.5 in the weights/biases, so a
        # SINGLE tanh over the whole (B, 4H) vreg yields tanh(x/2) for i/f/o
        # (-> sigmoid via 0.5*(1+t)) and tanh(x) for g.  PyTorch order i,f,g,o.
        t = jnp.tanh(gates)
        i = 0.5 * (1.0 + t[:, 0:H])
        f = 0.5 * (1.0 + t[:, H:2 * H])
        g = t[:, 2 * H:3 * H]
        o = 0.5 * (1.0 + t[:, 3 * H:4 * H])
        c_new = f * c_prev + i * g
        h_new = o * jnp.tanh(c_new)
        return h_new, c_new

    # ---- one-time static unpack of the packed constant slabs ----
    enc_wih = pg_ref[0:F, :]                                        # (F, 4H) scaled
    enc_whh = pg_ref[offs['enc_whh']:offs['enc_whh'] + H, :]        # (H, 4H) scaled
    dec_cat = pg_ref[offs['dec_cat']:offs['dec_cat'] + 2 * H, :]    # (2H,4H) [fc_wc@Wih; Whh]
    enc_b = pg_ref[offs['bias']:offs['bias'] + 1, :]                # (1, 4H)
    dec_b = pg_ref[offs['bias'] + 1:offs['bias'] + 2, :]            # (1, 4H) incl. fc_b fold
    y2g = pg_ref[offs['bias'] + 2:offs['bias'] + 3, :]              # (1, 4H) fc_wy * dec_wih

    w1_dc = pa_ref[0:2 * H, :]                                      # (2H, F)
    w1_h = pa_ref[2 * H:3 * H, :]                                   # (H, F)
    attn_b1 = pa_ref[offs['attn_b1']:offs['attn_b1'] + 1, :]        # (1, F)

    w2 = po_ref[0:F, :]                                             # (F, 1)
    fcf_w = po_ref[offs['fcf_w']:offs['fcf_w'] + 2 * H, :]          # (2H, 1)
    fcf_b = po_ref[offs['fcf_b']:offs['fcf_b'] + 1, :]              # (1, 1)

    R = rep_ref[...]
    RT = rep_t_ref[...]

    # ---------------- Encoder (use_att=False): plain LSTM over time ----------------
    # Hoisted input projection: ONE matmul for all W steps, bias folded in.
    X2 = x_ref[...].reshape(WB, F)                     # row t*B + b == x[b, t, :]
    x_proj = dot(X2, enc_wih) + jnp.broadcast_to(enc_b, (WB, G))

    # Homogeneous 1s column so the softmax denominator rides along the context
    # segment-sum matmul in the decoder.
    henc_ref[:, H:H + 1] = jnp.ones((WB, 1), f32)

    h = jnp.zeros((B, H), f32)
    c = jnp.zeros((B, H), f32)
    for t in range(W):
        gates = x_proj[t * B:(t + 1) * B, :] + dot(h, enc_whh)
        h, c = lstm_step(gates, c)
        henc_ref[t * B:(t + 1) * B, 0:H] = h

    # ---------------- Decoder with temporal attention ----------------
    # Constant-across-steps pieces (encoder attn contribution + first-layer bias,
    # prev_load contribution to the folded fc->gates path, bias broadcast).
    hw1 = dot(henc_ref[:, 0:H], w1_h) + jnp.broadcast_to(attn_b1, (WB, F))  # (WB, F)
    ywg = (jnp.broadcast_to(X2[:, 1:2], (WB, G))
           * jnp.broadcast_to(y2g, (WB, G)))                                # (WB, 4H)
    dec_b_b = jnp.broadcast_to(dec_b, (B, G))

    d = jnp.zeros((B, H), f32)
    c2 = jnp.zeros((B, H), f32)
    context = jnp.zeros((B, H), f32)

    for t in range(W):
        # attn(cat(d, c2, Henc)) = Linear -> Tanh -> Linear; d/c2 projection is one
        # matmul; second-layer bias dropped (softmax over time is shift-invariant).
        pre_dc = dot(jnp.concatenate([d, c2], axis=1), w1_dc)               # (B, F)
        pre = jnp.tanh(hw1 + dot(R, pre_dc))                                # (WB, F)
        score = dot(pre, w2)                                                # (WB, 1)
        # Softmax over time per batch row: single global max shift (valid per-row
        # shift; scores are tanh-bounded so no per-row underflow at these scales).
        e = jnp.exp(score - jnp.max(score, axis=0, keepdims=True))          # (WB, 1)
        # Fused denominator + unnormalized context via the 1s column in the scratch.
        seg = dot(RT, henc_ref[...] * e)                                    # (B, H+1)
        inv = pl.reciprocal(seg[:, H:H + 1], approx=True)                   # (B, 1)
        context = seg[:, 0:H] * inv                                         # (B, H)
        # decoder LSTM step; fc(cat(context, Y_t)) is folded into the gate matmul.
        gates = (dot(jnp.concatenate([context, d], axis=1), dec_cat)
                 + ywg[t * B:(t + 1) * B, :] + dec_b_b)                     # (B, 4H)
        d, c2 = lstm_step(gates, c2)

    # y_pred = fc_final(cat(d_n[0], context)); lane-dense store, column 0 is valid.
    y_pred = dot(jnp.concatenate([d, context], axis=1), fcf_w) + fcf_b      # (B, 1)
    y_ref[...] = jnp.broadcast_to(y_pred, y_ref.shape)


def init_params(key, input_dim, hidden_dim):
    """Deterministic synthetic parameters matching the PyTorch module's shapes."""
    F, H = input_dim, hidden_dim
    ks = jax.random.split(key, 16)

    def u(k, shape, fan):
        bound = 1.0 / (fan ** 0.5)
        return jax.random.uniform(k, shape, jnp.float32, -bound, bound)

    return dict(
        # Encoder LSTM (input_size=F, hidden=H); encoder.attn is unused (use_att=False)
        enc_wih=u(ks[0], (4 * H, F), H),
        enc_whh=u(ks[1], (4 * H, H), H),
        enc_bih=u(ks[2], (4 * H,), H),
        enc_bhh=u(ks[3], (4 * H,), H),
        # Decoder attention: Linear(3H, F) -> Tanh -> Linear(F, 1)
        attn_w1=u(ks[4], (F, 3 * H), 3 * H),
        attn_b1=u(ks[5], (F,), 3 * H),
        attn_w2=u(ks[6], (1, F), F),
        attn_b2=u(ks[7], (1,), F),
        # Decoder LSTM (input_size=1, hidden=H)
        dec_wih=u(ks[8], (4 * H, 1), H),
        dec_whh=u(ks[9], (4 * H, H), H),
        dec_bih=u(ks[10], (4 * H,), H),
        dec_bhh=u(ks[11], (4 * H,), H),
        # fc: Linear(H+1, 1), fc_final: Linear(2H, 1)
        fc_w=u(ks[12], (1, H + 1), H + 1),
        fc_b=u(ks[13], (1,), H + 1),
        fcf_w=u(ks[14], (1, 2 * H), 2 * H),
        fcf_b=u(ks[15], (1,), 2 * H),
    )


def prepare_params(params, window_size, batch_size, *, batch_block=None):
    """One-time layout work: transposes, gate scaling, fc folding, packing, rep.

    Hoisted out of the per-call path so the hot path is just the Pallas call.
    """
    F = params['enc_wih'].shape[1]
    H = params['enc_whh'].shape[1]
    G = 4 * H
    offs = _pack_offsets(F, H)

    # Scale the i/f/o gate columns by 0.5 (PyTorch order i,f,g,o) so the kernel
    # needs only ONE tanh per LSTM step: sigmoid(x) = 0.5*(1 + tanh(x/2)).
    s = jnp.concatenate([jnp.full((H,), 0.5, jnp.float32),
                         jnp.full((H,), 0.5, jnp.float32),
                         jnp.ones((H,), jnp.float32),
                         jnp.full((H,), 0.5, jnp.float32)])

    # Encoder LSTM (pre-transposed to (in, out), gate-scaled, biases folded).
    enc_wih_s = (params['enc_wih'] * s[:, None]).T.astype(jnp.float32)      # (F, 4H)
    enc_whh_s = (params['enc_whh'] * s[:, None]).T.astype(jnp.float32)      # (H, 4H)
    enc_b_s = ((params['enc_bih'] + params['enc_bhh']) * s).reshape(1, G)

    # Decoder LSTM + folded fc(cat(context, Y_t)).
    dec_wih_s = (params['dec_wih'][:, 0] * s).reshape(1, G)                 # (1, 4H)
    dec_whh_s = (params['dec_whh'] * s[:, None]).T.astype(jnp.float32)      # (H, 4H)
    dec_b_s = ((params['dec_bih'] + params['dec_bhh']) * s).reshape(1, G)
    fc_wT = params['fc_w'].T                                                # (H+1, 1)
    fc_wc = fc_wT[0:H, :]                                                   # (H, 1)
    fc_wy = fc_wT[H, 0]
    fc_b = params['fc_b'][0]
    w_ctx2g = fc_wc @ dec_wih_s                                             # (H, 4H)
    dec_cat = jnp.concatenate([w_ctx2g, dec_whh_s], axis=0)                 # (2H, 4H)
    dec_b_total = dec_b_s + fc_b * dec_wih_s                                # (1, 4H)
    y2g = fc_wy * dec_wih_s                                                 # (1, 4H)

    # Attention (second-layer bias dropped: softmax over time is shift-invariant).
    attn_w1T = params['attn_w1'].T                                          # (3H, F)
    attn_b1 = params['attn_b1'].reshape(1, F)
    attn_w2T = params['attn_w2'].T                                          # (F, 1)

    # Final fc.
    fcf_wT = params['fcf_w'].T                                              # (2H, 1)
    fcf_b = params['fcf_b'].reshape(1, 1)

    # ---- pack into three constant slabs (fewer startup DMAs) ----
    PG = jnp.zeros((offs['rows_g'], G), jnp.float32)
    PG = PG.at[0:F].set(enc_wih_s)
    PG = PG.at[offs['enc_whh']:offs['enc_whh'] + H].set(enc_whh_s)
    PG = PG.at[offs['dec_cat']:offs['dec_cat'] + 2 * H].set(dec_cat)
    PG = PG.at[offs['bias']:offs['bias'] + 1].set(enc_b_s)
    PG = PG.at[offs['bias'] + 1:offs['bias'] + 2].set(dec_b_total)
    PG = PG.at[offs['bias'] + 2:offs['bias'] + 3].set(y2g)

    PA = jnp.zeros((offs['rows_a'], F), jnp.float32)
    PA = PA.at[0:3 * H].set(attn_w1T)
    PA = PA.at[offs['attn_b1']:offs['attn_b1'] + 1].set(attn_b1)

    PO = jnp.zeros((offs['rows_o'], 1), jnp.float32)
    PO = PO.at[0:F].set(attn_w2T)
    PO = PO.at[offs['fcf_w']:offs['fcf_w'] + 2 * H].set(fcf_wT)
    PO = PO.at[offs['fcf_b']:offs['fcf_b'] + 1].set(fcf_b)

    # Replicate / segment-sum matrices to keep the attention math on the MXU.
    bb = _pick_batch_block(batch_size, window_size, batch_block)
    rep = jnp.tile(jnp.eye(bb, dtype=jnp.float32), (window_size, 1))        # (W*bb, bb)
    rep_t = jnp.transpose(rep)                                              # (bb, W*bb)

    return dict(pg=PG, pa=PA, po=PO, rep=rep, rep_t=rep_t)


def rnn_da_att1_forward(x, prep):
    """x: (B, window_size, input_dim) f32; prep: prepare_params() output -> (B,1)."""
    B, W, F = x.shape
    pg, pa, po = prep['pg'], prep['pa'], prep['po']
    rep, rep_t = prep['rep'], prep['rep_t']
    H = pg.shape[1] // 4
    bb = rep.shape[1]
    assert B % bb == 0, "prepared batch block must divide B"
    grid = (B // bb,)
    offs = _pack_offsets(F, H)

    x_t = jnp.transpose(x.astype(jnp.float32), (1, 0, 2))      # (W, B, F) time-major

    kernel = functools.partial(darnn_kernel, H=H, offs=offs)

    in_specs = [
        pl.BlockSpec((W, bb, F), lambda j: (0, j, 0)),
        pl.BlockSpec(rep.shape, lambda j: (0, 0)),
        pl.BlockSpec(rep_t.shape, lambda j: (0, 0)),
        pl.BlockSpec(pg.shape, lambda j: (0, 0)),
        pl.BlockSpec(pa.shape, lambda j: (0, 0)),
        pl.BlockSpec(po.shape, lambda j: (0, 0)),
    ]

    y_wide = pl.pallas_call(
        kernel,
        grid=grid,
        out_shape=jax.ShapeDtypeStruct((B, 128), jnp.float32),
        in_specs=in_specs,
        out_specs=pl.BlockSpec((bb, 128), lambda j: (j, 0)),
        scratch_shapes=[pltpu.VMEM((W * bb, H + 1), jnp.float32)],
        compiler_params=pltpu.CompilerParams(
            dimension_semantics=("parallel",)),
    )(x_t, rep, rep_t, pg, pa, po)
    return y_wide[:, :1]


def rnn_da_att1_reference(x, params):
    """Pure-JAX reference mirroring the PyTorch forward (f32)."""
    B, W, F = x.shape
    H = params['enc_whh'].shape[1]

    def lstm_cell(x_t, h, c, wih, whh, b):
        g = x_t @ wih.T + h @ whh.T + b
        i = jax.nn.sigmoid(g[:, 0:H])
        f = jax.nn.sigmoid(g[:, H:2 * H])
        gg = jnp.tanh(g[:, 2 * H:3 * H])
        o = jax.nn.sigmoid(g[:, 3 * H:4 * H])
        c = f * c + i * gg
        return o * jnp.tanh(c), c

    enc_b = params['enc_bih'] + params['enc_bhh']
    h = jnp.zeros((B, H), jnp.float32)
    c = jnp.zeros((B, H), jnp.float32)
    hs = []
    for t in range(W):
        h, c = lstm_cell(x[:, t, :], h, c, params['enc_wih'], params['enc_whh'], enc_b)
        hs.append(h)
    Henc = jnp.stack(hs, axis=1)                                   # (B, W, H)
    Y = x[:, :, 1]

    dec_b = params['dec_bih'] + params['dec_bhh']
    d = jnp.zeros((B, H), jnp.float32)
    c2 = jnp.zeros((B, H), jnp.float32)
    context = jnp.zeros((B, H), jnp.float32)
    for t in range(W):
        dd = jnp.broadcast_to(d[:, None, :], (B, W, H))
        cc = jnp.broadcast_to(c2[:, None, :], (B, W, H))
        xcat = jnp.concatenate([dd, cc, Henc], axis=2)             # (B, W, 3H)
        e = jnp.tanh(xcat @ params['attn_w1'].T + params['attn_b1'])
        score = (e @ params['attn_w2'].T + params['attn_b2'])[..., 0]   # (B, W)
        beta = jax.nn.softmax(score, axis=1)
        context = jnp.einsum('bw,bwh->bh', beta, Henc)
        y_tilde = (jnp.concatenate([context, Y[:, t:t + 1]], axis=1)
                   @ params['fc_w'].T + params['fc_b'])            # (B, 1)
        d, c2 = lstm_cell(y_tilde, d, c2, params['dec_wih'], params['dec_whh'], dec_b)
    return (jnp.concatenate([d, context], axis=1)
            @ params['fcf_w'].T + params['fcf_b'])                 # (B, 1)


if __name__ == "__main__":
    B, INPUT_DIM, HIDDEN_DIM, WINDOW = 2, 4, 32, 8
    key = jax.random.PRNGKey(0)
    kx, kp = jax.random.split(key)
    x = jax.random.normal(kx, (B, WINDOW, INPUT_DIM), jnp.float32)
    params = init_params(kp, INPUT_DIM, HIDDEN_DIM)

    # One-time weight layout / packing work (off the hot path), then a jitted call.
    prep = prepare_params(params, WINDOW, B)
    fwd = jax.jit(rnn_da_att1_forward)

    y = jax.block_until_ready(fwd(x, prep))
    y_ref = jax.block_until_ready(rnn_da_att1_reference(x, params))

    assert y.shape == (B, 1), y.shape
    assert bool(jnp.all(jnp.isfinite(y)))
    assert bool(jnp.allclose(y, y_ref, rtol=2e-2, atol=2e-2)), (y, y_ref)
    print("KERNEL_OK")
</pallas_src>

<mosaic_0001>
module attributes {stable_mosaic.version = 11 : i64} {
  func.func @darnn_kernel(%arg0: i32, %arg1: memref<8x2x4xf32, #tpu.memory_space<vmem>>, %arg2: memref<16x2xf32, #tpu.memory_space<vmem>>, %arg3: memref<2x16xf32, #tpu.memory_space<vmem>>, %arg4: memref<112x128xf32, #tpu.memory_space<vmem>>, %arg5: memref<104x4xf32, #tpu.memory_space<vmem>>, %arg6: memref<80x1xf32, #tpu.memory_space<vmem>>, %arg7: memref<2x128xf32, #tpu.memory_space<vmem>>, %arg8: memref<16x33xf32, #tpu.memory_space<vmem>>) attributes {dimension_semantics = [#tpu.dimension_semantics<parallel>], iteration_bounds = array<i64: 1>, scalar_prefetch = 0 : i64, scratch_operands = 1 : i64, tpu.core_type = #tpu.core_type<tc>, window_params = [{transform_indices = @transform_0, window_bounds = array<i64: 8, 2, 4>}, {pipeline_mode = #tpu.pipeline_mode<synchronous>, transform_indices = @transform_1, window_bounds = array<i64: 16, 2>}, {pipeline_mode = #tpu.pipeline_mode<synchronous>, transform_indices = @transform_2, window_bounds = array<i64: 2, 16>}, {pipeline_mode = #tpu.pipeline_mode<synchronous>, transform_indices = @transform_3, window_bounds = array<i64: 112, 128>}, {pipeline_mode = #tpu.pipeline_mode<synchronous>, transform_indices = @transform_4, window_bounds = array<i64: 104, 4>}, {pipeline_mode = #tpu.pipeline_mode<synchronous>, transform_indices = @transform_5, window_bounds = array<i64: 80, 1>}, {transform_indices = @transform_6, window_bounds = array<i64: 2, 128>}]} {
    %c0 = arith.constant 0 : index
    %c0_0 = arith.constant 0 : index
    %0 = vector.load %arg4[%c0, %c0_0] : memref<112x128xf32, #tpu.memory_space<vmem>>, vector<4x128xf32>
    %c8 = arith.constant 8 : index
    %c0_1 = arith.constant 0 : index
    %1 = vector.load %arg4[%c8, %c0_1] : memref<112x128xf32, #tpu.memory_space<vmem>>, vector<32x128xf32>
    %c40 = arith.constant 40 : index
    %c0_2 = arith.constant 0 : index
    %2 = vector.load %arg4[%c40, %c0_2] : memref<112x128xf32, #tpu.memory_space<vmem>>, vector<64x128xf32>
    %c104 = arith.constant 104 : index
    %c0_3 = arith.constant 0 : index
    %3 = vector.load %arg4[%c104, %c0_3] : memref<112x128xf32, #tpu.memory_space<vmem>>, vector<1x128xf32>
    %c105 = arith.constant 105 : index
    %c0_4 = arith.constant 0 : index
    %4 = vector.load %arg4[%c105, %c0_4] : memref<112x128xf32, #tpu.memory_space<vmem>>, vector<1x128xf32>
    %c106 = arith.constant 106 : index
    %c0_5 = arith.constant 0 : index
    %5 = vector.load %arg4[%c106, %c0_5] : memref<112x128xf32, #tpu.memory_space<vmem>>, vector<1x128xf32>
    %c0_6 = arith.constant 0 : index
    %c0_7 = arith.constant 0 : index
    %6 = vector.load %arg5[%c0_6, %c0_7] : memref<104x4xf32, #tpu.memory_space<vmem>>, vector<64x4xf32>
    %c64 = arith.constant 64 : index
    %c0_8 = arith.constant 0 : index
    %7 = vector.load %arg5[%c64, %c0_8] : memref<104x4xf32, #tpu.memory_space<vmem>>, vector<32x4xf32>
    %c96 = arith.constant 96 : index
    %c0_9 = arith.constant 0 : index
    %8 = vector.load %arg5[%c96, %c0_9] : memref<104x4xf32, #tpu.memory_space<vmem>>, vector<1x4xf32>
    %c0_10 = arith.constant 0 : index
    %c0_11 = arith.constant 0 : index
    %9 = vector.load %arg6[%c0_10, %c0_11] : memref<80x1xf32, #tpu.memory_space<vmem>>, vector<4x1xf32>
    %c8_12 = arith.constant 8 : index
    %c0_13 = arith.constant 0 : index
    %10 = vector.load %arg6[%c8_12, %c0_13] : memref<80x1xf32, #tpu.memory_space<vmem>>, vector<64x1xf32>
    %c72 = arith.constant 72 : index
    %c0_14 = arith.constant 0 : index
    %11 = vector.load %arg6[%c72, %c0_14] : memref<80x1xf32, #tpu.memory_space<vmem>>, vector<1x1xf32>
    %c0_15 = arith.constant 0 : index
    %c0_16 = arith.constant 0 : index
    %12 = vector.load %arg2[%c0_15, %c0_16] : memref<16x2xf32, #tpu.memory_space<vmem>>, vector<16x2xf32>
    %c0_17 = arith.constant 0 : index
    %c0_18 = arith.constant 0 : index
    %13 = vector.load %arg3[%c0_17, %c0_18] : memref<2x16xf32, #tpu.memory_space<vmem>>, vector<2x16xf32>
    %c0_19 = arith.constant 0 : index
    %c0_20 = arith.constant 0 : index
    %c0_21 = arith.constant 0 : index
    %14 = vector.load %arg1[%c0_19, %c0_20, %c0_21] : memref<8x2x4xf32, #tpu.memory_space<vmem>>, vector<8x2x4xf32>
    %15 = vector.shape_cast %14 : vector<8x2x4xf32> to vector<16x4xf32>
    %cst = arith.constant dense<0.000000e+00> : vector<16x128xf32>
    %16 = tpu.matmul %15, %0, %cst {dimension_numbers = #tpu.dot_dimension_numbers<[1], [0], [0], [1], [0, 0, 1, 1], [], []>} : vector<16x4xf32>, vector<4x128xf32>, vector<16x128xf32> -> vector<16x128xf32>
    %17 = vector.shape_cast %3 : vector<1x128xf32> to vector<1x128xf32>
    %18 = vector.broadcast %17 : vector<1x128xf32> to vector<16x128xf32>
    %19 = arith.addf %16, %18 : vector<16x128xf32>
    %cst_22 = arith.constant 1.000000e+00 : f32
    %20 = vector.broadcast %cst_22 : f32 to vector<16x1xf32>
    %c0_23 = arith.constant 0 : index
    %c32 = arith.constant 32 : index
    %21 = vector.load %arg8[%c0_23, %c32] : memref<16x33xf32, #tpu.memory_space<vmem>>, vector<16x1xf32>
    tpu.vector_store %arg8[%c0_23, %c32], %20 {strides = array<i32>} : memref<16x33xf32, #tpu.memory_space<vmem>>, vector<16x1xf32>,
    %cst_24 = arith.constant 0.000000e+00 : f32
    %22 = vector.broadcast %cst_24 : f32 to vector<2x32xf32>
    %cst_25 = arith.constant 0.000000e+00 : f32
    %23 = vector.broadcast %cst_25 : f32 to vector<2x32xf32>
    %24 = vector.extract_strided_slice %19 {offsets = [0, 0], sizes = [2, 128], strides = [1, 1]} : vector<16x128xf32> to vector<2x128xf32>
    %cst_26 = arith.constant dense<0.000000e+00> : vector<2x128xf32>
    %25 = tpu.matmul %22, %1, %cst_26 {dimension_numbers = #tpu.dot_dimension_numbers<[1], [0], [0], [1], [0, 0, 1, 1], [], []>} : vector<2x32xf32>, vector<32x128xf32>, vector<2x128xf32> -> vector<2x128xf32>
    %26 = arith.addf %24, %25 : vector<2x128xf32>
    %27 = math.tanh %26 : vector<2x128xf32>
    %28 = vector.extract_strided_slice %27 {offsets = [0, 0], sizes = [2, 32], strides = [1, 1]} : vector<2x128xf32> to vector<2x32xf32>
    %cst_27 = arith.constant 1.000000e+00 : f32
    %29 = vector.broadcast %cst_27 : f32 to vector<2x32xf32>
    %30 = arith.addf %29, %28 : vector<2x32xf32>
    %cst_28 = arith.constant 5.000000e-01 : f32
    %31 = vector.broadcast %cst_28 : f32 to vector<2x32xf32>
    %32 = arith.mulf %31, %30 : vector<2x32xf32>
    %33 = vector.extract_strided_slice %27 {offsets = [0, 32], sizes = [2, 32], strides = [1, 1]} : vector<2x128xf32> to vector<2x32xf32>
    %cst_29 = arith.constant 1.000000e+00 : f32
    %34 = vector.broadcast %cst_29 : f32 to vector<2x32xf32>
    %35 = arith.addf %34, %33 : vector<2x32xf32>
    %cst_30 = arith.constant 5.000000e-01 : f32
    %36 = vector.broadcast %cst_30 : f32 to vector<2x32xf32>
    %37 = arith.mulf %36, %35 : vector<2x32xf32>
    %38 = vector.extract_strided_slice %27 {offsets = [0, 64], sizes = [2, 32], strides = [1, 1]} : vector<2x128xf32> to vector<2x32xf32>
    %39 = vector.extract_strided_slice %27 {offsets = [0, 96], sizes = [2, 32], strides = [1, 1]} : vector<2x128xf32> to vector<2x32xf32>
    %cst_31 = arith.constant 1.000000e+00 : f32
    %40 = vector.broadcast %cst_31 : f32 to vector<2x32xf32>
    %41 = arith.addf %40, %39 : vector<2x32xf32>
    %cst_32 = arith.constant 5.000000e-01 : f32
    %42 = vector.broadcast %cst_32 : f32 to vector<2x32xf32>
    %43 = arith.mulf %42, %41 : vector<2x32xf32>
    %44 = arith.mulf %37, %23 : vector<2x32xf32>
    %45 = arith.mulf %32, %38 : vector<2x32xf32>
    %46 = arith.addf %44, %45 : vector<2x32xf32>
    %47 = math.tanh %46 : vector<2x32xf32>
    %48 = arith.mulf %43, %47 : vector<2x32xf32>
    %c0_33 = arith.constant 0 : index
    %c0_34 = arith.constant 0 : index
    %49 = vector.load %arg8[%c0_33, %c0_34] : memref<16x33xf32, #tpu.memory_space<vmem>>, vector<2x32xf32>
    tpu.vector_store %arg8[%c0_33, %c0_34], %48 {strides = array<i32>} : memref<16x33xf32, #tpu.memory_space<vmem>>, vector<2x32xf32>,
    %50 = vector.extract_strided_slice %19 {offsets = [2, 0], sizes = [2, 128], strides = [1, 1]} : vector<16x128xf32> to vector<2x128xf32>
    %cst_35 = arith.constant dense<0.000000e+00> : vector<2x128xf32>
    %51 = tpu.matmul %48, %1, %cst_35 {dimension_numbers = #tpu.dot_dimension_numbers<[1], [0], [0], [1], [0, 0, 1, 1], [], []>} : vector<2x32xf32>, vector<32x128xf32>, vector<2x128xf32> -> vector<2x128xf32>
    %52 = arith.addf %50, %51 : vector<2x128xf32>
    %53 = math.tanh %52 : vector<2x128xf32>
    %54 = vector.extract_strided_slice %53 {offsets = [0, 0], sizes = [2, 32], strides = [1, 1]} : vector<2x128xf32> to vector<2x32xf32>
    %cst_36 = arith.constant 1.000000e+00 : f32
    %55 = vector.broadcast %cst_36 : f32 to vector<2x32xf32>
    %56 = arith.addf %55, %54 : vector<2x32xf32>
    %cst_37 = arith.constant 5.000000e-01 : f32
    %57 = vector.broadcast %cst_37 : f32 to vector<2x32xf32>
    %58 = arith.mulf %57, %56 : vector<2x32xf32>
    %59 = vector.extract_strided_slice %53 {offsets = [0, 32], sizes = [2, 32], strides = [1, 1]} : vector<2x128xf32> to vector<2x32xf32>
    %cst_38 = arith.constant 1.000000e+00 : f32
    %60 = vector.broadcast %cst_38 : f32 to vector<2x32xf32>
    %61 = arith.addf %60, %59 : vector<2x32xf32>
    %cst_39 = arith.constant 5.000000e-01 : f32
    %62 = vector.broadcast %cst_39 : f32 to vector<2x32xf32>
    %63 = arith.mulf %62, %61 : vector<2x32xf32>
    %64 = vector.extract_strided_slice %53 {offsets = [0, 64], sizes = [2, 32], strides = [1, 1]} : vector<2x128xf32> to vector<2x32xf32>
    %65 = vector.extract_strided_slice %53 {offsets = [0, 96], sizes = [2, 32], strides = [1, 1]} : vector<2x128xf32> to vector<2x32xf32>
    %cst_40 = arith.constant 1.000000e+00 : f32
    %66 = vector.broadcast %cst_40 : f32 to vector<2x32xf32>
    %67 = arith.addf %66, %65 : vector<2x32xf32>
    %cst_41 = arith.constant 5.000000e-01 : f32
    %68 = vector.broadcast %cst_41 : f32 to vector<2x32xf32>
    %69 = arith.mulf %68, %67 : vector<2x32xf32>
    %70 = arith.mulf %63, %46 : vector<2x32xf32>
    %71 = arith.mulf %58, %64 : vector<2x32xf32>
    %72 = arith.addf %70, %71 : vector<2x32xf32>
    %73 = math.tanh %72 : vector<2x32xf32>
    %74 = arith.mulf %69, %73 : vector<2x32xf32>
    %c2 = arith.constant 2 : index
    %c0_42 = arith.constant 0 : index
    %75 = vector.load %arg8[%c2, %c0_42] : memref<16x33xf32, #tpu.memory_space<vmem>>, vector<2x32xf32>
    tpu.vector_store %arg8[%c2, %c0_42], %74 {strides = array<i32>} : memref<16x33xf32, #tpu.memory_space<vmem>>, vector<2x32xf32>,
    %76 = vector.extract_strided_slice %19 {offsets = [4, 0], sizes = [2, 128], strides = [1, 1]} : vector<16x128xf32> to vector<2x128xf32>
    %cst_43 = arith.constant dense<0.000000e+00> : vector<2x128xf32>
    %77 = tpu.matmul %74, %1, %cst_43 {dimension_numbers = #tpu.dot_dimension_numbers<[1], [0], [0], [1], [0, 0, 1, 1], [], []>} : vector<2x32xf32>, vector<32x128xf32>, vector<2x128xf32> -> vector<2x128xf32>
    %78 = arith.addf %76, %77 : vector<2x128xf32>
    %79 = math.tanh %78 : vector<2x128xf32>
    %80 = vector.extract_strided_slice %79 {offsets = [0, 0], sizes = [2, 32], strides = [1, 1]} : vector<2x128xf32> to vector<2x32xf32>
    %cst_44 = arith.constant 1.000000e+00 : f32
    %81 = vector.broadcast %cst_44 : f32 to vector<2x32xf32>
    %82 = arith.addf %81, %80 : vector<2x32xf32>
    %cst_45 = arith.constant 5.000000e-01 : f32
    %83 = vector.broadcast %cst_45 : f32 to vector<2x32xf32>
    %84 = arith.mulf %83, %82 : vector<2x32xf32>
    %85 = vector.extract_strided_slice %79 {offsets = [0, 32], sizes = [2, 32], strides = [1, 1]} : vector<2x128xf32> to vector<2x32xf32>
    %cst_46 = arith.constant 1.000000e+00 : f32
    %86 = vector.broadcast %cst_46 : f32 to vector<2x32xf32>
    %87 = arith.addf %86, %85 : vector<2x32xf32>
    %cst_47 = arith.constant 5.000000e-01 : f32
    %88 = vector.broadcast %cst_47 : f32 to vector<2x32xf32>
    %89 = arith.mulf %88, %87 : vector<2x32xf32>
    %90 = vector.extract_strided_slice %79 {offsets = [0, 64], sizes = [2, 32], strides = [1, 1]} : vector<2x128xf32> to vector<2x32xf32>
    %91 = vector.extract_strided_slice %79 {offsets = [0, 96], sizes = [2, 32], strides = [1, 1]} : vector<2x128xf32> to vector<2x32xf32>
    %cst_48 = arith.constant 1.000000e+00 : f32
    %92 = vector.broadcast %cst_48 : f32 to vector<2x32xf32>
    %93 = arith.addf %92, %91 : vector<2x32xf32>
    %cst_49 = arith.constant 5.000000e-01 : f32
    %94 = vector.broadcast %cst_49 : f32 to vector<2x32xf32>
    %95 = arith.mulf %94, %93 : vector<2x32xf32>
    %96 = arith.mulf %89, %72 : vector<2x32xf32>
    %97 = arith.mulf %84, %90 : vector<2x32xf32>
    %98 = arith.addf %96, %97 : vector<2x32xf32>
    %99 = math.tanh %98 : vector<2x32xf32>
    %100 = arith.mulf %95, %99 : vector<2x32xf32>
    %c4 = arith.constant 4 : index
    %c0_50 = arith.constant 0 : index
    %101 = vector.load %arg8[%c4, %c0_50] : memref<16x33xf32, #tpu.memory_space<vmem>>, vector<2x32xf32>
    tpu.vector_store %arg8[%c4, %c0_50], %100 {strides = array<i32>} : memref<16x33xf32, #tpu.memory_space<vmem>>, vector<2x32xf32>,
    %102 = vector.extract_strided_slice %19 {offsets = [6, 0], sizes = [2, 128], strides = [1, 1]} : vector<16x128xf32> to vector<2x128xf32>
    %cst_51 = arith.constant dense<0.000000e+00> : vector<2x128xf32>
    %103 = tpu.matmul %100, %1, %cst_51 {dimension_numbers = #tpu.dot_dimension_numbers<[1], [0], [0], [1], [0, 0, 1, 1], [], []>} : vector<2x32xf32>, vector<32x128xf32>, vector<2x128xf32> -> vector<2x128xf32>
    %104 = arith.addf %102, %103 : vector<2x128xf32>
    %105 = math.tanh %104 : vector<2x128xf32>
    %106 = vector.extract_strided_slice %105 {offsets = [0, 0], sizes = [2, 32], strides = [1, 1]} : vector<2x128xf32> to vector<2x32xf32>
    %cst_52 = arith.constant 1.000000e+00 : f32
    %107 = vector.broadcast %cst_52 : f32 to vector<2x32xf32>
    %108 = arith.addf %107, %106 : vector<2x32xf32>
    %cst_53 = arith.constant 5.000000e-01 : f32
    %109 = vector.broadcast %cst_53 : f32 to vector<2x32xf32>
    %110 = arith.mulf %109, %108 : vector<2x32xf32>
    %111 = vector.extract_strided_slice %105 {offsets = [0, 32], sizes = [2, 32], strides = [1, 1]} : vector<2x128xf32> to vector<2x32xf32>
    %cst_54 = arith.constant 1.000000e+00 : f32
    %112 = vector.broadcast %cst_54 : f32 to vector<2x32xf32>
    %113 = arith.addf %112, %111 : vector<2x32xf32>
    %cst_55 = arith.constant 5.000000e-01 : f32
    %114 = vector.broadcast %cst_55 : f32 to vector<2x32xf32>
    %115 = arith.mulf %114, %113 : vector<2x32xf32>
    %116 = vector.extract_strided_slice %105 {offsets = [0, 64], sizes = [2, 32], strides = [1, 1]} : vector<2x128xf32> to vector<2x32xf32>
    %117 = vector.extract_strided_slice %105 {offsets = [0, 96], sizes = [2, 32], strides = [1, 1]} : vector<2x128xf32> to vector<2x32xf32>
    %cst_56 = arith.constant 1.000000e+00 : f32
    %118 = vector.broadcast %cst_56 : f32 to vector<2x32xf32>
    %119 = arith.addf %118, %117 : vector<2x32xf32>
    %cst_57 = arith.constant 5.000000e-01 : f32
    %120 = vector.broadcast %cst_57 : f32 to vector<2x32xf32>
    %121 = arith.mulf %120, %119 : vector<2x32xf32>
    %122 = arith.mulf %115, %98 : vector<2x32xf32>
    %123 = arith.mulf %110, %116 : vector<2x32xf32>
    %124 = arith.addf %122, %123 : vector<2x32xf32>
    %125 = math.tanh %124 : vector<2x32xf32>
    %126 = arith.mulf %121, %125 : vector<2x32xf32>
    %c6 = arith.constant 6 : index
    %c0_58 = arith.constant 0 : index
    %127 = vector.load %arg8[%c6, %c0_58] : memref<16x33xf32, #tpu.memory_space<vmem>>, vector<2x32xf32>
    tpu.vector_store %arg8[%c6, %c0_58], %126 {strides = array<i32>} : memref<16x33xf32, #tpu.memory_space<vmem>>, vector<2x32xf32>,
    %128 = vector.extract_strided_slice %19 {offsets = [8, 0], sizes = [2, 128], strides = [1, 1]} : vector<16x128xf32> to vector<2x128xf32>
    %cst_59 = arith.constant dense<0.000000e+00> : vector<2x128xf32>
    %129 = tpu.matmul %126, %1, %cst_59 {dimension_numbers = #tpu.dot_dimension_numbers<[1], [0], [0], [1], [0, 0, 1, 1], [], []>} : vector<2x32xf32>, vector<32x128xf32>, vector<2x128xf32> -> vector<2x128xf32>
    %130 = arith.addf %128, %129 : vector<2x128xf32>
    %131 = math.tanh %130 : vector<2x128xf32>
    %132 = vector.extract_strided_slice %131 {offsets = [0, 0], sizes = [2, 32], strides = [1, 1]} : vector<2x128xf32> to vector<2x32xf32>
    %cst_60 = arith.constant 1.000000e+00 : f32
    %133 = vector.broadcast %cst_60 : f32 to vector<2x32xf32>
    %134 = arith.addf %133, %132 : vector<2x32xf32>
    %cst_61 = arith.constant 5.000000e-01 : f32
    %135 = vector.broadcast %cst_61 : f32 to vector<2x32xf32>
    %136 = arith.mulf %135, %134 : vector<2x32xf32>
    %137 = vector.extract_strided_slice %131 {offsets = [0, 32], sizes = [2, 32], strides = [1, 1]} : vector<2x128xf32> to vector<2x32xf32>
    %cst_62 = arith.constant 1.000000e+00 : f32
    %138 = vector.broadcast %cst_62 : f32 to vector<2x32xf32>
    %139 = arith.addf %138, %137 : vector<2x32xf32>
    %cst_63 = arith.constant 5.000000e-01 : f32
    %140 = vector.broadcast %cst_63 : f32 to vector<2x32xf32>
    %141 = arith.mulf %140, %139 : vector<2x32xf32>
    %142 = vector.extract_strided_slice %131 {offsets = [0, 64], sizes = [2, 32], strides = [1, 1]} : vector<2x128xf32> to vector<2x32xf32>
    %143 = vector.extract_strided_slice %131 {offsets = [0, 96], sizes = [2, 32], strides = [1, 1]} : vector<2x128xf32> to vector<2x32xf32>
    %cst_64 = arith.constant 1.000000e+00 : f32
    %144 = vector.broadcast %cst_64 : f32 to vector<2x32xf32>
    %145 = arith.addf %144, %143 : vector<2x32xf32>
    %cst_65 = arith.constant 5.000000e-01 : f32
    %146 = vector.broadcast %cst_65 : f32 to vector<2x32xf32>
    %147 = arith.mulf %146, %145 : vector<2x32xf32>
    %148 = arith.mulf %141, %124 : vector<2x32xf32>
    %149 = arith.mulf %136, %142 : vector<2x32xf32>
    %150 = arith.addf %148, %149 : vector<2x32xf32>
    %151 = math.tanh %150 : vector<2x32xf32>
    %152 = arith.mulf %147, %151 : vector<2x32xf32>
    %c8_66 = arith.constant 8 : index
    %c0_67 = arith.constant 0 : index
    %153 = vector.load %arg8[%c8_66, %c0_67] : memref<16x33xf32, #tpu.memory_space<vmem>>, vector<2x32xf32>
    tpu.vector_store %arg8[%c8_66, %c0_67], %152 {strides = array<i32>} : memref<16x33xf32, #tpu.memory_space<vmem>>, vector<2x32xf32>,
    %154 = vector.extract_strided_slice %19 {offsets = [10, 0], sizes = [2, 128], strides = [1, 1]} : vector<16x128xf32> to vector<2x128xf32>
    %cst_68 = arith.constant dense<0.000000e+00> : vector<2x128xf32>
    %155 = tpu.matmul %152, %1, %cst_68 {dimension_numbers = #tpu.dot_dimension_numbers<[1], [0], [0], [1], [0, 0, 1, 1], [], []>} : vector<2x32xf32>, vector<32x128xf32>, vector<2x128xf32> -> vector<2x128xf32>
    %156 = arith.addf %154, %155 : vector<2x128xf32>
    %157 = math.tanh %156 : vector<2x128xf32>
    %158 = vector.extract_strided_slice %157 {offsets = [0, 0], sizes = [2, 32], strides = [1, 1]} : vector<2x128xf32> to vector<2x32xf32>
    %cst_69 = arith.constant 1.000000e+00 : f32
    %159 = vector.broadcast %cst_69 : f32 to vector<2x32xf32>
    %160 = arith.addf %159, %158 : vector<2x32xf32>
    %cst_70 = arith.constant 5.000000e-01 : f32
    %161 = vector.broadcast %cst_70 : f32 to vector<2x32xf32>
    %162 = arith.mulf %161, %160 : vector<2x32xf32>
    %163 = vector.extract_strided_slice %157 {offsets = [0, 32], sizes = [2, 32], strides = [1, 1]} : vector<2x128xf32> to vector<2x32xf32>
    %cst_71 = arith.constant 1.000000e+00 : f32
    %164 = vector.broadcast %cst_71 : f32 to vector<2x32xf32>
    %165 = arith.addf %164, %163 : vector<2x32xf32>
    %cst_72 = arith.constant 5.000000e-01 : f32
    %166 = vector.broadcast %cst_72 : f32 to vector<2x32xf32>
    %167 = arith.mulf %166, %165 : vector<2x32xf32>
    %168 = vector.extract_strided_slice %157 {offsets = [0, 64], sizes = [2, 32], strides = [1, 1]} : vector<2x128xf32> to vector<2x32xf32>
    %169 = vector.extract_strided_slice %157 {offsets = [0, 96], sizes = [2, 32], strides = [1, 1]} : vector<2x128xf32> to vector<2x32xf32>
    %cst_73 = arith.constant 1.000000e+00 : f32
    %170 = vector.broadcast %cst_73 : f32 to vector<2x32xf32>
    %171 = arith.addf %170, %169 : vector<2x32xf32>
    %cst_74 = arith.constant 5.000000e-01 : f32
    %172 = vector.broadcast %cst_74 : f32 to vector<2x32xf32>
    %173 = arith.mulf %172, %171 : vector<2x32xf32>
    %174 = arith.mulf %167, %150 : vector<2x32xf32>
    %175 = arith.mulf %162, %168 : vector<2x32xf32>
    %176 = arith.addf %174, %175 : vector<2x32xf32>
    %177 = math.tanh %176 : vector<2x32xf32>
    %178 = arith.mulf %173, %177 : vector<2x32xf32>
    %c10 = arith.constant 10 : index
    %c0_75 = arith.constant 0 : index
    %179 = vector.load %arg8[%c10, %c0_75] : memref<16x33xf32, #tpu.memory_space<vmem>>, vector<2x32xf32>
    tpu.vector_store %arg8[%c10, %c0_75], %178 {strides = array<i32>} : memref<16x33xf32, #tpu.memory_space<vmem>>, vector<2x32xf32>,
    %180 = vector.extract_strided_slice %19 {offsets = [12, 0], sizes = [2, 128], strides = [1, 1]} : vector<16x128xf32> to vector<2x128xf32>
    %cst_76 = arith.constant dense<0.000000e+00> : vector<2x128xf32>
    %181 = tpu.matmul %178, %1, %cst_76 {dimension_numbers = #tpu.dot_dimension_numbers<[1], [0], [0], [1], [0, 0, 1, 1], [], []>} : vector<2x32xf32>, vector<32x128xf32>, vector<2x128xf32> -> vector<2x128xf32>
    %182 = arith.addf %180, %181 : vector<2x128xf32>
    %183 = math.tanh %182 : vector<2x128xf32>
    %184 = vector.extract_strided_slice %183 {offsets = [0, 0], sizes = [2, 32], strides = [1, 1]} : vector<2x128xf32> to vector<2x32xf32>
    %cst_77 = arith.constant 1.000000e+00 : f32
    %185 = vector.broadcast %cst_77 : f32 to vector<2x32xf32>
    %186 = arith.addf %185, %184 : vector<2x32xf32>
    %cst_78 = arith.constant 5.000000e-01 : f32
    %187 = vector.broadcast %cst_78 : f32 to vector<2x32xf32>
    %188 = arith.mulf %187, %186 : vector<2x32xf32>
    %189 = vector.extract_strided_slice %183 {offsets = [0, 32], sizes = [2, 32], strides = [1, 1]} : vector<2x128xf32> to vector<2x32xf32>
    %cst_79 = arith.constant 1.000000e+00 : f32
    %190 = vector.broadcast %cst_79 : f32 to vector<2x32xf32>
    %191 = arith.addf %190, %189 : vector<2x32xf32>
    %cst_80 = arith.constant 5.000000e-01 : f32
    %192 = vector.broadcast %cst_80 : f32 to vector<2x32xf32>
    %193 = arith.mulf %192, %191 : vector<2x32xf32>
    %194 = vector.extract_strided_slice %183 {offsets = [0, 64], sizes = [2, 32], strides = [1, 1]} : vector<2x128xf32> to vector<2x32xf32>
    %195 = vector.extract_strided_slice %183 {offsets = [0, 96], sizes = [2, 32], strides = [1, 1]} : vector<2x128xf32> to vector<2x32xf32>
    %cst_81 = arith.constant 1.000000e+00 : f32
    %196 = vector.broadcast %cst_81 : f32 to vector<2x32xf32>
    %197 = arith.addf %196, %195 : vector<2x32xf32>
    %cst_82 = arith.constant 5.000000e-01 : f32
    %198 = vector.broadcast %cst_82 : f32 to vector<2x32xf32>
    %199 = arith.mulf %198, %197 : vector<2x32xf32>
    %200 = arith.mulf %193, %176 : vector<2x32xf32>
    %201 = arith.mulf %188, %194 : vector<2x32xf32>
    %202 = arith.addf %200, %201 : vector<2x32xf32>
    %203 = math.tanh %202 : vector<2x32xf32>
    %204 = arith.mulf %199, %203 : vector<2x32xf32>
    %c12 = arith.constant 12 : index
    %c0_83 = arith.constant 0 : index
    %205 = vector.load %arg8[%c12, %c0_83] : memref<16x33xf32, #tpu.memory_space<vmem>>, vector<2x32xf32>
    tpu.vector_store %arg8[%c12, %c0_83], %204 {strides = array<i32>} : memref<16x33xf32, #tpu.memory_space<vmem>>, vector<2x32xf32>,
    %206 = vector.extract_strided_slice %19 {offsets = [14, 0], sizes = [2, 128], strides = [1, 1]} : vector<16x128xf32> to vector<2x128xf32>
    %cst_84 = arith.constant dense<0.000000e+00> : vector<2x128xf32>
    %207 = tpu.matmul %204, %1, %cst_84 {dimension_numbers = #tpu.dot_dimension_numbers<[1], [0], [0], [1], [0, 0, 1, 1], [], []>} : vector<2x32xf32>, vector<32x128xf32>, vector<2x128xf32> -> vector<2x128xf32>
    %208 = arith.addf %206, %207 : vector<2x128xf32>
    %209 = math.tanh %208 : vector<2x128xf32>
    %210 = vector.extract_strided_slice %209 {offsets = [0, 0], sizes = [2, 32], strides = [1, 1]} : vector<2x128xf32> to vector<2x32xf32>
    %cst_85 = arith.constant 1.000000e+00 : f32
    %211 = vector.broadcast %cst_85 : f32 to vector<2x32xf32>
    %212 = arith.addf %211, %210 : vector<2x32xf32>
    %cst_86 = arith.constant 5.000000e-01 : f32
    %213 = vector.broadcast %cst_86 : f32 to vector<2x32xf32>
    %214 = arith.mulf %213, %212 : vector<2x32xf32>
    %215 = vector.extract_strided_slice %209 {offsets = [0, 32], sizes = [2, 32], strides = [1, 1]} : vector<2x128xf32> to vector<2x32xf32>
    %cst_87 = arith.constant 1.000000e+00 : f32
    %216 = vector.broadcast %cst_87 : f32 to vector<2x32xf32>
    %217 = arith.addf %216, %215 : vector<2x32xf32>
    %cst_88 = arith.constant 5.000000e-01 : f32
    %218 = vector.broadcast %cst_88 : f32 to vector<2x32xf32>
    %219 = arith.mulf %218, %217 : vector<2x32xf32>
    %220 = vector.extract_strided_slice %209 {offsets = [0, 64], sizes = [2, 32], strides = [1, 1]} : vector<2x128xf32> to vector<2x32xf32>
    %221 = vector.extract_strided_slice %209 {offsets = [0, 96], sizes = [2, 32], strides = [1, 1]} : vector<2x128xf32> to vector<2x32xf32>
    %cst_89 = arith.constant 1.000000e+00 : f32
    %222 = vector.broadcast %cst_89 : f32 to vector<2x32xf32>
    %223 = arith.addf %222, %221 : vector<2x32xf32>
    %cst_90 = arith.constant 5.000000e-01 : f32
    %224 = vector.broadcast %cst_90 : f32 to vector<2x32xf32>
    %225 = arith.mulf %224, %223 : vector<2x32xf32>
    %226 = arith.mulf %219, %202 : vector<2x32xf32>
    %227 = arith.mulf %214, %220 : vector<2x32xf32>
    %228 = arith.addf %226, %227 : vector<2x32xf32>
    %229 = math.tanh %228 : vector<2x32xf32>
    %230 = arith.mulf %225, %229 : vector<2x32xf32>
    %c14 = arith.constant 14 : index
    %c0_91 = arith.constant 0 : index
    %231 = vector.load %arg8[%c14, %c0_91] : memref<16x33xf32, #tpu.memory_space<vmem>>, vector<2x32xf32>
    tpu.vector_store %arg8[%c14, %c0_91], %230 {strides = array<i32>} : memref<16x33xf32, #tpu.memory_space<vmem>>, vector<2x32xf32>,
    %c0_92 = arith.constant 0 : index
    %c0_93 = arith.constant 0 : index
    %232 = vector.load %arg8[%c0_92, %c0_93] : memref<16x33xf32, #tpu.memory_space<vmem>>, vector<16x32xf32>
    %cst_94 = arith.constant dense<0.000000e+00> : vector<16x4xf32>
    %233 = tpu.matmul %232, %7, %cst_94 {dimension_numbers = #tpu.dot_dimension_numbers<[1], [0], [0], [1], [0, 0, 1, 1], [], []>} : vector<16x32xf32>, vector<32x4xf32>, vector<16x4xf32> -> vector<16x4xf32>
    %234 = vector.shape_cast %8 : vector<1x4xf32> to vector<1x4xf32>
    %235 = vector.broadcast %234 : vector<1x4xf32> to vector<16x4xf32>
    %236 = arith.addf %233, %235 : vector<16x4xf32>
    %237 = vector.extract_strided_slice %15 {offsets = [0, 1], sizes = [16, 1], strides = [1, 1]} : vector<16x4xf32> to vector<16x1xf32>
    %238 = vector.shape_cast %237 : vector<16x1xf32> to vector<16x1xf32>
    %239 = vector.broadcast %238 : vector<16x1xf32> to vector<16x128xf32>
    %240 = vector.shape_cast %5 : vector<1x128xf32> to vector<1x128xf32>
    %241 = vector.broadcast %240 : vector<1x128xf32> to vector<16x128xf32>
    %242 = arith.mulf %239, %241 : vector<16x128xf32>
    %243 = vector.shape_cast %4 : vector<1x128xf32> to vector<1x128xf32>
    %244 = vector.broadcast %243 : vector<1x128xf32> to vector<2x128xf32>
    %cst_95 = arith.constant 0.000000e+00 : f32
    %245 = vector.broadcast %cst_95 : f32 to vector<2x32xf32>
    %cst_96 = arith.constant 0.000000e+00 : f32
    %246 = vector.broadcast %cst_96 : f32 to vector<2x32xf32>
    %247 = tpu.concatenate %245, %246 in 1 : vector<2x32xf32>, vector<2x32xf32> -> vector<2x64xf32>
    %cst_97 = arith.constant dense<0.000000e+00> : vector<2x4xf32>
    %248 = tpu.matmul %247, %6, %cst_97 {dimension_numbers = #tpu.dot_dimension_numbers<[1], [0], [0], [1], [0, 0, 1, 1], [], []>} : vector<2x64xf32>, vector<64x4xf32>, vector<2x4xf32> -> vector<2x4xf32>
    %cst_98 = arith.constant dense<0.000000e+00> : vector<16x4xf32>
    %249 = tpu.matmul %12, %248, %cst_98 {dimension_numbers = #tpu.dot_dimension_numbers<[1], [0], [0], [1], [0, 0, 1, 1], [], []>} : vector<16x2xf32>, vector<2x4xf32>, vector<16x4xf32> -> vector<16x4xf32>
    %250 = arith.addf %236, %249 : vector<16x4xf32>
    %251 = math.tanh %250 : vector<16x4xf32>
    %cst_99 = arith.constant dense<0.000000e+00> : vector<16x1xf32>
    %252 = tpu.matmul %251, %9, %cst_99 {dimension_numbers = #tpu.dot_dimension_numbers<[1], [0], [0], [1], [0, 0, 1, 1], [], []>} : vector<16x4xf32>, vector<4x1xf32>, vector<16x1xf32> -> vector<16x1xf32>
    %cst_100 = arith.constant dense<0xFF800000> : vector<1xf32>
    %253 = vector.multi_reduction <maximumf>, %252, %cst_100 [0] : vector<16x1xf32> to vector<1xf32>
    %254 = vector.shape_cast %253 : vector<1xf32> to vector<1x1xf32>
    %255 = vector.broadcast %254 : vector<1x1xf32> to vector<16x1xf32>
    %256 = arith.subf %252, %255 : vector<16x1xf32>
    %257 = math.exp %256 : vector<16x1xf32>
    %c0_101 = arith.constant 0 : index
    %c0_102 = arith.constant 0 : index
    %258 = vector.load %arg8[%c0_101, %c0_102] : memref<16x33xf32, #tpu.memory_space<vmem>>, vector<16x33xf32>
    %259 = vector.broadcast %257 : vector<16x1xf32> to vector<16x33xf32>
    %260 = arith.mulf %258, %259 : vector<16x33xf32>
    %cst_103 = arith.constant dense<0.000000e+00> : vector<2x33xf32>
    %261 = tpu.matmul %13, %260, %cst_103 {dimension_numbers = #tpu.dot_dimension_numbers<[1], [0], [0], [1], [0, 0, 1, 1], [], []>} : vector<2x16xf32>, vector<16x33xf32>, vector<2x33xf32> -> vector<2x33xf32>
    %262 = vector.extract_strided_slice %261 {offsets = [0, 32], sizes = [2, 1], strides = [1, 1]} : vector<2x33xf32> to vector<2x1xf32>
    %263 = tpu.reciprocal %262 {approx = true} : vector<2x1xf32> -> vector<2x1xf32>
    %264 = vector.extract_strided_slice %261 {offsets = [0, 0], sizes = [2, 32], strides = [1, 1]} : vector<2x33xf32> to vector<2x32xf32>
    %265 = vector.broadcast %263 : vector<2x1xf32> to vector<2x32xf32>
    %266 = arith.mulf %264, %265 : vector<2x32xf32>
    %267 = tpu.concatenate %266, %245 in 1 : vector<2x32xf32>, vector<2x32xf32> -> vector<2x64xf32>
    %cst_104 = arith.constant dense<0.000000e+00> : vector<2x128xf32>
    %268 = tpu.matmul %267, %2, %cst_104 {dimension_numbers = #tpu.dot_dimension_numbers<[1], [0], [0], [1], [0, 0, 1, 1], [], []>} : vector<2x64xf32>, vector<64x128xf32>, vector<2x128xf32> -> vector<2x128xf32>
    %269 = vector.extract_strided_slice %242 {offsets = [0, 0], sizes = [2, 128], strides = [1, 1]} : vector<16x128xf32> to vector<2x128xf32>
    %270 = arith.addf %268, %269 : vector<2x128xf32>
    %271 = arith.addf %270, %244 : vector<2x128xf32>
    %272 = math.tanh %271 : vector<2x128xf32>
    %273 = vector.extract_strided_slice %272 {offsets = [0, 0], sizes = [2, 32], strides = [1, 1]} : vector<2x128xf32> to vector<2x32xf32>
    %cst_105 = arith.constant 1.000000e+00 : f32
    %274 = vector.broadcast %cst_105 : f32 to vector<2x32xf32>
    %275 = arith.addf %274, %273 : vector<2x32xf32>
    %cst_106 = arith.constant 5.000000e-01 : f32
    %276 = vector.broadcast %cst_106 : f32 to vector<2x32xf32>
    %277 = arith.mulf %276, %275 : vector<2x32xf32>
    %278 = vector.extract_strided_slice %272 {offsets = [0, 32], sizes = [2, 32], strides = [1, 1]} : vector<2x128xf32> to vector<2x32xf32>
    %cst_107 = arith.constant 1.000000e+00 : f32
    %279 = vector.broadcast %cst_107 : f32 to vector<2x32xf32>
    %280 = arith.addf %279, %278 : vector<2x32xf32>
    %cst_108 = arith.constant 5.000000e-01 : f32
    %281 = vector.broadcast %cst_108 : f32 to vector<2x32xf32>
    %282 = arith.mulf %281, %280 : vector<2x32xf32>
    %283 = vector.extract_strided_slice %272 {offsets = [0, 64], sizes = [2, 32], strides = [1, 1]} : vector<2x128xf32> to vector<2x32xf32>
    %284 = vector.extract_strided_slice %272 {offsets = [0, 96], sizes = [2, 32], strides = [1, 1]} : vector<2x128xf32> to vector<2x32xf32>
    %cst_109 = arith.constant 1.000000e+00 : f32
    %285 = vector.broadcast %cst_109 : f32 to vector<2x32xf32>
    %286 = arith.addf %285, %284 : vector<2x32xf32>
    %cst_110 = arith.constant 5.000000e-01 : f32
    %287 = vector.broadcast %cst_110 : f32 to vector<2x32xf32>
    %288 = arith.mulf %287, %286 : vector<2x32xf32>
    %289 = arith.mulf %282, %246 : vector<2x32xf32>
    %290 = arith.mulf %277, %283 : vector<2x32xf32>
    %291 = arith.addf %289, %290 : vector<2x32xf32>
    %292 = math.tanh %291 : vector<2x32xf32>
    %293 = arith.mulf %288, %292 : vector<2x32xf32>
    %294 = tpu.concatenate %293, %291 in 1 : vector<2x32xf32>, vector<2x32xf32> -> vector<2x64xf32>
    %cst_111 = arith.constant dense<0.000000e+00> : vector<2x4xf32>
    %295 = tpu.matmul %294, %6, %cst_111 {dimension_numbers = #tpu.dot_dimension_numbers<[1], [0], [0], [1], [0, 0, 1, 1], [], []>} : vector<2x64xf32>, vector<64x4xf32>, vector<2x4xf32> -> vector<2x4xf32>
    %cst_112 = arith.constant dense<0.000000e+00> : vector<16x4xf32>
    %296 = tpu.matmul %12, %295, %cst_112 {dimension_numbers = #tpu.dot_dimension_numbers<[1], [0], [0], [1], [0, 0, 1, 1], [], []>} : vector<16x2xf32>, vector<2x4xf32>, vector<16x4xf32> -> vector<16x4xf32>
    %297 = arith.addf %236, %296 : vector<16x4xf32>
    %298 = math.tanh %297 : vector<16x4xf32>
    %cst_113 = arith.constant dense<0.000000e+00> : vector<16x1xf32>
    %299 = tpu.matmul %298, %9, %cst_113 {dimension_numbers = #tpu.dot_dimension_numbers<[1], [0], [0], [1], [0, 0, 1, 1], [], []>} : vector<16x4xf32>, vector<4x1xf32>, vector<16x1xf32> -> vector<16x1xf32>
    %cst_114 = arith.constant dense<0xFF800000> : vector<1xf32>
    %300 = vector.multi_reduction <maximumf>, %299, %cst_114 [0] : vector<16x1xf32> to vector<1xf32>
    %301 = vector.shape_cast %300 : vector<1xf32> to vector<1x1xf32>
    %302 = vector.broadcast %301 : vector<1x1xf32> to vector<16x1xf32>
    %303 = arith.subf %299, %302 : vector<16x1xf32>
    %304 = math.exp %303 : vector<16x1xf32>
    %c0_115 = arith.constant 0 : index
    %c0_116 = arith.constant 0 : index
    %305 = vector.load %arg8[%c0_115, %c0_116] : memref<16x33xf32, #tpu.memory_space<vmem>>, vector<16x33xf32>
    %306 = vector.broadcast %304 : vector<16x1xf32> to vector<16x33xf32>
    %307 = arith.mulf %305, %306 : vector<16x33xf32>
    %cst_117 = arith.constant dense<0.000000e+00> : vector<2x33xf32>
    %308 = tpu.matmul %13, %307, %cst_117 {dimension_numbers = #tpu.dot_dimension_numbers<[1], [0], [0], [1], [0, 0, 1, 1], [], []>} : vector<2x16xf32>, vector<16x33xf32>, vector<2x33xf32> -> vector<2x33xf32>
    %309 = vector.extract_strided_slice %308 {offsets = [0, 32], sizes = [2, 1], strides = [1, 1]} : vector<2x33xf32> to vector<2x1xf32>
    %310 = tpu.reciprocal %309 {approx = true} : vector<2x1xf32> -> vector<2x1xf32>
    %311 = vector.extract_strided_slice %308 {offsets = [0, 0], sizes = [2, 32], strides = [1, 1]} : vector<2x33xf32> to vector<2x32xf32>
    %312 = vector.broadcast %310 : vector<2x1xf32> to vector<2x32xf32>
    %313 = arith.mulf %311, %312 : vector<2x32xf32>
    %314 = tpu.concatenate %313, %293 in 1 : vector<2x32xf32>, vector<2x32xf32> -> vector<2x64xf32>
    %cst_118 = arith.constant dense<0.000000e+00> : vector<2x128xf32>
    %315 = tpu.matmul %314, %2, %cst_118 {dimension_numbers = #tpu.dot_dimension_numbers<[1], [0], [0], [1], [0, 0, 1, 1], [], []>} : vector<2x64xf32>, vector<64x128xf32>, vector<2x128xf32> -> vector<2x128xf32>
    %316 = vector.extract_strided_slice %242 {offsets = [2, 0], sizes = [2, 128], strides = [1, 1]} : vector<16x128xf32> to vector<2x128xf32>
    %317 = arith.addf %315, %316 : vector<2x128xf32>
    %318 = arith.addf %317, %244 : vector<2x128xf32>
    %319 = math.tanh %318 : vector<2x128xf32>
    %320 = vector.extract_strided_slice %319 {offsets = [0, 0], sizes = [2, 32], strides = [1, 1]} : vector<2x128xf32> to vector<2x32xf32>
    %cst_119 = arith.constant 1.000000e+00 : f32
    %321 = vector.broadcast %cst_119 : f32 to vector<2x32xf32>
    %322 = arith.addf %321, %320 : vector<2x32xf32>
    %cst_120 = arith.constant 5.000000e-01 : f32
    %323 = vector.broadcast %cst_120 : f32 to vector<2x32xf32>
    %324 = arith.mulf %323, %322 : vector<2x32xf32>
    %325 = vector.extract_strided_slice %319 {offsets = [0, 32], sizes = [2, 32], strides = [1, 1]} : vector<2x128xf32> to vector<2x32xf32>
    %cst_121 = arith.constant 1.000000e+00 : f32
    %326 = vector.broadcast %cst_121 : f32 to vector<2x32xf32>
    %327 = arith.addf %326, %325 : vector<2x32xf32>
    %cst_122 = arith.constant 5.000000e-01 : f32
    %328 = vector.broadcast %cst_122 : f32 to vector<2x32xf32>
    %329 = arith.mulf %328, %327 : vector<2x32xf32>
    %330 = vector.extract_strided_slice %319 {offsets = [0, 64], sizes = [2, 32], strides = [1, 1]} : vector<2x128xf32> to vector<2x32xf32>
    %331 = vector.extract_strided_slice %319 {offsets = [0, 96], sizes = [2, 32], strides = [1, 1]} : vector<2x128xf32> to vector<2x32xf32>
    %cst_123 = arith.constant 1.000000e+00 : f32
    %332 = vector.broadcast %cst_123 : f32 to vector<2x32xf32>
    %333 = arith.addf %332, %331 : vector<2x32xf32>
    %cst_124 = arith.constant 5.000000e-01 : f32
    %334 = vector.broadcast %cst_124 : f32 to vector<2x32xf32>
    %335 = arith.mulf %334, %333 : vector<2x32xf32>
    %336 = arith.mulf %329, %291 : vector<2x32xf32>
    %337 = arith.mulf %324, %330 : vector<2x32xf32>
    %338 = arith.addf %336, %337 : vector<2x32xf32>
    %339 = math.tanh %338 : vector<2x32xf32>
    %340 = arith.mulf %335, %339 : vector<2x32xf32>
    %341 = tpu.concatenate %340, %338 in 1 : vector<2x32xf32>, vector<2x32xf32> -> vector<2x64xf32>
    %cst_125 = arith.constant dense<0.000000e+00> : vector<2x4xf32>
    %342 = tpu.matmul %341, %6, %cst_125 {dimension_numbers = #tpu.dot_dimension_numbers<[1], [0], [0], [1], [0, 0, 1, 1], [], []>} : vector<2x64xf32>, vector<64x4xf32>, vector<2x4xf32> -> vector<2x4xf32>
    %cst_126 = arith.constant dense<0.000000e+00> : vector<16x4xf32>
    %343 = tpu.matmul %12, %342, %cst_126 {dimension_numbers = #tpu.dot_dimension_numbers<[1], [0], [0], [1], [0, 0, 1, 1], [], []>} : vector<16x2xf32>, vector<2x4xf32>, vector<16x4xf32> -> vector<16x4xf32>
    %344 = arith.addf %236, %343 : vector<16x4xf32>
    %345 = math.tanh %344 : vector<16x4xf32>
    %cst_127 = arith.constant dense<0.000000e+00> : vector<16x1xf32>
    %346 = tpu.matmul %345, %9, %cst_127 {dimension_numbers = #tpu.dot_dimension_numbers<[1], [0], [0], [1], [0, 0, 1, 1], [], []>} : vector<16x4xf32>, vector<4x1xf32>, vector<16x1xf32> -> vector<16x1xf32>
    %cst_128 = arith.constant dense<0xFF800000> : vector<1xf32>
    %347 = vector.multi_reduction <maximumf>, %346, %cst_128 [0] : vector<16x1xf32> to vector<1xf32>
    %348 = vector.shape_cast %347 : vector<1xf32> to vector<1x1xf32>
    %349 = vector.broadcast %348 : vector<1x1xf32> to vector<16x1xf32>
    %350 = arith.subf %346, %349 : vector<16x1xf32>
    %351 = math.exp %350 : vector<16x1xf32>
    %c0_129 = arith.constant 0 : index
    %c0_130 = arith.constant 0 : index
    %352 = vector.load %arg8[%c0_129, %c0_130] : memref<16x33xf32, #tpu.memory_space<vmem>>, vector<16x33xf32>
    %353 = vector.broadcast %351 : vector<16x1xf32> to vector<16x33xf32>
    %354 = arith.mulf %352, %353 : vector<16x33xf32>
    %cst_131 = arith.constant dense<0.000000e+00> : vector<2x33xf32>
    %355 = tpu.matmul %13, %354, %cst_131 {dimension_numbers = #tpu.dot_dimension_numbers<[1], [0], [0], [1], [0, 0, 1, 1], [], []>} : vector<2x16xf32>, vector<16x33xf32>, vector<2x33xf32> -> vector<2x33xf32>
    %356 = vector.extract_strided_slice %355 {offsets = [0, 32], sizes = [2, 1], strides = [1, 1]} : vector<2x33xf32> to vector<2x1xf32>
    %357 = tpu.reciprocal %356 {approx = true} : vector<2x1xf32> -> vector<2x1xf32>
    %358 = vector.extract_strided_slice %355 {offsets = [0, 0], sizes = [2, 32], strides = [1, 1]} : vector<2x33xf32> to vector<2x32xf32>
    %359 = vector.broadcast %357 : vector<2x1xf32> to vector<2x32xf32>
    %360 = arith.mulf %358, %359 : vector<2x32xf32>
    %361 = tpu.concatenate %360, %340 in 1 : vector<2x32xf32>, vector<2x32xf32> -> vector<2x64xf32>
    %cst_132 = arith.constant dense<0.000000e+00> : vector<2x128xf32>
    %362 = tpu.matmul %361, %2, %cst_132 {dimension_numbers = #tpu.dot_dimension_numbers<[1], [0], [0], [1], [0, 0, 1, 1], [], []>} : vector<2x64xf32>, vector<64x128xf32>, vector<2x128xf32> -> vector<2x128xf32>
    %363 = vector.extract_strided_slice %242 {offsets = [4, 0], sizes = [2, 128], strides = [1, 1]} : vector<16x128xf32> to vector<2x128xf32>
    %364 = arith.addf %362, %363 : vector<2x128xf32>
    %365 = arith.addf %364, %244 : vector<2x128xf32>
    %366 = math.tanh %365 : vector<2x128xf32>
    %367 = vector.extract_strided_slice %366 {offsets = [0, 0], sizes = [2, 32], strides = [1, 1]} : vector<2x128xf32> to vector<2x32xf32>
    %cst_133 = arith.constant 1.000000e+00 : f32
    %368 = vector.broadcast %cst_133 : f32 to vector<2x32xf32>
    %369 = arith.addf %368, %367 : vector<2x32xf32>
    %cst_134 = arith.constant 5.000000e-01 : f32
    %370 = vector.broadcast %cst_134 : f32 to vector<2x32xf32>
    %371 = arith.mulf %370, %369 : vector<2x32xf32>
    %372 = vector.extract_strided_slice %366 {offsets = [0, 32], sizes = [2, 32], strides = [1, 1]} : vector<2x128xf32> to vector<2x32xf32>
    %cst_135 = arith.constant 1.000000e+00 : f32
    %373 = vector.broadcast %cst_135 : f32 to vector<2x32xf32>
    %374 = arith.addf %373, %372 : vector<2x32xf32>
    %cst_136 = arith.constant 5.000000e-01 : f32
    %375 = vector.broadcast %cst_136 : f32 to vector<2x32xf32>
    %376 = arith.mulf %375, %374 : vector<2x32xf32>
    %377 = vector.extract_strided_slice %366 {offsets = [0, 64], sizes = [2, 32], strides = [1, 1]} : vector<2x128xf32> to vector<2x32xf32>
    %378 = vector.extract_strided_slice %366 {offsets = [0, 96], sizes = [2, 32], strides = [1, 1]} : vector<2x128xf32> to vector<2x32xf32>
    %cst_137 = arith.constant 1.000000e+00 : f32
    %379 = vector.broadcast %cst_137 : f32 to vector<2x32xf32>
    %380 = arith.addf %379, %378 : vector<2x32xf32>
    %cst_138 = arith.constant 5.000000e-01 : f32
    %381 = vector.broadcast %cst_138 : f32 to vector<2x32xf32>
    %382 = arith.mulf %381, %380 : vector<2x32xf32>
    %383 = arith.mulf %376, %338 : vector<2x32xf32>
    %384 = arith.mulf %371, %377 : vector<2x32xf32>
    %385 = arith.addf %383, %384 : vector<2x32xf32>
    %386 = math.tanh %385 : vector<2x32xf32>
    %387 = arith.mulf %382, %386 : vector<2x32xf32>
    %388 = tpu.concatenate %387, %385 in 1 : vector<2x32xf32>, vector<2x32xf32> -> vector<2x64xf32>
    %cst_139 = arith.constant dense<0.000000e+00> : vector<2x4xf32>
    %389 = tpu.matmul %388, %6, %cst_139 {dimension_numbers = #tpu.dot_dimension_numbers<[1], [0], [0], [1], [0, 0, 1, 1], [], []>} : vector<2x64xf32>, vector<64x4xf32>, vector<2x4xf32> -> vector<2x4xf32>
    %cst_140 = arith.constant dense<0.000000e+00> : vector<16x4xf32>
    %390 = tpu.matmul %12, %389, %cst_140 {dimension_numbers = #tpu.dot_dimension_numbers<[1], [0], [0], [1], [0, 0, 1, 1], [], []>} : vector<16x2xf32>, vector<2x4xf32>, vector<16x4xf32> -> vector<16x4xf32>
    %391 = arith.addf %236, %390 : vector<16x4xf32>
    %392 = math.tanh %391 : vector<16x4xf32>
    %cst_141 = arith.constant dense<0.000000e+00> : vector<16x1xf32>
    %393 = tpu.matmul %392, %9, %cst_141 {dimension_numbers = #tpu.dot_dimension_numbers<[1], [0], [0], [1], [0, 0, 1, 1], [], []>} : vector<16x4xf32>, vector<4x1xf32>, vector<16x1xf32> -> vector<16x1xf32>
    %cst_142 = arith.constant dense<0xFF800000> : vector<1xf32>
    %394 = vector.multi_reduction <maximumf>, %393, %cst_142 [0] : vector<16x1xf32> to vector<1xf32>
    %395 = vector.shape_cast %394 : vector<1xf32> to vector<1x1xf32>
    %396 = vector.broadcast %395 : vector<1x1xf32> to vector<16x1xf32>
    %397 = arith.subf %393, %396 : vector<16x1xf32>
    %398 = math.exp %397 : vector<16x1xf32>
    %c0_143 = arith.constant 0 : index
    %c0_144 = arith.constant 0 : index
    %399 = vector.load %arg8[%c0_143, %c0_144] : memref<16x33xf32, #tpu.memory_space<vmem>>, vector<16x33xf32>
    %400 = vector.broadcast %398 : vector<16x1xf32> to vector<16x33xf32>
    %401 = arith.mulf %399, %400 : vector<16x33xf32>
    %cst_145 = arith.constant dense<0.000000e+00> : vector<2x33xf32>
    %402 = tpu.matmul %13, %401, %cst_145 {dimension_numbers = #tpu.dot_dimension_numbers<[1], [0], [0], [1], [0, 0, 1, 1], [], []>} : vector<2x16xf32>, vector<16x33xf32>, vector<2x33xf32> -> vector<2x33xf32>
    %403 = vector.extract_strided_slice %402 {offsets = [0, 32], sizes = [2, 1], strides = [1, 1]} : vector<2x33xf32> to vector<2x1xf32>
    %404 = tpu.reciprocal %403 {approx = true} : vector<2x1xf32> -> vector<2x1xf32>
    %405 = vector.extract_strided_slice %402 {offsets = [0, 0], sizes = [2, 32], strides = [1, 1]} : vector<2x33xf32> to vector<2x32xf32>
    %406 = vector.broadcast %404 : vector<2x1xf32> to vector<2x32xf32>
    %407 = arith.mulf %405, %406 : vector<2x32xf32>
    %408 = tpu.concatenate %407, %387 in 1 : vector<2x32xf32>, vector<2x32xf32> -> vector<2x64xf32>
    %cst_146 = arith.constant dense<0.000000e+00> : vector<2x128xf32>
    %409 = tpu.matmul %408, %2, %cst_146 {dimension_numbers = #tpu.dot_dimension_numbers<[1], [0], [0], [1], [0, 0, 1, 1], [], []>} : vector<2x64xf32>, vector<64x128xf32>, vector<2x128xf32> -> vector<2x128xf32>
    %410 = vector.extract_strided_slice %242 {offsets = [6, 0], sizes = [2, 128], strides = [1, 1]} : vector<16x128xf32> to vector<2x128xf32>
    %411 = arith.addf %409, %410 : vector<2x128xf32>
    %412 = arith.addf %411, %244 : vector<2x128xf32>
    %413 = math.tanh %412 : vector<2x128xf32>
    %414 = vector.extract_strided_slice %413 {offsets = [0, 0], sizes = [2, 32], strides = [1, 1]} : vector<2x128xf32> to vector<2x32xf32>
    %cst_147 = arith.constant 1.000000e+00 : f32
    %415 = vector.broadcast %cst_147 : f32 to vector<2x32xf32>
    %416 = arith.addf %415, %414 : vector<2x32xf32>
    %cst_148 = arith.constant 5.000000e-01 : f32
    %417 = vector.broadcast %cst_148 : f32 to vector<2x32xf32>
    %418 = arith.mulf %417, %416 : vector<2x32xf32>
    %419 = vector.extract_strided_slice %413 {offsets = [0, 32], sizes = [2, 32], strides = [1, 1]} : vector<2x128xf32> to vector<2x32xf32>
    %cst_149 = arith.constant 1.000000e+00 : f32
    %420 = vector.broadcast %cst_149 : f32 to vector<2x32xf32>
    %421 = arith.addf %420, %419 : vector<2x32xf32>
    %cst_150 = arith.constant 5.000000e-01 : f32
    %422 = vector.broadcast %cst_150 : f32 to vector<2x32xf32>
    %423 = arith.mulf %422, %421 : vector<2x32xf32>
    %424 = vector.extract_strided_slice %413 {offsets = [0, 64], sizes = [2, 32], strides = [1, 1]} : vector<2x128xf32> to vector<2x32xf32>
    %425 = vector.extract_strided_slice %413 {offsets = [0, 96], sizes = [2, 32], strides = [1, 1]} : vector<2x128xf32> to vector<2x32xf32>
    %cst_151 = arith.constant 1.000000e+00 : f32
    %426 = vector.broadcast %cst_151 : f32 to vector<2x32xf32>
    %427 = arith.addf %426, %425 : vector<2x32xf32>
    %cst_152 = arith.constant 5.000000e-01 : f32
    %428 = vector.broadcast %cst_152 : f32 to vector<2x32xf32>
    %429 = arith.mulf %428, %427 : vector<2x32xf32>
    %430 = arith.mulf %423, %385 : vector<2x32xf32>
    %431 = arith.mulf %418, %424 : vector<2x32xf32>
    %432 = arith.addf %430, %431 : vector<2x32xf32>
    %433 = math.tanh %432 : vector<2x32xf32>
    %434 = arith.mulf %429, %433 : vector<2x32xf32>
    %435 = tpu.concatenate %434, %432 in 1 : vector<2x32xf32>, vector<2x32xf32> -> vector<2x64xf32>
    %cst_153 = arith.constant dense<0.000000e+00> : vector<2x4xf32>
    %436 = tpu.matmul %435, %6, %cst_153 {dimension_numbers = #tpu.dot_dimension_numbers<[1], [0], [0], [1], [0, 0, 1, 1], [], []>} : vector<2x64xf32>, vector<64x4xf32>, vector<2x4xf32> -> vector<2x4xf32>
    %cst_154 = arith.constant dense<0.000000e+00> : vector<16x4xf32>
    %437 = tpu.matmul %12, %436, %cst_154 {dimension_numbers = #tpu.dot_dimension_numbers<[1], [0], [0], [1], [0, 0, 1, 1], [], []>} : vector<16x2xf32>, vector<2x4xf32>, vector<16x4xf32> -> vector<16x4xf32>
    %438 = arith.addf %236, %437 : vector<16x4xf32>
    %439 = math.tanh %438 : vector<16x4xf32>
    %cst_155 = arith.constant dense<0.000000e+00> : vector<16x1xf32>
    %440 = tpu.matmul %439, %9, %cst_155 {dimension_numbers = #tpu.dot_dimension_numbers<[1], [0], [0], [1], [0, 0, 1, 1], [], []>} : vector<16x4xf32>, vector<4x1xf32>, vector<16x1xf32> -> vector<16x1xf32>
    %cst_156 = arith.constant dense<0xFF800000> : vector<1xf32>
    %441 = vector.multi_reduction <maximumf>, %440, %cst_156 [0] : vector<16x1xf32> to vector<1xf32>
    %442 = vector.shape_cast %441 : vector<1xf32> to vector<1x1xf32>
    %443 = vector.broadcast %442 : vector<1x1xf32> to vector<16x1xf32>
    %444 = arith.subf %440, %443 : vector<16x1xf32>
    %445 = math.exp %444 : vector<16x1xf32>
    %c0_157 = arith.constant 0 : index
    %c0_158 = arith.constant 0 : index
    %446 = vector.load %arg8[%c0_157, %c0_158] : memref<16x33xf32, #tpu.memory_space<vmem>>, vector<16x33xf32>
    %447 = vector.broadcast %445 : vector<16x1xf32> to vector<16x33xf32>
    %448 = arith.mulf %446, %447 : vector<16x33xf32>
    %cst_159 = arith.constant dense<0.000000e+00> : vector<2x33xf32>
    %449 = tpu.matmul %13, %448, %cst_159 {dimension_numbers = #tpu.dot_dimension_numbers<[1], [0], [0], [1], [0, 0, 1, 1], [], []>} : vector<2x16xf32>, vector<16x33xf32>, vector<2x33xf32> -> vector<2x33xf32>
    %450 = vector.extract_strided_slice %449 {offsets = [0, 32], sizes = [2, 1], strides = [1, 1]} : vector<2x33xf32> to vector<2x1xf32>
    %451 = tpu.reciprocal %450 {approx = true} : vector<2x1xf32> -> vector<2x1xf32>
    %452 = vector.extract_strided_slice %449 {offsets = [0, 0], sizes = [2, 32], strides = [1, 1]} : vector<2x33xf32> to vector<2x32xf32>
    %453 = vector.broadcast %451 : vector<2x1xf32> to vector<2x32xf32>
    %454 = arith.mulf %452, %453 : vector<2x32xf32>
    %455 = tpu.concatenate %454, %434 in 1 : vector<2x32xf32>, vector<2x32xf32> -> vector<2x64xf32>
    %cst_160 = arith.constant dense<0.000000e+00> : vector<2x128xf32>
    %456 = tpu.matmul %455, %2, %cst_160 {dimension_numbers = #tpu.dot_dimension_numbers<[1], [0], [0], [1], [0, 0, 1, 1], [], []>} : vector<2x64xf32>, vector<64x128xf32>, vector<2x128xf32> -> vector<2x128xf32>
    %457 = vector.extract_strided_slice %242 {offsets = [8, 0], sizes = [2, 128], strides = [1, 1]} : vector<16x128xf32> to vector<2x128xf32>
    %458 = arith.addf %456, %457 : vector<2x128xf32>
    %459 = arith.addf %458, %244 : vector<2x128xf32>
    %460 = math.tanh %459 : vector<2x128xf32>
    %461 = vector.extract_strided_slice %460 {offsets = [0, 0], sizes = [2, 32], strides = [1, 1]} : vector<2x128xf32> to vector<2x32xf32>
    %cst_161 = arith.constant 1.000000e+00 : f32
    %462 = vector.broadcast %cst_161 : f32 to vector<2x32xf32>
    %463 = arith.addf %462, %461 : vector<2x32xf32>
    %cst_162 = arith.constant 5.000000e-01 : f32
    %464 = vector.broadcast %cst_162 : f32 to vector<2x32xf32>
    %465 = arith.mulf %464, %463 : vector<2x32xf32>
    %466 = vector.extract_strided_slice %460 {offsets = [0, 32], sizes = [2, 32], strides = [1, 1]} : vector<2x128xf32> to vector<2x32xf32>
    %cst_163 = arith.constant 1.000000e+00 : f32
    %467 = vector.broadcast %cst_163 : f32 to vector<2x32xf32>
    %468 = arith.addf %467, %466 : vector<2x32xf32>
    %cst_164 = arith.constant 5.000000e-01 : f32
    %469 = vector.broadcast %cst_164 : f32 to vector<2x32xf32>
    %470 = arith.mulf %469, %468 : vector<2x32xf32>
    %471 = vector.extract_strided_slice %460 {offsets = [0, 64], sizes = [2, 32], strides = [1, 1]} : vector<2x128xf32> to vector<2x32xf32>
    %472 = vector.extract_strided_slice %460 {offsets = [0, 96], sizes = [2, 32], strides = [1, 1]} : vector<2x128xf32> to vector<2x32xf32>
    %cst_165 = arith.constant 1.000000e+00 : f32
    %473 = vector.broadcast %cst_165 : f32 to vector<2x32xf32>
    %474 = arith.addf %473, %472 : vector<2x32xf32>
    %cst_166 = arith.constant 5.000000e-01 : f32
    %475 = vector.broadcast %cst_166 : f32 to vector<2x32xf32>
    %476 = arith.mulf %475, %474 : vector<2x32xf32>
    %477 = arith.mulf %470, %432 : vector<2x32xf32>
    %478 = arith.mulf %465, %471 : vector<2x32xf32>
    %479 = arith.addf %477, %478 : vector<2x32xf32>
    %480 = math.tanh %479 : vector<2x32xf32>
    %481 = arith.mulf %476, %480 : vector<2x32xf32>
    %482 = tpu.concatenate %481, %479 in 1 : vector<2x32xf32>, vector<2x32xf32> -> vector<2x64xf32>
    %cst_167 = arith.constant dense<0.000000e+00> : vector<2x4xf32>
    %483 = tpu.matmul %482, %6, %cst_167 {dimension_numbers = #tpu.dot_dimension_numbers<[1], [0], [0], [1], [0, 0, 1, 1], [], []>} : vector<2x64xf32>, vector<64x4xf32>, vector<2x4xf32> -> vector<2x4xf32>
    %cst_168 = arith.constant dense<0.000000e+00> : vector<16x4xf32>
    %484 = tpu.matmul %12, %483, %cst_168 {dimension_numbers = #tpu.dot_dimension_numbers<[1], [0], [0], [1], [0, 0, 1, 1], [], []>} : vector<16x2xf32>, vector<2x4xf32>, vector<16x4xf32> -> vector<16x4xf32>
    %485 = arith.addf %236, %484 : vector<16x4xf32>
    %486 = math.tanh %485 : vector<16x4xf32>
    %cst_169 = arith.constant dense<0.000000e+00> : vector<16x1xf32>
    %487 = tpu.matmul %486, %9, %cst_169 {dimension_numbers = #tpu.dot_dimension_numbers<[1], [0], [0], [1], [0, 0, 1, 1], [], []>} : vector<16x4xf32>, vector<4x1xf32>, vector<16x1xf32> -> vector<16x1xf32>
    %cst_170 = arith.constant dense<0xFF800000> : vector<1xf32>
    %488 = vector.multi_reduction <maximumf>, %487, %cst_170 [0] : vector<16x1xf32> to vector<1xf32>
    %489 = vector.shape_cast %488 : vector<1xf32> to vector<1x1xf32>
    %490 = vector.broadcast %489 : vector<1x1xf32> to vector<16x1xf32>
    %491 = arith.subf %487, %490 : vector<16x1xf32>
    %492 = math.exp %491 : vector<16x1xf32>
    %c0_171 = arith.constant 0 : index
    %c0_172 = arith.constant 0 : index
    %493 = vector.load %arg8[%c0_171, %c0_172] : memref<16x33xf32, #tpu.memory_space<vmem>>, vector<16x33xf32>
    %494 = vector.broadcast %492 : vector<16x1xf32> to vector<16x33xf32>
    %495 = arith.mulf %493, %494 : vector<16x33xf32>
    %cst_173 = arith.constant dense<0.000000e+00> : vector<2x33xf32>
    %496 = tpu.matmul %13, %495, %cst_173 {dimension_numbers = #tpu.dot_dimension_numbers<[1], [0], [0], [1], [0, 0, 1, 1], [], []>} : vector<2x16xf32>, vector<16x33xf32>, vector<2x33xf32> -> vector<2x33xf32>
    %497 = vector.extract_strided_slice %496 {offsets = [0, 32], sizes = [2, 1], strides = [1, 1]} : vector<2x33xf32> to vector<2x1xf32>
    %498 = tpu.reciprocal %497 {approx = true} : vector<2x1xf32> -> vector<2x1xf32>
    %499 = vector.extract_strided_slice %496 {offsets = [0, 0], sizes = [2, 32], strides = [1, 1]} : vector<2x33xf32> to vector<2x32xf32>
    %500 = vector.broadcast %498 : vector<2x1xf32> to vector<2x32xf32>
    %501 = arith.mulf %499, %500 : vector<2x32xf32>
    %502 = tpu.concatenate %501, %481 in 1 : vector<2x32xf32>, vector<2x32xf32> -> vector<2x64xf32>
    %cst_174 = arith.constant dense<0.000000e+00> : vector<2x128xf32>
    %503 = tpu.matmul %502, %2, %cst_174 {dimension_numbers = #tpu.dot_dimension_numbers<[1], [0], [0], [1], [0, 0, 1, 1], [], []>} : vector<2x64xf32>, vector<64x128xf32>, vector<2x128xf32> -> vector<2x128xf32>
    %504 = vector.extract_strided_slice %242 {offsets = [10, 0], sizes = [2, 128], strides = [1, 1]} : vector<16x128xf32> to vector<2x128xf32>
    %505 = arith.addf %503, %504 : vector<2x128xf32>
    %506 = arith.addf %505, %244 : vector<2x128xf32>
    %507 = math.tanh %506 : vector<2x128xf32>
    %508 = vector.extract_strided_slice %507 {offsets = [0, 0], sizes = [2, 32], strides = [1, 1]} : vector<2x128xf32> to vector<2x32xf32>
    %cst_175 = arith.constant 1.000000e+00 : f32
    %509 = vector.broadcast %cst_175 : f32 to vector<2x32xf32>
    %510 = arith.addf %509, %508 : vector<2x32xf32>
    %cst_176 = arith.constant 5.000000e-01 : f32
    %511 = vector.broadcast %cst_176 : f32 to vector<2x32xf32>
    %512 = arith.mulf %511, %510 : vector<2x32xf32>
    %513 = vector.extract_strided_slice %507 {offsets = [0, 32], sizes = [2, 32], strides = [1, 1]} : vector<2x128xf32> to vector<2x32xf32>
    %cst_177 = arith.constant 1.000000e+00 : f32
    %514 = vector.broadcast %cst_177 : f32 to vector<2x32xf32>
    %515 = arith.addf %514, %513 : vector<2x32xf32>
    %cst_178 = arith.constant 5.000000e-01 : f32
    %516 = vector.broadcast %cst_178 : f32 to vector<2x32xf32>
    %517 = arith.mulf %516, %515 : vector<2x32xf32>
    %518 = vector.extract_strided_slice %507 {offsets = [0, 64], sizes = [2, 32], strides = [1, 1]} : vector<2x128xf32> to vector<2x32xf32>
    %519 = vector.extract_strided_slice %507 {offsets = [0, 96], sizes = [2, 32], strides = [1, 1]} : vector<2x128xf32> to vector<2x32xf32>
    %cst_179 = arith.constant 1.000000e+00 : f32
    %520 = vector.broadcast %cst_179 : f32 to vector<2x32xf32>
    %521 = arith.addf %520, %519 : vector<2x32xf32>
    %cst_180 = arith.constant 5.000000e-01 : f32
    %522 = vector.broadcast %cst_180 : f32 to vector<2x32xf32>
    %523 = arith.mulf %522, %521 : vector<2x32xf32>
    %524 = arith.mulf %517, %479 : vector<2x32xf32>
    %525 = arith.mulf %512, %518 : vector<2x32xf32>
    %526 = arith.addf %524, %525 : vector<2x32xf32>
    %527 = math.tanh %526 : vector<2x32xf32>
    %528 = arith.mulf %523, %527 : vector<2x32xf32>
    %529 = tpu.concatenate %528, %526 in 1 : vector<2x32xf32>, vector<2x32xf32> -> vector<2x64xf32>
    %cst_181 = arith.constant dense<0.000000e+00> : vector<2x4xf32>
    %530 = tpu.matmul %529, %6, %cst_181 {dimension_numbers = #tpu.dot_dimension_numbers<[1], [0], [0], [1], [0, 0, 1, 1], [], []>} : vector<2x64xf32>, vector<64x4xf32>, vector<2x4xf32> -> vector<2x4xf32>
    %cst_182 = arith.constant dense<0.000000e+00> : vector<16x4xf32>
    %531 = tpu.matmul %12, %530, %cst_182 {dimension_numbers = #tpu.dot_dimension_numbers<[1], [0], [0], [1], [0, 0, 1, 1], [], []>} : vector<16x2xf32>, vector<2x4xf32>, vector<16x4xf32> -> vector<16x4xf32>
    %532 = arith.addf %236, %531 : vector<16x4xf32>
    %533 = math.tanh %532 : vector<16x4xf32>
    %cst_183 = arith.constant dense<0.000000e+00> : vector<16x1xf32>
    %534 = tpu.matmul %533, %9, %cst_183 {dimension_numbers = #tpu.dot_dimension_numbers<[1], [0], [0], [1], [0, 0, 1, 1], [], []>} : vector<16x4xf32>, vector<4x1xf32>, vector<16x1xf32> -> vector<16x1xf32>
    %cst_184 = arith.constant dense<0xFF800000> : vector<1xf32>
    %535 = vector.multi_reduction <maximumf>, %534, %cst_184 [0] : vector<16x1xf32> to vector<1xf32>
    %536 = vector.shape_cast %535 : vector<1xf32> to vector<1x1xf32>
    %537 = vector.broadcast %536 : vector<1x1xf32> to vector<16x1xf32>
    %538 = arith.subf %534, %537 : vector<16x1xf32>
    %539 = math.exp %538 : vector<16x1xf32>
    %c0_185 = arith.constant 0 : index
    %c0_186 = arith.constant 0 : index
    %540 = vector.load %arg8[%c0_185, %c0_186] : memref<16x33xf32, #tpu.memory_space<vmem>>, vector<16x33xf32>
    %541 = vector.broadcast %539 : vector<16x1xf32> to vector<16x33xf32>
    %542 = arith.mulf %540, %541 : vector<16x33xf32>
    %cst_187 = arith.constant dense<0.000000e+00> : vector<2x33xf32>
    %543 = tpu.matmul %13, %542, %cst_187 {dimension_numbers = #tpu.dot_dimension_numbers<[1], [0], [0], [1], [0, 0, 1, 1], [], []>} : vector<2x16xf32>, vector<16x33xf32>, vector<2x33xf32> -> vector<2x33xf32>
    %544 = vector.extract_strided_slice %543 {offsets = [0, 32], sizes = [2, 1], strides = [1, 1]} : vector<2x33xf32> to vector<2x1xf32>
    %545 = tpu.reciprocal %544 {approx = true} : vector<2x1xf32> -> vector<2x1xf32>
    %546 = vector.extract_strided_slice %543 {offsets = [0, 0], sizes = [2, 32], strides = [1, 1]} : vector<2x33xf32> to vector<2x32xf32>
    %547 = vector.broadcast %545 : vector<2x1xf32> to vector<2x32xf32>
    %548 = arith.mulf %546, %547 : vector<2x32xf32>
    %549 = tpu.concatenate %548, %528 in 1 : vector<2x32xf32>, vector<2x32xf32> -> vector<2x64xf32>
    %cst_188 = arith.constant dense<0.000000e+00> : vector<2x128xf32>
    %550 = tpu.matmul %549, %2, %cst_188 {dimension_numbers = #tpu.dot_dimension_numbers<[1], [0], [0], [1], [0, 0, 1, 1], [], []>} : vector<2x64xf32>, vector<64x128xf32>, vector<2x128xf32> -> vector<2x128xf32>
    %551 = vector.extract_strided_slice %242 {offsets = [12, 0], sizes = [2, 128], strides = [1, 1]} : vector<16x128xf32> to vector<2x128xf32>
    %552 = arith.addf %550, %551 : vector<2x128xf32>
    %553 = arith.addf %552, %244 : vector<2x128xf32>
    %554 = math.tanh %553 : vector<2x128xf32>
    %555 = vector.extract_strided_slice %554 {offsets = [0, 0], sizes = [2, 32], strides = [1, 1]} : vector<2x128xf32> to vector<2x32xf32>
    %cst_189 = arith.constant 1.000000e+00 : f32
    %556 = vector.broadcast %cst_189 : f32 to vector<2x32xf32>
    %557 = arith.addf %556, %555 : vector<2x32xf32>
    %cst_190 = arith.constant 5.000000e-01 : f32
    %558 = vector.broadcast %cst_190 : f32 to vector<2x32xf32>
    %559 = arith.mulf %558, %557 : vector<2x32xf32>
    %560 = vector.extract_strided_slice %554 {offsets = [0, 32], sizes = [2, 32], strides = [1, 1]} : vector<2x128xf32> to vector<2x32xf32>
    %cst_191 = arith.constant 1.000000e+00 : f32
    %561 = vector.broadcast %cst_191 : f32 to vector<2x32xf32>
    %562 = arith.addf %561, %560 : vector<2x32xf32>
    %cst_192 = arith.constant 5.000000e-01 : f32
    %563 = vector.broadcast %cst_192 : f32 to vector<2x32xf32>
    %564 = arith.mulf %563, %562 : vector<2x32xf32>
    %565 = vector.extract_strided_slice %554 {offsets = [0, 64], sizes = [2, 32], strides = [1, 1]} : vector<2x128xf32> to vector<2x32xf32>
    %566 = vector.extract_strided_slice %554 {offsets = [0, 96], sizes = [2, 32], strides = [1, 1]} : vector<2x128xf32> to vector<2x32xf32>
    %cst_193 = arith.constant 1.000000e+00 : f32
    %567 = vector.broadcast %cst_193 : f32 to vector<2x32xf32>
    %568 = arith.addf %567, %566 : vector<2x32xf32>
    %cst_194 = arith.constant 5.000000e-01 : f32
    %569 = vector.broadcast %cst_194 : f32 to vector<2x32xf32>
    %570 = arith.mulf %569, %568 : vector<2x32xf32>
    %571 = arith.mulf %564, %526 : vector<2x32xf32>
    %572 = arith.mulf %559, %565 : vector<2x32xf32>
    %573 = arith.addf %571, %572 : vector<2x32xf32>
    %574 = math.tanh %573 : vector<2x32xf32>
    %575 = arith.mulf %570, %574 : vector<2x32xf32>
    %576 = tpu.concatenate %575, %573 in 1 : vector<2x32xf32>, vector<2x32xf32> -> vector<2x64xf32>
    %cst_195 = arith.constant dense<0.000000e+00> : vector<2x4xf32>
    %577 = tpu.matmul %576, %6, %cst_195 {dimension_numbers = #tpu.dot_dimension_numbers<[1], [0], [0], [1], [0, 0, 1, 1], [], []>} : vector<2x64xf32>, vector<64x4xf32>, vector<2x4xf32> -> vector<2x4xf32>
    %cst_196 = arith.constant dense<0.000000e+00> : vector<16x4xf32>
    %578 = tpu.matmul %12, %577, %cst_196 {dimension_numbers = #tpu.dot_dimension_numbers<[1], [0], [0], [1], [0, 0, 1, 1], [], []>} : vector<16x2xf32>, vector<2x4xf32>, vector<16x4xf32> -> vector<16x4xf32>
    %579 = arith.addf %236, %578 : vector<16x4xf32>
    %580 = math.tanh %579 : vector<16x4xf32>
    %cst_197 = arith.constant dense<0.000000e+00> : vector<16x1xf32>
    %581 = tpu.matmul %580, %9, %cst_197 {dimension_numbers = #tpu.dot_dimension_numbers<[1], [0], [0], [1], [0, 0, 1, 1], [], []>} : vector<16x4xf32>, vector<4x1xf32>, vector<16x1xf32> -> vector<16x1xf32>
    %cst_198 = arith.constant dense<0xFF800000> : vector<1xf32>
    %582 = vector.multi_reduction <maximumf>, %581, %cst_198 [0] : vector<16x1xf32> to vector<1xf32>
    %583 = vector.shape_cast %582 : vector<1xf32> to vector<1x1xf32>
    %584 = vector.broadcast %583 : vector<1x1xf32> to vector<16x1xf32>
    %585 = arith.subf %581, %584 : vector<16x1xf32>
    %586 = math.exp %585 : vector<16x1xf32>
    %c0_199 = arith.constant 0 : index
    %c0_200 = arith.constant 0 : index
    %587 = vector.load %arg8[%c0_199, %c0_200] : memref<16x33xf32, #tpu.memory_space<vmem>>, vector<16x33xf32>
    %588 = vector.broadcast %586 : vector<16x1xf32> to vector<16x33xf32>
    %589 = arith.mulf %587, %588 : vector<16x33xf32>
    %cst_201 = arith.constant dense<0.000000e+00> : vector<2x33xf32>
    %590 = tpu.matmul %13, %589, %cst_201 {dimension_numbers = #tpu.dot_dimension_numbers<[1], [0], [0], [1], [0, 0, 1, 1], [], []>} : vector<2x16xf32>, vector<16x33xf32>, vector<2x33xf32> -> vector<2x33xf32>
    %591 = vector.extract_strided_slice %590 {offsets = [0, 32], sizes = [2, 1], strides = [1, 1]} : vector<2x33xf32> to vector<2x1xf32>
    %592 = tpu.reciprocal %591 {approx = true} : vector<2x1xf32> -> vector<2x1xf32>
    %593 = vector.extract_strided_slice %590 {offsets = [0, 0], sizes = [2, 32], strides = [1, 1]} : vector<2x33xf32> to vector<2x32xf32>
    %594 = vector.broadcast %592 : vector<2x1xf32> to vector<2x32xf32>
    %595 = arith.mulf %593, %594 : vector<2x32xf32>
    %596 = tpu.concatenate %595, %575 in 1 : vector<2x32xf32>, vector<2x32xf32> -> vector<2x64xf32>
    %cst_202 = arith.constant dense<0.000000e+00> : vector<2x128xf32>
    %597 = tpu.matmul %596, %2, %cst_202 {dimension_numbers = #tpu.dot_dimension_numbers<[1], [0], [0], [1], [0, 0, 1, 1], [], []>} : vector<2x64xf32>, vector<64x128xf32>, vector<2x128xf32> -> vector<2x128xf32>
    %598 = vector.extract_strided_slice %242 {offsets = [14, 0], sizes = [2, 128], strides = [1, 1]} : vector<16x128xf32> to vector<2x128xf32>
    %599 = arith.addf %597, %598 : vector<2x128xf32>
    %600 = arith.addf %599, %244 : vector<2x128xf32>
    %601 = math.tanh %600 : vector<2x128xf32>
    %602 = vector.extract_strided_slice %601 {offsets = [0, 0], sizes = [2, 32], strides = [1, 1]} : vector<2x128xf32> to vector<2x32xf32>
    %cst_203 = arith.constant 1.000000e+00 : f32
    %603 = vector.broadcast %cst_203 : f32 to vector<2x32xf32>
    %604 = arith.addf %603, %602 : vector<2x32xf32>
    %cst_204 = arith.constant 5.000000e-01 : f32
    %605 = vector.broadcast %cst_204 : f32 to vector<2x32xf32>
    %606 = arith.mulf %605, %604 : vector<2x32xf32>
    %607 = vector.extract_strided_slice %601 {offsets = [0, 32], sizes = [2, 32], strides = [1, 1]} : vector<2x128xf32> to vector<2x32xf32>
    %cst_205 = arith.constant 1.000000e+00 : f32
    %608 = vector.broadcast %cst_205 : f32 to vector<2x32xf32>
    %609 = arith.addf %608, %607 : vector<2x32xf32>
    %cst_206 = arith.constant 5.000000e-01 : f32
    %610 = vector.broadcast %cst_206 : f32 to vector<2x32xf32>
    %611 = arith.mulf %610, %609 : vector<2x32xf32>
    %612 = vector.extract_strided_slice %601 {offsets = [0, 64], sizes = [2, 32], strides = [1, 1]} : vector<2x128xf32> to vector<2x32xf32>
    %613 = vector.extract_strided_slice %601 {offsets = [0, 96], sizes = [2, 32], strides = [1, 1]} : vector<2x128xf32> to vector<2x32xf32>
    %cst_207 = arith.constant 1.000000e+00 : f32
    %614 = vector.broadcast %cst_207 : f32 to vector<2x32xf32>
    %615 = arith.addf %614, %613 : vector<2x32xf32>
    %cst_208 = arith.constant 5.000000e-01 : f32
    %616 = vector.broadcast %cst_208 : f32 to vector<2x32xf32>
    %617 = arith.mulf %616, %615 : vector<2x32xf32>
    %618 = arith.mulf %611, %573 : vector<2x32xf32>
    %619 = arith.mulf %606, %612 : vector<2x32xf32>
    %620 = arith.addf %618, %619 : vector<2x32xf32>
    %621 = math.tanh %620 : vector<2x32xf32>
    %622 = arith.mulf %617, %621 : vector<2x32xf32>
    %623 = tpu.concatenate %622, %595 in 1 : vector<2x32xf32>, vector<2x32xf32> -> vector<2x64xf32>
    %cst_209 = arith.constant dense<0.000000e+00> : vector<2x1xf32>
    %624 = tpu.matmul %623, %10, %cst_209 {dimension_numbers = #tpu.dot_dimension_numbers<[1], [0], [0], [1], [0, 0, 1, 1], [], []>} : vector<2x64xf32>, vector<64x1xf32>, vector<2x1xf32> -> vector<2x1xf32>
    %625 = vector.broadcast %11 : vector<1x1xf32> to vector<2x1xf32>
    %626 = arith.addf %624, %625 : vector<2x1xf32>
    %627 = vector.shape_cast %626 : vector<2x1xf32> to vector<2x1xf32>
    %628 = vector.broadcast %627 : vector<2x1xf32> to vector<2x128xf32>
    %c0_210 = arith.constant 0 : index
    %c0_211 = arith.constant 0 : index
    %629 = vector.load %arg7[%c0_210, %c0_211] : memref<2x128xf32, #tpu.memory_space<vmem>>, vector<2x128xf32>
    tpu.vector_store %arg7[%c0_210, %c0_211], %628 {strides = array<i32>} : memref<2x128xf32, #tpu.memory_space<vmem>>, vector<2x128xf32>,
    return
  }
  func.func @transform_0(%arg0: i32) -> (i32, i32, i32) {
    %c0_i32 = arith.constant 0 : i32
    %c0_i32_0 = arith.constant 0 : i32
    %c0_i32_1 = arith.constant 0 : i32
    return %c0_i32, %arg0, %c0_i32_0 : i32, i32, i32
  }
  func.func @transform_1(%arg0: i32) -> (i32, i32) {
    %c0_i32 = arith.constant 0 : i32
    %c0_i32_0 = arith.constant 0 : i32
    %c0_i32_1 = arith.constant 0 : i32
    return %c0_i32, %c0_i32_0 : i32, i32
  }
  func.func @transform_2(%arg0: i32) -> (i32, i32) {
    %c0_i32 = arith.constant 0 : i32
    %c0_i32_0 = arith.constant 0 : i32
    %c0_i32_1 = arith.constant 0 : i32
    return %c0_i32, %c0_i32_0 : i32, i32
  }
  func.func @transform_3(%arg0: i32) -> (i32, i32) {
    %c0_i32 = arith.constant 0 : i32
    %c0_i32_0 = arith.constant 0 : i32
    %c0_i32_1 = arith.constant 0 : i32
    return %c0_i32, %c0_i32_0 : i32, i32
  }
  func.func @transform_4(%arg0: i32) -> (i32, i32) {
    %c0_i32 = arith.constant 0 : i32
    %c0_i32_0 = arith.constant 0 : i32
    %c0_i32_1 = arith.constant 0 : i32
    return %c0_i32, %c0_i32_0 : i32, i32
  }
  func.func @transform_5(%arg0: i32) -> (i32, i32) {
    %c0_i32 = arith.constant 0 : i32
    %c0_i32_0 = arith.constant 0 : i32
    %c0_i32_1 = arith.constant 0 : i32
    return %c0_i32, %c0_i32_0 : i32, i32
  }
  func.func @transform_6(%arg0: i32) -> (i32, i32) {
    %c0_i32 = arith.constant 0 : i32
    %c0_i32_0 = arith.constant 0 : i32
    return %arg0, %c0_i32 : i32, i32
  }
}

</mosaic_0001>

<bundles_post_ra>
// kernel: rnn_da_att1_forward.1
= control target key start
LH: loop header
LB: loop body
LE: loop exit
PB: predicated region body
PF: predicated region fallthrough
CT: control target
= control target key end

     0   :  { %vm124_vm0 = vcmask 1043456   ;;  %v90_v0 = vlaneseq  ;;  %v6053_v1 = vmov 0.0   ;;  %v6054_v5 = vmov 1983009808   ;;  %s6056_s25 = smov 64   ;;  %s6057_s26 = smov 32   ;;  %s7308_s3 = inlined_call_operand.vmem [shape: f32[112,128], index: 3, kind: input, shape index: {}]   ;;  %s7309_s0 = inlined_call_operand.vmem [shape: f32[8,2,4], index: 0, kind: input, shape index: {}]   ;;  %s7310_s4 = inlined_call_operand.vmem [shape: f32[104,4], index: 4, kind: input, shape index: {}]   ;;  %s7311_s1 = inlined_call_operand.vmem [shape: f32[16,2], index: 1, kind: input, shape index: {}]   ;;  %s7312_s5 = inlined_call_operand.vmem [shape: f32[80,1], index: 5, kind: input, shape index: {}]   ;;  %s7313_s2 = inlined_call_operand.vmem [shape: f32[2,16], index: 2, kind: input, shape index: {}]   ;;  %s7314_s6 = inlined_call_operand.vmem [shape: f32[2,128], index: 6, kind: output, shape index: {}]  }
   0x1   :  { %5281 = vmatprep.subr.mxu1 %v6053_v1  ;;  %v6102_v2 = vld [vmem:[%s7308_s3 + $0x20] sm:$0xff]  ;;  %v6107_v3 = vld [vmem:[%s7308_s3 + $0x18] sm:$0xff]  ;;  %v88_v6 = vunpack.c.l.s4 %v6054_v5  ;;  %v6136_v14 = vld [vmem:[%s7308_s3 + $0x10] sm:$0xff]  ;;  %vm6055_vm1 = vmmov 0   ;;  %vm119_vm2 = vcmask 31744   ;;  %vm203_vm3 = vcmask 269568  }
   0x2   :  { %v23_v4 = vld [vmem:[%s7308_s3] sm:$0xf]  ;;  %5282 = vmatpush3.msra.mxu1 %v6102_v2  ;;  %v67_v9 = vld [vmem:[%s7309_s0 + $0x4] sm:$0x3]  ;;  %v68_v10 = vld [vmem:[%s7309_s0 + $0x6] sm:$0x3]  ;;  %5289 = vmatprep.mubr.msk.f32.mxu1 %vm6055_vm1, %v6053_v1 }
   0x3   :  { %5276 = vmatprep.subr.msk.mxu0 %vm124_vm0, %v23_v4  ;;  %v6117_v7 = vld [vmem:[%s7309_s0] sm:$0x3]  ;;  %v66_v8 = vld [vmem:[%s7309_s0 + $0x2] sm:$0x3]  ;;  %5283 = vmatprep.subr.mxu1 %v6053_v1  ;;  %v89_v12 = vunpack.c.0.s8 %v88_v6  ;;  %v6131_v13 = vshrl.u32 %v90_v0, 7  ;;  %v86_v15 = vcombine.low %v67_v9, %v68_v10  ;;  %v6160_v22 = vld [vmem:[%s7308_s3 + $0x8] sm:$0xff] }
   0x4   :  { %5277 = vmatpush3.msk.msra.mxu0 %vm124_vm0, %v23_v4  ;;  %v85_v11 = vcombine.low %v6117_v7, %v66_v8  ;;  %5284 = vmatpush3.msra.mxu1 %v6107_v3  ;;  %v69_v16 = vld [vmem:[%s7309_s0 + $0x8] sm:$0x3]  ;;  %v70_v17 = vld [vmem:[%s7309_s0 + $0xa] sm:$0x3]  ;;  %v71_v18 = vld [vmem:[%s7309_s0 + $0xc] sm:$0x3] }
   0x5   :  { %5285 = vmatprep.subr.mxu1 %v6053_v1  ;;  %v6152_v19 = vsub.s32 %v89_v12, %v6131_v13  ;;  %v72_v20 = vld [vmem:[%s7309_s0 + $0xe] sm:$0x3]  ;;  %v102_v21 = vcombine.low %v69_v16, %v70_v17  ;;  %5292 = vmatprep.subr.mxu0 %v6053_v1  ;;  %v4913_v31 = vld [vmem:[%s7308_s3 + $0x68] ss:$0 sm:$0xff]  ;;  %v6058_v46 = vmov 1.0   ;;  %vm305_vm4 = vcmask 254976  }
   0x6   :  { %5286 = vmatpush3.msra.mxu1 %v6136_v14  ;;  %v103_v23 = vcombine.low %v71_v18, %v72_v20  ;;  %204 = vst.msk [vmem:[#allocation2] sm:$0xff] %vm203_vm3, %v6058_v46  ;;  %205 = vst.msk [vmem:[#allocation2 + $0x8] sm:$0xff] %vm203_vm3, %v6058_v46  ;;  %vm206_vm5 = vcmask 261120   ;;  %vm410_vm6 = vcmask 257026   ;;  %vm626_vm7 = vcmask 261126  }
   0x7   :  { %v93_v24 = vrot.slane %v85_v11, %v6152_v19  ;;  %v100_v25 = vrot.slane %v86_v15, %v6152_v19  ;;  %v110_v26 = vrot.slane %v102_v21, %v6152_v19  ;;  %5287 = vmatprep.subr.mxu1 %v6053_v1  ;;  %vm518_vm8 = vcmask 259076  }
   0x8   :  { %v117_v27 = vrot.slane %v103_v23, %v6152_v19  ;;  %5288 = vmatpush3.msra.mxu1 %v6160_v22  ;;  %vm1343_vm9 = vcmask 1041408   ;;  %vm1336_vm10 = vcmask 15360   ;;  %vm1510_vm11 = vcmask 7168  }
   0x9   :  { %v101_v28 = vcombine.low %v93_v24, %v100_v25  ;;  %5290 = vmatmul.mubr.f32.vlgmr.msra.gmra.mxu1 %v6053_v1  ;;  %5303 = vmatprep.subr.mxu1 %v6053_v1  ;;  %vm1540_vm12 = vcmask 130048   ;;  %vm1263_vm13 = vcmask 523264  }
   0xa   :  { %v118_v29 = vcombine.low %v110_v26, %v117_v27  ;;  %5304 = vmatpush3.msra.mxu1 %v6102_v2  ;;  %5311 = vmatprep.mubr.msk.f32.mxu1 %vm6055_vm1, %v6053_v1 }
   0xb   :  { %5278 = vmatprep.mubr.msk.f32.mxu0 %vm119_vm2, %v101_v28  ;;  %5305 = vmatprep.subr.mxu1 %v6053_v1 }
   0xc   :  { %5279 = vmatmul.mubr.msk.f32.vlgmr.msra.gmra.mxu0 %vm119_vm2, %v118_v29  ;;  %5306 = vmatpush3.msra.mxu1 %v6107_v3 }
   0xd   :  { %5293 = vmatpush3.msra.mxu0 %v6102_v2  ;;  %5300 = vmatprep.mubr.msk.f32.mxu0 %vm6055_vm1, %v6053_v1 }
   0xe   :  { %5294 = vmatprep.subr.mxu0 %v6053_v1  ;;  %5307 = vmatprep.subr.mxu1 %v6053_v1 }
   0xf   :  { %5295 = vmatpush3.msra.mxu0 %v6107_v3  ;;  %5308 = vmatpush3.msra.mxu1 %v6136_v14 }
  0x10   :  { %5296 = vmatprep.subr.mxu0 %v6053_v1  ;;  %5309 = vmatprep.subr.mxu1 %v6053_v1 }
  0x11   :  { %5297 = vmatpush3.msra.mxu0 %v6136_v14  ;;  %5310 = vmatpush3.msra.mxu1 %v6160_v22 }
  0x12   :  { %5298 = vmatprep.subr.mxu0 %v6053_v1  ;;  %5325 = vmatprep.subr.mxu1 %v6053_v1 }
  0x13   :  { %5299 = vmatpush3.msra.mxu0 %v6160_v22 }
  0x14   :  { %5314 = vmatprep.subr.mxu0 %v6053_v1 }
  0xc9   :  { %v276_v30 = vpop.f32.mrf.mxu1 }
  0xcb   :  { %v5291_v32 = vpop.f32.mrf.mxu1 }
  0xcc   :  { %v5280_v33 = vpop.f32.mrf.mxu0 }
  0xcd   :  { %v6197_v34 = vadd.f32 %v5280_v33, %v4913_v31 }
  0xce   :  { %v194_v35 = vpop.f32.mrf.mxu0 }
  0xcf   :  { %v6199_v36 = vadd.f32 %v4913_v31, %v194_v35 }
  0xd1   :  { %v280_v37 = vadd.f32 %v276_v30, %v6199_v36 }
  0xd3   :  { %5879 = vtanh.f32 %v280_v37 }
  0xe0   :  { %v5880_v38 = vpop.eup %5879 }
  0xe1   :  { %286 = vrot.lane.b32.xlu0 %v5880_v38, %s6056_s25  ;;  %v282_v39 = vadd.f32 1.0, %v5880_v38 }
  0xe3   :  { %v283_v40 = vmul.f32 0.5, %v282_v39 }
  0xe5   :  { %v284_v43 = vmul.f32 0.0, %v283_v40 }
 0x153   :  { %v287_v41 = vpop.permute.xlu0 %286 }
 0x154   :  { %v289_v42 = vmul.f32 %v287_v41, %v283_v40 }
 0x156   :  { %291 = vrot.lane.b32.xlu0 %v289_v42, %s6057_s26 }
 0x1c8   :  { %v292_v44 = vpop.permute.xlu0 %291 }
 0x1c9   :  { %v294_v45 = vadd.f32 %v292_v44, %v284_v43 }
 0x1cb   :  { %5881 = vtanh.f32 %v294_v45  ;;  %v387_v60 = vrot.slane %v294_v45, 6 }
 0x1d8   :  { %v5882_v47 = vpop.eup %5881 }
 0x1d9   :  { %297 = vrot.lane.b32.xlu1 %v5882_v47, %s6056_s25 }
 0x24b   :  { %v298_v48 = vpop.permute.xlu1 %297 }
 0x24c   :  { %v300_v49 = vmul.f32 %v298_v48, %v283_v40 }
 0x24e   :  { %302 = vrot.lane.b32.xlu1 %v300_v49, %s6057_s26 }
 0x2c0   :  { %v303_v50 = vpop.permute.xlu1 %302 }
 0x2c1   :  { %306 = vst.msk [vmem:[#allocation2] sm:$0x3] %vm305_vm4, %v303_v50  ;;  %5301 = vmatmul.mubr.msk.f32.vlgmr.msra.gmra.mxu0 %vm206_vm5, %v303_v50 }
 0x2c2   :  { %5315 = vmatpush3.msra.mxu0 %v6102_v2  ;;  %5322 = vmatprep.mubr.msk.f32.mxu0 %vm6055_vm1, %v6053_v1 }
 0x2c3   :  { %5316 = vmatprep.subr.mxu0 %v6053_v1 }
 0x2c4   :  { %5317 = vmatpush3.msra.mxu0 %v6107_v3 }
 0x2c5   :  { %5318 = vmatprep.subr.mxu0 %v6053_v1 }
 0x2c6   :  { %5319 = vmatpush3.msra.mxu0 %v6136_v14 }
 0x2c7   :  { %5320 = vmatprep.subr.mxu0 %v6053_v1 }
 0x2c8   :  { %5321 = vmatpush3.msra.mxu0 %v6160_v22 }
 0x2c9   :  { %5336 = vmatprep.subr.mxu0 %v6053_v1 }
 0x381   :  { %v375_v51 = vpop.f32.mrf.mxu0 }
 0x382   :  { %v380_v52 = vrot.slane %v375_v51, 6 }
 0x383   :  { %v5302_v53 = vpop.f32.mrf.mxu0 }
 0x384   :  { %v382_v54 = vadd.f32 %v380_v52, %v6199_v36 }
 0x386   :  { %5883 = vtanh.f32 %v382_v54 }
 0x393   :  { %v5884_v55 = vpop.eup %5883 }
 0x394   :  { %391 = vrot.lane.b32.xlu0 %v5884_v55, %s6056_s25  ;;  %v384_v56 = vadd.f32 1.0, %v5884_v55 }
 0x396   :  { %v385_v57 = vmul.f32 0.5, %v384_v56 }
 0x398   :  { %v389_v61 = vmul.f32 %v387_v60, %v385_v57 }
 0x406   :  { %v392_v58 = vpop.permute.xlu0 %391 }
 0x407   :  { %v394_v59 = vmul.f32 %v392_v58, %v385_v57 }
 0x409   :  { %396 = vrot.lane.b32.xlu1 %v394_v59, %s6057_s26 }
 0x47b   :  { %v397_v62 = vpop.permute.xlu1 %396 }
 0x47c   :  { %v399_v63 = vadd.f32 %v397_v62, %v389_v61 }
 0x47e   :  { %5885 = vtanh.f32 %v399_v63  ;;  %v495_v21 = vrot.slane %v399_v63, 6 }
 0x48b   :  { %v5886_v0 = vpop.eup %5885 }
 0x48c   :  { %402 = vrot.lane.b32.xlu0 %v5886_v0, %s6056_s25 }
 0x4fe   :  { %v403_v4 = vpop.permute.xlu0 %402 }
 0x4ff   :  { %v6222_v5 = vmul.f32 %v403_v4, %v385_v57 }
 0x501   :  { %v412_v6 = vrot.slane %v6222_v5, 2 }
 0x503   :  { %413 = vrot.lane.b32.xlu1 %v412_v6, %s6057_s26 }
 0x575   :  { %v414_v8 = vpop.permute.xlu1 %413 }
 0x576   :  { %5312 = vmatmul.mubr.msk.f32.vlgmr.msra.gmra.mxu1 %vm206_vm5, %v414_v8 }
 0x577   :  { %5326 = vmatpush3.msra.mxu1 %v6102_v2  ;;  %5333 = vmatprep.mubr.msk.f32.mxu1 %vm6055_vm1, %v6053_v1 }
 0x578   :  { %5327 = vmatprep.subr.mxu1 %v6053_v1 }
 0x579   :  { %5328 = vmatpush3.msra.mxu1 %v6107_v3 }
 0x57a   :  { %5329 = vmatprep.subr.mxu1 %v6053_v1 }
 0x57b   :  { %5330 = vmatpush3.msra.mxu1 %v6136_v14 }
 0x57c   :  { %5331 = vmatprep.subr.mxu1 %v6053_v1 }
 0x57d   :  { %5332 = vmatpush3.msra.mxu1 %v6160_v22 }
 0x57e   :  { %5347 = vmatprep.subr.mxu1 %v6053_v1 }
 0x636   :  { %v483_v9 = vpop.f32.mrf.mxu1 }
 0x637   :  { %v488_v10 = vrot.slane %v483_v9, 4 }
 0x638   :  { %v5313_v11 = vpop.f32.mrf.mxu1 }
 0x639   :  { %v490_v12 = vadd.f32 %v488_v10, %v6199_v36 }
 0x63b   :  { %5887 = vtanh.f32 %v490_v12 }
 0x648   :  { %v5888_v15 = vpop.eup %5887 }
 0x649   :  { %499 = vrot.lane.b32.xlu0 %v5888_v15, %s6056_s25  ;;  %v492_v16 = vadd.f32 1.0, %v5888_v15 }
 0x64b   :  { %v493_v17 = vmul.f32 0.5, %v492_v16 }
 0x64d   :  { %v497_v23 = vmul.f32 %v495_v21, %v493_v17 }
 0x6bb   :  { %v500_v18 = vpop.permute.xlu0 %499 }
 0x6bc   :  { %v502_v20 = vmul.f32 %v500_v18, %v493_v17 }
 0x6be   :  { %504 = vrot.lane.b32.xlu1 %v502_v20, %s6057_s26 }
 0x730   :  { %v505_v24 = vpop.permute.xlu1 %504 }
 0x731   :  { %v507_v25 = vadd.f32 %v505_v24, %v497_v23 }
 0x733   :  { %5889 = vtanh.f32 %v507_v25  ;;  %v603_v42 = vrot.slane %v507_v25, 6 }
 0x740   :  { %v5890_v26 = vpop.eup %5889 }
 0x741   :  { %510 = vrot.lane.b32.xlu0 %v5890_v26, %s6056_s25 }
 0x7b3   :  { %v511_v27 = vpop.permute.xlu0 %510 }
 0x7b4   :  { %v6241_v28 = vmul.f32 %v511_v27, %v493_v17 }
 0x7b6   :  { %v520_v29 = vrot.slane %v6241_v28, 4 }
 0x7b8   :  { %521 = vrot.lane.b32.xlu1 %v520_v29, %s6057_s26 }
 0x82a   :  { %v522_v30 = vpop.permute.xlu1 %521 }
 0x82b   :  { %5323 = vmatmul.mubr.msk.f32.vlgmr.msra.gmra.mxu0 %vm206_vm5, %v522_v30 }
 0x82c   :  { %5337 = vmatpush3.msra.mxu0 %v6102_v2  ;;  %5344 = vmatprep.mubr.msk.f32.mxu0 %vm6055_vm1, %v6053_v1 }
 0x82d   :  { %5338 = vmatprep.subr.mxu0 %v6053_v1 }
 0x82e   :  { %5339 = vmatpush3.msra.mxu0 %v6107_v3 }
 0x82f   :  { %5340 = vmatprep.subr.mxu0 %v6053_v1 }
 0x830   :  { %5341 = vmatpush3.msra.mxu0 %v6136_v14 }
 0x831   :  { %5342 = vmatprep.subr.mxu0 %v6053_v1 }
 0x832   :  { %5343 = vmatpush3.msra.mxu0 %v6160_v22 }
 0x833   :  { %5358 = vmatprep.subr.mxu0 %v6053_v1 }
 0x8eb   :  { %v591_v31 = vpop.f32.mrf.mxu0 }
 0x8ec   :  { %v596_v32 = vrot.slane %v591_v31, 2 }
 0x8ed   :  { %v5324_v33 = vpop.f32.mrf.mxu0 }
 0x8ee   :  { %v598_v35 = vadd.f32 %v596_v32, %v6199_v36 }
 0x8f0   :  { %5891 = vtanh.f32 %v598_v35 }
 0x8fd   :  { %v5892_v37 = vpop.eup %5891 }
 0x8fe   :  { %607 = vrot.lane.b32.xlu0 %v5892_v37, %s6056_s25  ;;  %v600_v38 = vadd.f32 1.0, %v5892_v37 }
 0x900   :  { %v601_v39 = vmul.f32 0.5, %v600_v38 }
 0x902   :  { %v605_v43 = vmul.f32 %v603_v42, %v601_v39 }
 0x970   :  { %v608_v40 = vpop.permute.xlu0 %607 }
 0x971   :  { %v610_v41 = vmul.f32 %v608_v40, %v601_v39 }
 0x973   :  { %612 = vrot.lane.b32.xlu1 %v610_v41, %s6057_s26 }
 0x9e5   :  { %v613_v44 = vpop.permute.xlu1 %612 }
 0x9e6   :  { %v615_v45 = vadd.f32 %v613_v44, %v605_v43 }
 0x9e8   :  { %5893 = vtanh.f32 %v615_v45  ;;  %v708_v58 = vrot.slane %v615_v45, 6 }
 0x9f5   :  { %v5894_v46 = vpop.eup %5893 }
 0x9f6   :  { %618 = vrot.lane.b32.xlu0 %v5894_v46, %s6056_s25 }
 0xa68   :  { %v619_v47 = vpop.permute.xlu0 %618 }
 0xa69   :  { %v6260_v36 = vmul.f32 %v619_v47, %v601_v39 }
 0xa6b   :  { %v628_v48 = vrot.slane %v6260_v36, 6 }
 0xa6d   :  { %629 = vrot.lane.b32.xlu1 %v628_v48, %s6057_s26 }
 0xadf   :  { %v630_v49 = vpop.permute.xlu1 %629 }
 0xae0   :  { %5334 = vmatmul.mubr.msk.f32.vlgmr.msra.gmra.mxu1 %vm206_vm5, %v630_v49 }
 0xae1   :  { %5348 = vmatpush3.msra.mxu1 %v6102_v2  ;;  %5355 = vmatprep.mubr.msk.f32.mxu1 %vm6055_vm1, %v6053_v1 }
 0xae2   :  { %5349 = vmatprep.subr.mxu1 %v6053_v1 }
 0xae3   :  { %5350 = vmatpush3.msra.mxu1 %v6107_v3 }
 0xae4   :  { %5351 = vmatprep.subr.mxu1 %v6053_v1 }
 0xae5   :  { %5352 = vmatpush3.msra.mxu1 %v6136_v14 }
 0xae6   :  { %5353 = vmatprep.subr.mxu1 %v6053_v1 }
 0xae7   :  { %5354 = vmatpush3.msra.mxu1 %v6160_v22 }
 0xba0   :  { %v699_v50 = vpop.f32.mrf.mxu1 }
 0xba1   :  { %v703_v51 = vadd.f32 %v699_v50, %v6197_v34 }
 0xba2   :  { %v5335_v52 = vpop.f32.mrf.mxu1 }
 0xba3   :  { %5895 = vtanh.f32 %v703_v51 }
 0xbb0   :  { %v5896_v53 = vpop.eup %5895 }
 0xbb1   :  { %712 = vrot.lane.b32.xlu0 %v5896_v53, %s6056_s25  ;;  %v705_v54 = vadd.f32 1.0, %v5896_v53 }
 0xbb3   :  { %v706_v55 = vmul.f32 0.5, %v705_v54 }
 0xbb5   :  { %v710_v59 = vmul.f32 %v708_v58, %v706_v55  ;;  %v6362_v58 = vld [vmem:[%s7310_s4 + $0x8] sm:$0xff] }
 0xc23   :  { %v713_v56 = vpop.permute.xlu0 %712 }
 0xc24   :  { %v715_v57 = vmul.f32 %v713_v56, %v706_v55  ;;  %v6348_v56 = vld [vmem:[%s7310_s4 + $0x18] sm:$0xff] }
 0xc26   :  { %717 = vrot.lane.b32.xlu1 %v715_v57, %s6057_s26  ;;  %v6355_v57 = vld [vmem:[%s7310_s4 + $0x10] sm:$0xff] }
 0xc98   :  { %v718_v60 = vpop.permute.xlu1 %717 }
 0xc99   :  { %v720_v61 = vadd.f32 %v718_v60, %v710_v59  ;;  %v6369_v59 = vld [vmem:[%s7310_s4] sm:$0xff] }
 0xc9b   :  { %5897 = vtanh.f32 %v720_v61 }
 0xca8   :  { %v5898_v62 = vpop.eup %5897 }
 0xca9   :  { %723 = vrot.lane.b32.xlu0 %v5898_v62, %s6056_s25 }
 0xd1b   :  { %v724_v63 = vpop.permute.xlu0 %723 }
 0xd1c   :  { %v726_v0 = vmul.f32 %v724_v63, %v706_v55  ;;  %v6327_v55 = vld [vmem:[%s7310_s4 + $0x30] sm:$0xff] }
 0xd1e   :  { %728 = vrot.lane.b32.xlu1 %v726_v0, %s6057_s26 }
 0xd90   :  { %v729_v4 = vpop.permute.xlu1 %728 }
 0xd91   :  { %731 = vst.msk [vmem:[#allocation2 + $0x8] sm:$0x3] %vm305_vm4, %v729_v4  ;;  %5345 = vmatmul.mubr.msk.f32.vlgmr.msra.gmra.mxu0 %vm206_vm5, %v729_v4 }
 0xd92   :  { %5359 = vmatpush3.msra.mxu0 %v6102_v2  ;;  %5366 = vmatprep.mubr.msk.f32.mxu0 %vm6055_vm1, %v6053_v1 }
 0xd93   :  { %5360 = vmatprep.subr.mxu0 %v6053_v1 }
 0xd94   :  { %5361 = vmatpush3.msra.mxu0 %v6107_v3 }
 0xd95   :  { %5362 = vmatprep.subr.mxu0 %v6053_v1 }
 0xd96   :  { %5363 = vmatpush3.msra.mxu0 %v6136_v14  ;;  %v812_v14 = vrot.slane %v720_v61, 6 }
 0xd97   :  { %5364 = vmatprep.subr.mxu0 %v6053_v1 }
 0xd98   :  { %5365 = vmatpush3.msra.mxu0 %v6160_v22 }
 0xd99   :  { %5380 = vmatprep.subr.mxu0 %v6053_v1 }
 0xe51   :  { %v800_v6 = vpop.f32.mrf.mxu0 }
 0xe52   :  { %v805_v8 = vrot.slane %v800_v6, 6 }
 0xe53   :  { %v5346_v2 = vpop.f32.mrf.mxu0 }
 0xe54   :  { %v807_v9 = vadd.f32 %v805_v8, %v6197_v34  ;;  %v50_v2 = vld [vmem:[%s7310_s4 + $0x58] sm:$0xff] }
 0xe55   :  { %5369 = vmatprep.subr.mxu1 %v50_v2 }
 0xe56   :  { %5899 = vtanh.f32 %v807_v9  ;;  %v49_v9 = vld [vmem:[%s7310_s4 + $0x50] sm:$0xff] }
 0xe63   :  { %v5900_v10 = vpop.eup %5899 }
 0xe64   :  { %816 = vrot.lane.b32.xlu0 %v5900_v10, %s6056_s25  ;;  %v809_v3 = vadd.f32 1.0, %v5900_v10 }
 0xe66   :  { %v810_v11 = vmul.f32 0.5, %v809_v3  ;;  %v48_v3 = vld [vmem:[%s7310_s4 + $0x48] sm:$0xff] }
 0xe68   :  { %v814_v16 = vmul.f32 %v812_v14, %v810_v11 }
 0xed6   :  { %v817_v12 = vpop.permute.xlu0 %816 }
 0xed7   :  { %v819_v15 = vmul.f32 %v817_v12, %v810_v11 }
 0xed9   :  { %821 = vrot.lane.b32.xlu1 %v819_v15, %s6057_s26 }
 0xf4b   :  { %v822_v22 = vpop.permute.xlu1 %821 }
 0xf4c   :  { %v824_v17 = vadd.f32 %v822_v22, %v814_v16 }
 0xf4e   :  { %5901 = vtanh.f32 %v824_v17  ;;  %v919_v37 = vrot.slane %v824_v17, 6 }
 0xf5b   :  { %v5902_v18 = vpop.eup %5901 }
 0xf5c   :  { %827 = vrot.lane.b32.xlu0 %v5902_v18, %s6056_s25  ;;  %v6412_v18 = vld [vmem:[%s7311_s1] sm:$0xff] }
 0xfce   :  { %v828_v20 = vpop.permute.xlu0 %827 }
 0xfcf   :  { %v6295_v21 = vmul.f32 %v828_v20, %v810_v11  ;;  %v47_v11 = vld [vmem:[%s7310_s4 + $0x40] sm:$0xff] }
 0xfd1   :  { %v836_v23 = vrot.slane %v6295_v21, 2 }
 0xfd3   :  { %837 = vrot.lane.b32.xlu1 %v836_v23, %s6057_s26  ;;  %v6431_v23 = vld [vmem:[%s7312_s5] sm:$0xf] }
0x1045   :  { %v838_v24 = vpop.permute.xlu1 %837 }
0x1046   :  { %5356 = vmatmul.mubr.msk.f32.vlgmr.msra.gmra.mxu1 %vm206_vm5, %v838_v24 }
0x1047   :  { %5370 = vmatpush3.msra.mxu1 %v50_v2  ;;  %v6494_v2 = vld [vmem:[%s7308_s3 + $0x58] sm:$0xff] }
0x1048   :  { %5371 = vmatprep.subr.mxu1 %v49_v9 }
0x1049   :  { %5372 = vmatpush3.msra.mxu1 %v49_v9  ;;  %v6501_v9 = vld [vmem:[%s7308_s3 + $0x50] sm:$0xff] }
0x104a   :  { %5373 = vmatprep.subr.mxu1 %v48_v3 }
0x104b   :  { %5374 = vmatpush3.msra.mxu1 %v48_v3  ;;  %v6515_v3 = vld [vmem:[%s7308_s3 + $0x40] sm:$0xff] }
0x104c   :  { %5375 = vmatprep.subr.mxu1 %v47_v11 }
0x104d   :  { %5376 = vmatpush3.msra.mxu1 %v47_v11 }
0x1106   :  { %v907_v25 = vpop.f32.mrf.mxu1 }
0x1107   :  { %v912_v26 = vrot.slane %v907_v25, 4  ;;  %v4924_v25 = vld [vmem:[%s7310_s4 + $0x60] ss:$0 sm:$0xff] }
0x1108   :  { %v5357_v27 = vpop.f32.mrf.mxu1 }
0x1109   :  { %v914_v29 = vadd.f32 %v912_v26, %v6197_v34 }
0x110b   :  { %5903 = vtanh.f32 %v914_v29 }
0x1118   :  { %v5904_v30 = vpop.eup %5903 }
0x1119   :  { %923 = vrot.lane.b32.xlu0 %v5904_v30, %s6056_s25  ;;  %v916_v31 = vadd.f32 1.0, %v5904_v30 }
0x111b   :  { %v917_v32 = vmul.f32 0.5, %v916_v31 }
0x111d   :  { %v921_v38 = vmul.f32 %v919_v37, %v917_v32 }
0x118b   :  { %v924_v33 = vpop.permute.xlu0 %923 }
0x118c   :  { %v926_v35 = vmul.f32 %v924_v33, %v917_v32 }
0x118e   :  { %928 = vrot.lane.b32.xlu1 %v926_v35, %s6057_s26 }
0x1200   :  { %v929_v39 = vpop.permute.xlu1 %928 }
0x1201   :  { %v931_v40 = vadd.f32 %v929_v39, %v921_v38  ;;  %v6059_v38 = vmov 0  }
0x1202   :  { %5850 = vset.pattern.permute.xlu0 %v6059_v38  ;;  %5849 = vset.pattern.permute.xlu1 %v6059_v38 }
0x1203   :  { %5905 = vtanh.f32 %v931_v40  ;;  %v1026_v60 = vrot.slane %v931_v40, 6 }
0x1210   :  { %v5906_v41 = vpop.eup %5905 }
0x1211   :  { %934 = vrot.lane.b32.xlu0 %v5906_v41, %s6056_s25 }
0x1283   :  { %v935_v42 = vpop.permute.xlu0 %934 }
0x1284   :  { %v937_v43 = vmul.f32 %v935_v42, %v917_v32 }
0x1286   :  { %v943_v44 = vrot.slane %v937_v43, 4 }
0x1288   :  { %944 = vrot.lane.b32.xlu1 %v943_v44, %s6057_s26 }
0x12fa   :  { %v945_v45 = vpop.permute.xlu1 %944 }
0x12fb   :  { %5367 = vmatmul.mubr.msk.f32.vlgmr.msra.gmra.mxu0 %vm206_vm5, %v945_v45 }
0x12fc   :  { %5396 = vmatprep.mubr.msk.f32.mxu0 %vm6055_vm1, %v6053_v1 }
0x13bb   :  { %v1014_v46 = vpop.f32.mrf.mxu0 }
0x13bc   :  { %v1019_v47 = vrot.slane %v1014_v46, 2 }
0x13bd   :  { %v5368_v48 = vpop.f32.mrf.mxu0 }
0x13be   :  { %v1021_v49 = vadd.f32 %v1019_v47, %v6197_v34  ;;  %v6322_v34 = vld [vmem:[%s7310_s4 + $0x38] sm:$0xff] }
0x13bf   :  { %5381 = vmatpush3.msra.mxu0 %v6322_v34 }
0x13c0   :  { %5907 = vtanh.f32 %v1021_v49  ;;  %5382 = vmatprep.subr.mxu0 %v6053_v1 }
0x13c1   :  { %5383 = vmatpush3.msra.mxu0 %v6327_v55 }
0x13c2   :  { %5384 = vmatprep.subr.mxu0 %v6053_v1 }
0x13cd   :  { %v5908_v50 = vpop.eup %5907 }
0x13ce   :  { %1030 = vrot.lane.b32.xlu0 %v5908_v50, %s6056_s25  ;;  %v1023_v51 = vadd.f32 1.0, %v5908_v50 }
0x13d0   :  { %v6310_v52 = vmul.f32 0.5, %v1023_v51 }
0x13d2   :  { %v1028_v61 = vmul.f32 %v1026_v60, %v6310_v52 }
0x1440   :  { %v1031_v53 = vpop.permute.xlu0 %1030 }
0x1441   :  { %v1033_v54 = vmul.f32 %v1031_v53, %v6310_v52 }
0x1443   :  { %1035 = vrot.lane.b32.xlu1 %v1033_v54, %s6057_s26 }
0x1447   :  { %407 = vrot.lane.b32.xlu1 %v6222_v5, %s6057_s26  ;;  %v6334_v5 = vld [vmem:[%s7310_s4 + $0x28] sm:$0xff] }
0x1448   :  { %5385 = vmatpush3.msra.mxu0 %v6334_v5 }
0x1449   :  { %5386 = vmatprep.subr.mxu0 %v6053_v1 }
0x144b   :  { %623 = vrot.lane.b32.xlu1 %v6260_v36, %s6057_s26  ;;  %v6341_v36 = vld [vmem:[%s7310_s4 + $0x20] sm:$0xff] }
0x144c   :  { %5387 = vmatpush3.msra.mxu0 %v6341_v36 }
0x144d   :  { %5388 = vmatprep.subr.mxu0 %v6053_v1 }
0x144e   :  { %5389 = vmatpush3.msra.mxu0 %v6348_v56 }
0x144f   :  { %939 = vrot.lane.b32.xlu1 %v937_v43, %s6057_s26  ;;  %5390 = vmatprep.subr.mxu0 %v6053_v1 }
0x1450   :  { %5391 = vmatpush3.msra.mxu0 %v6355_v57 }
0x1451   :  { %5392 = vmatprep.subr.mxu0 %v6053_v1 }
0x1452   :  { %5393 = vmatpush3.msra.mxu0 %v6362_v58 }
0x1453   :  { %5394 = vmatprep.subr.mxu0 %v6053_v1 }
0x1454   :  { %5395 = vmatpush3.msra.mxu0 %v6369_v59 }
0x1455   :  { %5397 = vmatmul.mubr.f32.vlgmr.msra.gmra.mxu0 %v6053_v1  ;;  %5416 = vmatprep.subr.mxu0 %v6053_v1 }
0x1456   :  { %5432 = vmatprep.mubr.msk.f32.mxu0 %vm6055_vm1, %v6053_v1 }
0x14b5   :  { %v1036_v62 = vpop.permute.xlu1 %1035 }
0x14b6   :  { %v1038_v63 = vadd.f32 %v1036_v62, %v1028_v61 }
0x14b8   :  { %5909 = vtanh.f32 %v1038_v63 }
0x14b9   :  { %v408_v0 = vpop.permute.xlu1 %407 }
0x14ba   :  { %411 = vst.msk [vmem:[#allocation2] sm:$0xc] %vm410_vm6, %v408_v0 }
0x14bd   :  { %v624_v4 = vpop.permute.xlu1 %623 }
0x14be   :  { %627 = vst.msk [vmem:[#allocation2] sm:$0xc0] %vm626_vm7, %v624_v4  ;;  %v6460_v4 = vld [vmem:[%s7313_s2] sm:$0x3] }
0x14c1   :  { %v940_v6 = vpop.permute.xlu1 %939 }
0x14c2   :  { %942 = vst.msk [vmem:[#allocation2 + $0x8] sm:$0x30] %vm518_vm8, %v940_v6  ;;  %v6060_v6 = vmov 32  }
0x14c5   :  { %v5910_v8 = vpop.eup %5909 }
0x14c6   :  { %1041 = vrot.lane.b32.xlu0 %v5910_v8, %s6056_s25  ;;  %v6489_v8 = vld [vmem:[%s7308_s3 + $0x60] sm:$0xff] }
0x14c7   :  { %5417 = vmatpush3.msra.mxu0 %v6489_v8 }
0x14c8   :  { %5418 = vmatprep.subr.mxu0 %v6053_v1 }
0x14c9   :  { %5419 = vmatpush3.msra.mxu0 %v6494_v2 }
0x14ca   :  { %515 = vrot.lane.b32.xlu0 %v6241_v28, %s6057_s26  ;;  %5420 = vmatprep.subr.mxu0 %v6053_v1 }
0x14cb   :  { %5421 = vmatpush3.msra.mxu0 %v6501_v9 }
0x14cc   :  { %5422 = vmatprep.subr.mxu0 %v6053_v1 }
0x14ce   :  { %832 = vrot.lane.b32.xlu0 %v6295_v21, %s6057_s26  ;;  %v6424_v21 = vld [vmem:[%s7311_s1 + $0x8] sm:$0xff] }
0x1515   :  { %v1332_v10 = vpop.f32.mrf.mxu0 }
0x1516   :  { %5399 = vmatprep.subr.msk.mxu1 %vm1343_vm9, %v1332_v10 }
0x1517   :  { %v5398_v28 = vpop.f32.mrf.mxu0 }
0x1518   :  { %v6522_v28 = vld [vmem:[%s7308_s3 + $0x38] sm:$0xff] }
0x1538   :  { %v1042_v12 = vpop.permute.xlu0 %1041 }
0x1539   :  { %v1044_v15 = vmul.f32 %v1042_v12, %v6310_v52 }
0x153b   :  { %1046 = vrot.lane.b32.xlu0 %v1044_v15, %s6057_s26  ;;  %v6531_v15 = vld [vmem:[%s7308_s3 + $0x30] sm:$0xff] }
0x153c   :  { %v516_v14 = vpop.permute.xlu0 %515 }
0x153d   :  { %519 = vst.msk [vmem:[#allocation2] sm:$0x30] %vm518_vm8, %v516_v14  ;;  %v6538_v14 = vld [vmem:[%s7308_s3 + $0x28] sm:$0xff] }
0x1540   :  { %v833_v16 = vpop.permute.xlu0 %832 }
0x1541   :  { %835 = vst.msk [vmem:[#allocation2 + $0x8] sm:$0xc] %vm410_vm6, %v833_v16 }
0x1544   :  { %v6404_v22 = vld [vmem:[#allocation2] sm:$0xff] }
0x1545   :  { %5377 = vmatprep.mubr.msk.f32.mxu1 %vm206_vm5, %v6404_v22 }
0x15ad   :  { %v1047_v17 = vpop.permute.xlu0 %1046 }
0x15ae   :  { %1049 = vst.msk [vmem:[#allocation2 + $0x8] sm:$0xc0] %vm626_vm7, %v1047_v17  ;;  %v6061_v17 = vmov 1  }
0x15b5   :  { %v6414_v20 = vld [vmem:[#allocation2 + $0x8] sm:$0xff] }
0x15b6   :  { %5378 = vmatmul.mubr.msk.f32.vlgmr.msra.gmra.mxu1 %vm206_vm5, %v6414_v20 }
0x15b7   :  { %5400 = vmatpush3.msk.msra.mxu1 %vm1343_vm9, %v1332_v10  ;;  %5401 = vmatprep.mubr.msk.f32.mxu1 %vm1336_vm10, %v6412_v18  ;;  %v6508_v10 = vld [vmem:[%s7308_s3 + $0x48] sm:$0xff] }
0x15b8   :  { %5404 = vmatprep.subr.msk.mxu1 %vm124_vm0, %v6431_v23  ;;  %5423 = vmatpush3.msra.mxu0 %v6508_v10 }
0x15b9   :  { %5424 = vmatprep.subr.mxu0 %v6053_v1 }
0x15ba   :  { %5402 = vmatmul.mubr.msk.f32.vlgmr.msra.gmra.mxu1 %vm1336_vm10, %v6424_v21  ;;  %5425 = vmatpush3.msra.mxu0 %v6515_v3 }
0x15bb   :  { %5405 = vmatpush3.msk.msra.mxu1 %vm124_vm0, %v6431_v23  ;;  %5426 = vmatprep.subr.mxu0 %v6053_v1 }
0x15bc   :  { %5409 = vmatprep.subr.mxu1 %v6053_v1  ;;  %5427 = vmatpush3.msra.mxu0 %v6522_v28 }
0x15bd   :  { %5428 = vmatprep.subr.mxu0 %v6053_v1 }
0x15be   :  { %5429 = vmatpush3.msra.mxu0 %v6531_v15 }
0x15bf   :  { %5430 = vmatprep.subr.mxu0 %v6053_v1 }
0x15c0   :  { %5431 = vmatpush3.msra.mxu0 %v6538_v14 }
0x1676   :  { %v5379_v24 = vpop.f32.mrf.mxu1 }
0x1677   :  { %v6441_v27 = vadd.f32 %v5379_v24, %v4924_v25 }
0x1678   :  { %v1128_v26 = vpop.f32.mrf.mxu1 }
0x1679   :  { %v6443_v30 = vadd.f32 %v4924_v25, %v1128_v26 }
0x167a   :  { %v5403_v29 = vpop.f32.mrf.mxu1 }
0x167b   :  { %v1423_v31 = vadd.f32 %v5403_v29, %v6441_v27  ;;  %v6062_v29 = vmov 269488144  }
0x167c   :  { %v1413_v32 = vpop.f32.mrf.mxu1 }
0x167d   :  { %v1422_v33 = vadd.f32 %v1413_v32, %v6443_v30 }
0x167f   :  { %5911 = vtanh.f32 %v1422_v33 }
0x1680   :  { %5913 = vtanh.f32 %v1423_v31  ;;  %v1142_v31 = vunpack.c.l.s4 %v6062_v29 }
0x1682   :  { %v1143_v32 = vunpack.c.0.s8 %v1142_v31 }
0x1684   :  { %v6549_v33 = vsub.s32 %v1143_v32, %v6131_v13 }
0x168c   :  { %v5912_v35 = vpop.eup %5911 }
0x168d   :  { %v5914_v37 = vpop.eup %5913  ;;  %5406 = vmatprep.mubr.msk.f32.mxu1 %vm119_vm2, %v5912_v35 }
0x168e   :  { %5407 = vmatmul.mubr.msk.f32.vlgmr.msra.gmra.mxu1 %vm119_vm2, %v5914_v37 }
0x168f   :  { %5413 = vmatprep.mubr.msk.f32.mxu1 %vm6055_vm1, %v6053_v1 }
0x174e   :  { %v5408_v39 = vpop.f32.mrf.mxu1 }
0x174f   :  { %v1512_v41 = vsel %vm1510_vm11, %v5408_v39, -inf }
0x1750   :  { %v1501_v40 = vpop.f32.mrf.mxu1 }
0x1751   :  { %v1511_v42 = vsel %vm1510_vm11, %v1501_v40, -inf }
0x1752   :  { %v1513_v43 = vmax.f32 %v1511_v42, %v1512_v41  ;;  %v6565_v41 = vld [vmem:[%s7308_s3 + $0x69] ss:$0 sm:$0xff] }
0x1754   :  { %v1514_v44 = vrot.slane %v1513_v43, 4 }
0x1756   :  { %v1515_v45 = vmax.f32 %v1513_v43, %v1514_v44 }
0x1758   :  { %v1516_v46 = vrot.slane %v1515_v45, 2 }
0x175a   :  { %v1517_v47 = vmax.f32 %v1515_v45, %v1516_v46 }
0x175c   :  { %v1518_v48 = vrot.slane %v1517_v47, 1 }
0x175e   :  { %v1519_v49 = vmax.f32 %v1517_v47, %v1518_v48 }
0x1760   :  { %v1520_v50 = vsub.f32 %v1501_v40, %v1519_v49  ;;  %v1521_v51 = vsub.f32 %v5408_v39, %v1519_v49 }
0x1762   :  { %v1522_v52 = vmul.f32 1.442695, %v1520_v50  ;;  %v1524_v53 = vmul.f32 1.442695, %v1521_v51 }
0x1764   :  { %5915 = vpow2.f32 %v1522_v52 }
0x1765   :  { %5917 = vpow2.f32 %v1524_v53 }
0x1771   :  { %v5916_v54 = vpop.eup %5915 }
0x1772   :  { %v5918_v60 = vpop.eup %5917  ;;  %1530 = vperm.xlu0 %5850, %v5916_v54  }
0x1773   :  { %1535 = vperm.xlu1 %5849, %v5918_v60  }
0x1777   :  { %5851 = vset.pattern.permute.xlu1 %v6060_v6 }
0x17ed   :  { %v1531_v62 = vpop.permute.xlu0 %1530 }
0x17ee   :  { %v1536_v61 = vpop.permute.xlu1 %1535  ;;  %v1538_v0 = vmul.f32 %v1531_v62, %v6404_v22 }
0x17ef   :  { %v1539_v63 = vmul.f32 %v1536_v61, %v6414_v20 }
0x17f1   :  { %5410 = vmatpush3.msra.mxu1 %v1539_v63 }
0x17f2   :  { %5411 = vmatprep.subr.mxu1 %v6053_v1 }
0x17f3   :  { %5412 = vmatpush3.msra.mxu1 %v1538_v0 }
0x17f4   :  { %5414 = vmatmul.mubr.msk.f32.vlgmr.msra.gmra.mxu1 %vm1540_vm12, %v6460_v4  ;;  %5435 = vmatprep.subr.mxu1 %v6053_v1 }
0x17f5   :  { %5436 = vmatpush3.msra.mxu1 %v6322_v34  ;;  %5451 = vmatprep.mubr.msk.f32.mxu1 %vm6055_vm1, %v6053_v1 }
0x17f6   :  { %5437 = vmatprep.subr.mxu1 %v6053_v1 }
0x17f7   :  { %5438 = vmatpush3.msra.mxu1 %v6327_v55 }
0x17f8   :  { %5439 = vmatprep.subr.mxu1 %v6053_v1 }
0x17f9   :  { %5440 = vmatpush3.msra.mxu1 %v6334_v5 }
0x17fa   :  { %5441 = vmatprep.subr.mxu1 %v6053_v1 }
0x17fb   :  { %5442 = vmatpush3.msra.mxu1 %v6341_v36 }
0x17fc   :  { %5443 = vmatprep.subr.mxu1 %v6053_v1 }
0x17fd   :  { %5444 = vmatpush3.msra.mxu1 %v6348_v56 }
0x17fe   :  { %5445 = vmatprep.subr.mxu1 %v6053_v1 }
0x17ff   :  { %5446 = vmatpush3.msra.mxu1 %v6355_v57 }
0x1800   :  { %5447 = vmatprep.subr.mxu1 %v6053_v1 }
0x1801   :  { %5448 = vmatpush3.msra.mxu1 %v6362_v58 }
0x1802   :  { %5449 = vmatprep.subr.mxu1 %v6053_v1 }
0x1803   :  { %5450 = vmatpush3.msra.mxu1 %v6369_v59 }
0x1804   :  { %5459 = vmatprep.subr.msk.mxu1 %vm124_vm0, %v6431_v23 }
0x18b4   :  { %v1610_v11 = vpop.f32.mrf.mxu1 }
0x18b5   :  { %5919 = vrcp.f32 %v1610_v11 }
0x18b6   :  { %v5415_v12 = vpop.f32.mrf.mxu1 }
0x18c2   :  { %v5920_v16 = vpop.eup %5919 }
0x18c3   :  { %1617 = vperm.xlu1 %5851, %v5920_v16  }
0x18c7   :  { %5852 = vset.pattern.permute.xlu1 %v6061_v17 }
0x18c8   :  { %1138 = vperm.xlu1 %5852, %v6117_v7   ;;  %v6554_v7 = vld [vmem:[%s7308_s3 + $0x6a] ss:$0 sm:$0xff] }
0x18c9   :  { %v6559_v39 = vrot.slane %v6554_v7, %v6152_v19 }
0x18cc   :  { %5853 = vset.pattern.permute.xlu1 %v6059_v38 }
0x193e   :  { %v1618_v24 = vpop.permute.xlu1 %1617 }
0x193f   :  { %v1620_v25 = vmul.f32 %v1618_v24, %v1610_v11 }
0x1941   :  { %v1621_v26 = vsel %vm206_vm5, %v1620_v25, 0.0 }
0x1942   :  { %5433 = vmatmul.mubr.msk.f32.vlgmr.msra.gmra.mxu0 %vm1263_vm13, %v1621_v26 }
0x1943   :  { %5456 = vmatprep.mubr.msk.f32.mxu0 %vm1336_vm10, %v6412_v18  ;;  %v1139_v35 = vpop.permute.xlu1 %1138 }
0x1944   :  { %v1147_v37 = vrot.slane %v1139_v35, %v6549_v33 }
0x1946   :  { %v1251_v40 = vmul.f32 %v6559_v39, %v1147_v37 }
0x1a02   :  { %v1691_v13 = vpop.f32.mrf.mxu0 }
0x1a03   :  { %v1692_v42 = vadd.f32 %v1691_v13, %v1251_v40 }
0x1a04   :  { %v5434_v43 = vpop.f32.mrf.mxu0 }
0x1a05   :  { %v1695_v44 = vadd.f32 %v6565_v41, %v1692_v42 }
0x1a07   :  { %5921 = vtanh.f32 %v1695_v44 }
0x1a14   :  { %v5922_v45 = vpop.eup %5921 }
0x1a15   :  { %1701 = vrot.lane.b32.xlu0 %v5922_v45, %s6056_s25  ;;  %v1697_v46 = vadd.f32 1.0, %v5922_v45 }
0x1a17   :  { %v1698_v47 = vmul.f32 0.5, %v1697_v46 }
0x1a19   :  { %v1699_v50 = vmul.f32 0.0, %v1698_v47 }
0x1a87   :  { %v1702_v48 = vpop.permute.xlu0 %1701 }
0x1a88   :  { %v1704_v49 = vmul.f32 %v1702_v48, %v1698_v47 }
0x1a8a   :  { %1706 = vrot.lane.b32.xlu1 %v1704_v49, %s6057_s26 }
0x1afc   :  { %v1707_v51 = vpop.permute.xlu1 %1706 }
0x1afd   :  { %v6570_v52 = vadd.f32 %v1707_v51, %v1699_v50 }
0x1aff   :  { %5923 = vtanh.f32 %v6570_v52 }
0x1b0c   :  { %v5924_v53 = vpop.eup %5923 }
0x1b0d   :  { %1712 = vrot.lane.b32.xlu0 %v5924_v53, %s6056_s25  ;;  %v6023_v53 = vld [vmem:[%s7309_s0 + $0x2] sm:$0x3] }
0x1b7f   :  { %v1713_v54 = vpop.permute.xlu0 %1712 }
0x1b80   :  { %v1715_v60 = vmul.f32 %v1713_v54, %v1698_v47 }
0x1b82   :  { %1717 = vrot.lane.b32.xlu1 %v1715_v60, %s6057_s26 }
0x1bf4   :  { %v1718_v61 = vpop.permute.xlu1 %1717 }
0x1bf5   :  { %v1720_v62 = vsel %vm206_vm5, %v1718_v61, %v6570_v52 }
0x1bf6   :  { %5452 = vmatmul.mubr.msk.f32.vlgmr.msra.gmra.mxu1 %vm1263_vm13, %v1720_v62 }
0x1bf7   :  { %5460 = vmatpush3.msk.msra.mxu1 %vm124_vm0, %v6431_v23 }
0x1bf8   :  { %5471 = vmatprep.subr.mxu1 %v6053_v1 }
0x1cb6   :  { %v1790_v63 = vpop.f32.mrf.mxu1 }
0x1cb7   :  { %5454 = vmatprep.subr.msk.mxu0 %vm1343_vm9, %v1790_v63 }
0x1cb8   :  { %v5453_v0 = vpop.f32.mrf.mxu1  ;;  %5455 = vmatpush3.msk.msra.mxu0 %vm1343_vm9, %v1790_v63 }
0x1cb9   :  { %5457 = vmatmul.mubr.msk.f32.vlgmr.msra.gmra.mxu0 %vm1336_vm10, %v6424_v21  ;;  %5464 = vmatprep.subr.mxu0 %v6053_v1 }
0x1cba   :  { %5468 = vmatprep.mubr.msk.f32.mxu0 %vm6055_vm1, %v6053_v1 }
0x1d79   :  { %v5458_v11 = vpop.f32.mrf.mxu0 }
0x1d7a   :  { %v1873_v12 = vadd.f32 %v5458_v11, %v6441_v27 }
0x1d7b   :  { %v1863_v16 = vpop.f32.mrf.mxu0 }
0x1d7c   :  { %v1872_v24 = vadd.f32 %v1863_v16, %v6443_v30 }
0x1d7e   :  { %5925 = vtanh.f32 %v1872_v24 }
0x1d7f   :  { %5927 = vtanh.f32 %v1873_v12 }
0x1d8b   :  { %v5926_v25 = vpop.eup %5925 }
0x1d8c   :  { %v5928_v26 = vpop.eup %5927  ;;  %5461 = vmatprep.mubr.msk.f32.mxu1 %vm119_vm2, %v5926_v25 }
0x1d8d   :  { %5462 = vmatmul.mubr.msk.f32.vlgmr.msra.gmra.mxu1 %vm119_vm2, %v5928_v26 }
0x1d8e   :  { %5472 = vmatpush3.msra.mxu1 %v6489_v8  ;;  %5487 = vmatprep.mubr.msk.f32.mxu1 %vm6055_vm1, %v6053_v1 }
0x1d8f   :  { %5473 = vmatprep.subr.mxu1 %v6053_v1 }
0x1d90   :  { %5474 = vmatpush3.msra.mxu1 %v6494_v2 }
0x1d91   :  { %5475 = vmatprep.subr.mxu1 %v6053_v1 }
0x1d92   :  { %5476 = vmatpush3.msra.mxu1 %v6501_v9 }
0x1d93   :  { %5477 = vmatprep.subr.mxu1 %v6053_v1 }
0x1d94   :  { %5478 = vmatpush3.msra.mxu1 %v6508_v10 }
0x1d95   :  { %5479 = vmatprep.subr.mxu1 %v6053_v1 }
0x1d96   :  { %5480 = vmatpush3.msra.mxu1 %v6515_v3 }
0x1d97   :  { %5481 = vmatprep.subr.mxu1 %v6053_v1 }
0x1d98   :  { %5482 = vmatpush3.msra.mxu1 %v6522_v28 }
0x1d99   :  { %5483 = vmatprep.subr.mxu1 %v6053_v1 }
0x1d9a   :  { %5484 = vmatpush3.msra.mxu1 %v6531_v15 }
0x1d9b   :  { %5485 = vmatprep.subr.mxu1 %v6053_v1 }
0x1d9c   :  { %5486 = vmatpush3.msra.mxu1 %v6538_v14 }
0x1e4d   :  { %v5463_v29 = vpop.f32.mrf.mxu1 }
0x1e4e   :  { %v1958_v32 = vsel %vm1510_vm11, %v5463_v29, -inf }
0x1e4f   :  { %v1948_v31 = vpop.f32.mrf.mxu1 }
0x1e50   :  { %v1957_v35 = vsel %vm1510_vm11, %v1948_v31, -inf }
0x1e51   :  { %v1959_v37 = vmax.f32 %v1957_v35, %v1958_v32 }
0x1e53   :  { %v1960_v40 = vrot.slane %v1959_v37, 4 }
0x1e55   :  { %v1961_v13 = vmax.f32 %v1959_v37, %v1960_v40 }
0x1e57   :  { %v1962_v42 = vrot.slane %v1961_v13, 2 }
0x1e59   :  { %v1963_v43 = vmax.f32 %v1961_v13, %v1962_v42 }
0x1e5b   :  { %v1964_v44 = vrot.slane %v1963_v43, 1 }
0x1e5d   :  { %v1965_v45 = vmax.f32 %v1963_v43, %v1964_v44 }
0x1e5f   :  { %v1966_v46 = vsub.f32 %v1948_v31, %v1965_v45  ;;  %v1967_v47 = vsub.f32 %v5463_v29, %v1965_v45  ;;  %v6651_v31 = vcombine.high %v6559_v39, %v6559_v39 }
0x1e61   :  { %v1968_v48 = vmul.f32 1.442695, %v1966_v46  ;;  %v1970_v49 = vmul.f32 1.442695, %v1967_v47 }
0x1e63   :  { %5929 = vpow2.f32 %v1968_v48 }
0x1e64   :  { %5931 = vpow2.f32 %v1970_v49 }
0x1e70   :  { %v5930_v50 = vpop.eup %5929 }
0x1e71   :  { %v5932_v51 = vpop.eup %5931  ;;  %1974 = vperm.xlu1 %5853, %v5930_v50  }
0x1e72   :  { %1979 = vperm.xlu0 %5850, %v5932_v51  }
0x1e75   :  { %2061 = vrot.lane.b32.xlu1 %v1715_v60, %s6056_s25 }
0x1e76   :  { %5854 = vset.pattern.permute.xlu0 %v6060_v6  ;;  %5855 = vset.pattern.permute.xlu1 %v6061_v17 }
0x1e79   :  { %1149 = vperm.xlu1 %5855, %v6023_v53  }
0x1e7d   :  { %5857 = vset.pattern.permute.xlu1 %v6059_v38 }
0x1eec   :  { %v1975_v61 = vpop.permute.xlu1 %1974 }
0x1eed   :  { %v1980_v54 = vpop.permute.xlu0 %1979  ;;  %v1982_v63 = vmul.f32 %v1975_v61, %v6404_v22 }
0x1eee   :  { %v1983_v62 = vmul.f32 %v1980_v54, %v6414_v20 }
0x1ef0   :  { %5465 = vmatpush3.msra.mxu0 %v1983_v62  ;;  %v2062_v24 = vpop.permute.xlu1 %2061 }
0x1ef1   :  { %5466 = vmatprep.subr.mxu0 %v6053_v1 }
0x1ef2   :  { %5467 = vmatpush3.msra.mxu0 %v1982_v63 }
0x1ef3   :  { %5469 = vmatmul.mubr.msk.f32.vlgmr.msra.gmra.mxu0 %vm1540_vm12, %v6460_v4  ;;  %5490 = vmatprep.subr.mxu0 %v6053_v1 }
0x1ef4   :  { %5491 = vmatpush3.msra.mxu0 %v6322_v34  ;;  %5506 = vmatprep.mubr.msk.f32.mxu0 %vm6055_vm1, %v6053_v1  ;;  %v1150_v26 = vpop.permute.xlu1 %1149 }
0x1ef5   :  { %5492 = vmatprep.subr.mxu0 %v6053_v1  ;;  %v1158_v29 = vrot.slane %v1150_v26, %v6549_v33 }
0x1ef6   :  { %5493 = vmatpush3.msra.mxu0 %v6327_v55 }
0x1ef7   :  { %5494 = vmatprep.subr.mxu0 %v6053_v1  ;;  %v1252_v32 = vmul.f32 %v6651_v31, %v1158_v29 }
0x1ef8   :  { %5495 = vmatpush3.msra.mxu0 %v6334_v5 }
0x1ef9   :  { %5496 = vmatprep.subr.mxu0 %v6053_v1 }
0x1efa   :  { %5497 = vmatpush3.msra.mxu0 %v6341_v36 }
0x1efb   :  { %5498 = vmatprep.subr.mxu0 %v6053_v1 }
0x1efc   :  { %5499 = vmatpush3.msra.mxu0 %v6348_v56 }
0x1efd   :  { %5500 = vmatprep.subr.mxu0 %v6053_v1 }
0x1efe   :  { %5501 = vmatpush3.msra.mxu0 %v6355_v57 }
0x1eff   :  { %5502 = vmatprep.subr.mxu0 %v6053_v1 }
0x1f00   :  { %5503 = vmatpush3.msra.mxu0 %v6362_v58 }
0x1f01   :  { %5504 = vmatprep.subr.mxu0 %v6053_v1 }
0x1f02   :  { %5505 = vmatpush3.msra.mxu0 %v6369_v59 }
0x1f03   :  { %5514 = vmatprep.subr.msk.mxu0 %vm124_vm0, %v6431_v23 }
0x1fb3   :  { %v2050_v60 = vpop.f32.mrf.mxu0 }
0x1fb4   :  { %5933 = vrcp.f32 %v2050_v60 }
0x1fb5   :  { %v5470_v0 = vpop.f32.mrf.mxu0 }
0x1fc1   :  { %v5934_v11 = vpop.eup %5933 }
0x1fc2   :  { %2057 = vperm.xlu0 %5854, %v5934_v11  }
0x1fc6   :  { %5856 = vset.pattern.permute.xlu0 %v6059_v38 }
0x203d   :  { %v2058_v12 = vpop.permute.xlu0 %2057 }
0x203e   :  { %v2060_v16 = vmul.f32 %v2058_v12, %v2050_v60 }
0x2040   :  { %v2064_v25 = vsel %vm206_vm5, %v2060_v16, %v2062_v24 }
0x2041   :  { %5488 = vmatmul.mubr.msk.f32.vlgmr.msra.gmra.mxu1 %vm1263_vm13, %v2064_v25 }
0x2042   :  { %5511 = vmatprep.mubr.msk.f32.mxu1 %vm1336_vm10, %v6412_v18 }
0x2101   :  { %v2134_v35 = vpop.f32.mrf.mxu1 }
0x2102   :  { %v2135_v37 = vadd.f32 %v2134_v35, %v1252_v32 }
0x2103   :  { %v5489_v40 = vpop.f32.mrf.mxu1 }
0x2104   :  { %v2138_v13 = vadd.f32 %v6565_v41, %v2135_v37 }
0x2106   :  { %5935 = vtanh.f32 %v2138_v13 }
0x2113   :  { %v5936_v42 = vpop.eup %5935 }
0x2114   :  { %2144 = vrot.lane.b32.xlu0 %v5936_v42, %s6056_s25  ;;  %v2140_v43 = vadd.f32 1.0, %v5936_v42 }
0x2116   :  { %v2141_v44 = vmul.f32 0.5, %v2140_v43 }
0x2118   :  { %v2142_v47 = vmul.f32 %v2141_v44, %v6570_v52 }
0x2186   :  { %v2145_v45 = vpop.permute.xlu0 %2144 }
0x2187   :  { %v2147_v46 = vmul.f32 %v2145_v45, %v2141_v44 }
0x2189   :  { %2149 = vrot.lane.b32.xlu1 %v2147_v46, %s6057_s26 }
0x21fb   :  { %v2150_v48 = vpop.permute.xlu1 %2149 }
0x21fc   :  { %v6658_v49 = vadd.f32 %v2150_v48, %v2142_v47 }
0x21fe   :  { %5937 = vtanh.f32 %v6658_v49 }
0x220b   :  { %v5938_v50 = vpop.eup %5937 }
0x220c   :  { %2155 = vrot.lane.b32.xlu0 %v5938_v50, %s6056_s25 }
0x227e   :  { %v2156_v51 = vpop.permute.xlu0 %2155 }
0x227f   :  { %v2158_v53 = vmul.f32 %v2156_v51, %v2141_v44 }
0x2281   :  { %2160 = vrot.lane.b32.xlu1 %v2158_v53, %s6057_s26 }
0x22f3   :  { %v2161_v54 = vpop.permute.xlu1 %2160 }
0x22f4   :  { %v2163_v61 = vsel %vm206_vm5, %v2161_v54, %v6658_v49 }
0x22f5   :  { %5507 = vmatmul.mubr.msk.f32.vlgmr.msra.gmra.mxu0 %vm1263_vm13, %v2163_v61 }
0x22f6   :  { %5515 = vmatpush3.msk.msra.mxu0 %vm124_vm0, %v6431_v23 }
0x22f7   :  { %5526 = vmatprep.subr.mxu0 %v6053_v1 }
0x23b5   :  { %v2233_v52 = vpop.f32.mrf.mxu0 }
0x23b6   :  { %5509 = vmatprep.subr.msk.mxu1 %vm1343_vm9, %v2233_v52 }
0x23b7   :  { %v5508_v62 = vpop.f32.mrf.mxu0  ;;  %5510 = vmatpush3.msk.msra.mxu1 %vm1343_vm9, %v2233_v52 }
0x23b8   :  { %5512 = vmatmul.mubr.msk.f32.vlgmr.msra.gmra.mxu1 %vm1336_vm10, %v6424_v21  ;;  %5519 = vmatprep.subr.mxu1 %v6053_v1 }
0x23b9   :  { %5523 = vmatprep.mubr.msk.f32.mxu1 %vm6055_vm1, %v6053_v1 }
0x2478   :  { %v5513_v63 = vpop.f32.mrf.mxu1 }
0x2479   :  { %v2316_v60 = vadd.f32 %v5513_v63, %v6441_v27 }
0x247a   :  { %v2306_v0 = vpop.f32.mrf.mxu1 }
0x247b   :  { %v2315_v11 = vadd.f32 %v2306_v0, %v6443_v30 }
0x247d   :  { %5939 = vtanh.f32 %v2315_v11 }
0x247e   :  { %5941 = vtanh.f32 %v2316_v60 }
0x248a   :  { %v5940_v12 = vpop.eup %5939 }
0x248b   :  { %v5942_v16 = vpop.eup %5941  ;;  %5516 = vmatprep.mubr.msk.f32.mxu0 %vm119_vm2, %v5940_v12 }
0x248c   :  { %5517 = vmatmul.mubr.msk.f32.vlgmr.msra.gmra.mxu0 %vm119_vm2, %v5942_v16 }
0x248d   :  { %5527 = vmatpush3.msra.mxu0 %v6489_v8  ;;  %5542 = vmatprep.mubr.msk.f32.mxu0 %vm6055_vm1, %v6053_v1 }
0x248e   :  { %5528 = vmatprep.subr.mxu0 %v6053_v1 }
0x248f   :  { %5529 = vmatpush3.msra.mxu0 %v6494_v2 }
0x2490   :  { %5530 = vmatprep.subr.mxu0 %v6053_v1 }
0x2491   :  { %5531 = vmatpush3.msra.mxu0 %v6501_v9 }
0x2492   :  { %5532 = vmatprep.subr.mxu0 %v6053_v1 }
0x2493   :  { %5533 = vmatpush3.msra.mxu0 %v6508_v10 }
0x2494   :  { %5534 = vmatprep.subr.mxu0 %v6053_v1 }
0x2495   :  { %5535 = vmatpush3.msra.mxu0 %v6515_v3 }
0x2496   :  { %5536 = vmatprep.subr.mxu0 %v6053_v1 }
0x2497   :  { %5537 = vmatpush3.msra.mxu0 %v6522_v28 }
0x2498   :  { %5538 = vmatprep.subr.mxu0 %v6053_v1 }
0x2499   :  { %5539 = vmatpush3.msra.mxu0 %v6531_v15 }
0x249a   :  { %5540 = vmatprep.subr.mxu0 %v6053_v1 }
0x249b   :  { %5541 = vmatpush3.msra.mxu0 %v6538_v14 }
0x254c   :  { %v5518_v24 = vpop.f32.mrf.mxu0 }
0x254d   :  { %v2401_v26 = vsel %vm1510_vm11, %v5518_v24, -inf }
0x254e   :  { %v2391_v25 = vpop.f32.mrf.mxu0 }
0x254f   :  { %v2400_v29 = vsel %vm1510_vm11, %v2391_v25, -inf }
0x2550   :  { %v2402_v32 = vmax.f32 %v2400_v29, %v2401_v26 }
0x2552   :  { %v2403_v35 = vrot.slane %v2402_v32, 4 }
0x2554   :  { %v2404_v37 = vmax.f32 %v2402_v32, %v2403_v35 }
0x2556   :  { %v2405_v40 = vrot.slane %v2404_v37, 2 }
0x2558   :  { %v2406_v13 = vmax.f32 %v2404_v37, %v2405_v40 }
0x255a   :  { %v2407_v42 = vrot.slane %v2406_v13, 1 }
0x255c   :  { %v2408_v43 = vmax.f32 %v2406_v13, %v2407_v42 }
0x255e   :  { %v2409_v44 = vsub.f32 %v2391_v25, %v2408_v43  ;;  %v2410_v45 = vsub.f32 %v5518_v24, %v2408_v43 }
0x2560   :  { %v2411_v46 = vmul.f32 1.442695, %v2409_v44  ;;  %v2413_v47 = vmul.f32 1.442695, %v2410_v45 }
0x2562   :  { %5943 = vpow2.f32 %v2411_v46 }
0x2563   :  { %5945 = vpow2.f32 %v2413_v47 }
0x256f   :  { %v5944_v48 = vpop.eup %5943 }
0x2570   :  { %v5946_v50 = vpop.eup %5945  ;;  %2417 = vperm.xlu1 %5857, %v5944_v48  }
0x2571   :  { %2422 = vperm.xlu0 %5856, %v5946_v50  }
0x2574   :  { %5858 = vset.pattern.permute.xlu1 %v6060_v6 }
0x2575   :  { %2504 = vrot.lane.b32.xlu0 %v2158_v53, %s6056_s25  ;;  %v1230_v53 = vcombine.high %v6554_v7, %v6554_v7 }
0x2577   :  { %v6739_v60 = vrot.slane %v1230_v53, %v6152_v19 }
0x25eb   :  { %v2418_v54 = vpop.permute.xlu1 %2417 }
0x25ec   :  { %v2423_v51 = vpop.permute.xlu0 %2422  ;;  %v2425_v52 = vmul.f32 %v2418_v54, %v6404_v22 }
0x25ed   :  { %v2426_v61 = vmul.f32 %v2423_v51, %v6414_v20 }
0x25ef   :  { %5520 = vmatpush3.msra.mxu1 %v2426_v61 }
0x25f0   :  { %5521 = vmatprep.subr.mxu1 %v6053_v1 }
0x25f1   :  { %5522 = vmatpush3.msra.mxu1 %v2425_v52 }
0x25f2   :  { %5524 = vmatmul.mubr.msk.f32.vlgmr.msra.gmra.mxu1 %vm1540_vm12, %v6460_v4  ;;  %5545 = vmatprep.subr.mxu1 %v6053_v1 }
0x25f3   :  { %5546 = vmatpush3.msra.mxu1 %v6322_v34  ;;  %5561 = vmatprep.mubr.msk.f32.mxu1 %vm6055_vm1, %v6053_v1 }
0x25f4   :  { %5547 = vmatprep.subr.mxu1 %v6053_v1 }
0x25f5   :  { %5548 = vmatpush3.msra.mxu1 %v6327_v55 }
0x25f6   :  { %5549 = vmatprep.subr.mxu1 %v6053_v1 }
0x25f7   :  { %5550 = vmatpush3.msra.mxu1 %v6334_v5 }
0x25f8   :  { %5551 = vmatprep.subr.mxu1 %v6053_v1 }
0x25f9   :  { %5552 = vmatpush3.msra.mxu1 %v6341_v36  ;;  %v6024_v36 = vld [vmem:[%s7309_s0 + $0x4] sm:$0x3] }
0x25fa   :  { %5553 = vmatprep.subr.mxu1 %v6053_v1 }
0x25fb   :  { %5554 = vmatpush3.msra.mxu1 %v6348_v56 }
0x25fc   :  { %5555 = vmatprep.subr.mxu1 %v6053_v1 }
0x25fd   :  { %5556 = vmatpush3.msra.mxu1 %v6355_v57 }
0x25fe   :  { %5557 = vmatprep.subr.mxu1 %v6053_v1 }
0x25ff   :  { %5558 = vmatpush3.msra.mxu1 %v6362_v58  ;;  %v2505_v58 = vpop.permute.xlu0 %2504 }
0x2600   :  { %5559 = vmatprep.subr.mxu1 %v6053_v1 }
0x2601   :  { %5560 = vmatpush3.msra.mxu1 %v6369_v59 }
0x2602   :  { %5569 = vmatprep.subr.msk.mxu1 %vm124_vm0, %v6431_v23 }
0x26b2   :  { %v2493_v34 = vpop.f32.mrf.mxu1 }
0x26b3   :  { %5947 = vrcp.f32 %v2493_v34 }
0x26b4   :  { %v5525_v55 = vpop.f32.mrf.mxu1 }
0x26c0   :  { %v5948_v5 = vpop.eup %5947 }
0x26c1   :  { %2500 = vperm.xlu1 %5858, %v5948_v5  }
0x26c5   :  { %5859 = vset.pattern.permute.xlu1 %v6061_v17 }
0x26c6   :  { %1160 = vperm.xlu1 %5859, %v6024_v36  }
0x26ca   :  { %5860 = vset.pattern.permute.xlu1 %v6059_v38 }
0x273c   :  { %v2501_v56 = vpop.permute.xlu1 %2500 }
0x273d   :  { %v2503_v57 = vmul.f32 %v2501_v56, %v2493_v34 }
0x273f   :  { %v2507_v59 = vsel %vm206_vm5, %v2503_v57, %v2505_v58 }
0x2740   :  { %5543 = vmatmul.mubr.msk.f32.vlgmr.msra.gmra.mxu0 %vm1263_vm13, %v2507_v59 }
0x2741   :  { %5566 = vmatprep.mubr.msk.f32.mxu0 %vm1336_vm10, %v6412_v18  ;;  %v1161_v62 = vpop.permute.xlu1 %1160 }
0x2742   :  { %v1169_v63 = vrot.slane %v1161_v62, %v6549_v33 }
0x2744   :  { %v1253_v0 = vmul.f32 %v6739_v60, %v1169_v63 }
0x2800   :  { %v2577_v11 = vpop.f32.mrf.mxu0 }
0x2801   :  { %v2578_v12 = vadd.f32 %v2577_v11, %v1253_v0 }
0x2802   :  { %v5544_v16 = vpop.f32.mrf.mxu0 }
0x2803   :  { %v2581_v24 = vadd.f32 %v6565_v41, %v2578_v12  ;;  %v6025_v16 = vld [vmem:[%s7309_s0 + $0x6] sm:$0x3] }
0x2805   :  { %5949 = vtanh.f32 %v2581_v24 }
0x2812   :  { %v5950_v25 = vpop.eup %5949 }
0x2813   :  { %2587 = vrot.lane.b32.xlu0 %v5950_v25, %s6056_s25  ;;  %v2583_v26 = vadd.f32 1.0, %v5950_v25 }
0x2815   :  { %v2584_v29 = vmul.f32 0.5, %v2583_v26 }
0x2817   :  { %v2585_v19 = vmul.f32 %v2584_v29, %v6658_v49 }
0x2885   :  { %v2588_v7 = vpop.permute.xlu0 %2587 }
0x2886   :  { %v2590_v32 = vmul.f32 %v2588_v7, %v2584_v29  ;;  %v6803_v7 = vld [vmem:[%s7310_s4 + $0x38] sm:$0xff] }
0x2888   :  { %2592 = vrot.lane.b32.xlu1 %v2590_v32, %s6057_s26  ;;  %v6833_v32 = vld [vmem:[%s7310_s4 + $0x18] sm:$0xff] }
0x28fa   :  { %v2593_v35 = vpop.permute.xlu1 %2592 }
0x28fb   :  { %v6746_v37 = vadd.f32 %v2593_v35, %v2585_v19  ;;  %v6840_v19 = vld [vmem:[%s7310_s4 + $0x10] sm:$0xff]  ;;  %v6847_v35 = vld [vmem:[%s7310_s4 + $0x8] sm:$0xff] }
0x28fd   :  { %5951 = vtanh.f32 %v6746_v37 }
0x290a   :  { %v5952_v40 = vpop.eup %5951 }
0x290b   :  { %2598 = vrot.lane.b32.xlu0 %v5952_v40, %s6056_s25  ;;  %v6854_v40 = vld [vmem:[%s7310_s4] sm:$0xff] }
0x297d   :  { %v2599_v13 = vpop.permute.xlu0 %2598 }
0x297e   :  { %v2601_v42 = vmul.f32 %v2599_v13, %v2584_v29 }
0x2980   :  { %2603 = vrot.lane.b32.xlu1 %v2601_v42, %s6057_s26 }
0x29f2   :  { %v2604_v43 = vpop.permute.xlu1 %2603 }
0x29f3   :  { %v2606_v44 = vsel %vm206_vm5, %v2604_v43, %v6746_v37 }
0x29f4   :  { %5562 = vmatmul.mubr.msk.f32.vlgmr.msra.gmra.mxu1 %vm1263_vm13, %v2606_v44 }
0x29f5   :  { %5570 = vmatpush3.msk.msra.mxu1 %vm124_vm0, %v6431_v23 }
0x29f6   :  { %5581 = vmatprep.subr.mxu1 %v6053_v1 }
0x2ab4   :  { %v2676_v49 = vpop.f32.mrf.mxu1 }
0x2ab5   :  { %5564 = vmatprep.subr.msk.mxu0 %vm1343_vm9, %v2676_v49 }
0x2ab6   :  { %v5563_v45 = vpop.f32.mrf.mxu1  ;;  %5565 = vmatpush3.msk.msra.mxu0 %vm1343_vm9, %v2676_v49 }
0x2ab7   :  { %5567 = vmatmul.mubr.msk.f32.vlgmr.msra.gmra.mxu0 %vm1336_vm10, %v6424_v21  ;;  %5574 = vmatprep.subr.mxu0 %v6053_v1 }
0x2ab8   :  { %5578 = vmatprep.mubr.msk.f32.mxu0 %vm6055_vm1, %v6053_v1 }
0x2b77   :  { %v5568_v46 = vpop.f32.mrf.mxu0 }
0x2b78   :  { %v2759_v47 = vadd.f32 %v5568_v46, %v6441_v27 }
0x2b79   :  { %v2749_v48 = vpop.f32.mrf.mxu0 }
0x2b7a   :  { %v2758_v50 = vadd.f32 %v2749_v48, %v6443_v30  ;;  %v6867_v48 = vcombine.high %v6739_v60, %v6739_v60 }
0x2b7c   :  { %5953 = vtanh.f32 %v2758_v50 }
0x2b7d   :  { %5955 = vtanh.f32 %v2759_v47 }
0x2b89   :  { %v5954_v51 = vpop.eup %5953 }
0x2b8a   :  { %v5956_v54 = vpop.eup %5955  ;;  %5571 = vmatprep.mubr.msk.f32.mxu1 %vm119_vm2, %v5954_v51 }
0x2b8b   :  { %5572 = vmatmul.mubr.msk.f32.vlgmr.msra.gmra.mxu1 %vm119_vm2, %v5956_v54 }
0x2b8c   :  { %5582 = vmatpush3.msra.mxu1 %v6489_v8  ;;  %5597 = vmatprep.mubr.msk.f32.mxu1 %vm6055_vm1, %v6053_v1 }
0x2b8d   :  { %5583 = vmatprep.subr.mxu1 %v6053_v1 }
0x2b8e   :  { %5584 = vmatpush3.msra.mxu1 %v6494_v2 }
0x2b8f   :  { %5585 = vmatprep.subr.mxu1 %v6053_v1 }
0x2b90   :  { %5586 = vmatpush3.msra.mxu1 %v6501_v9 }
0x2b91   :  { %5587 = vmatprep.subr.mxu1 %v6053_v1 }
0x2b92   :  { %5588 = vmatpush3.msra.mxu1 %v6508_v10 }
0x2b93   :  { %5589 = vmatprep.subr.mxu1 %v6053_v1 }
0x2b94   :  { %5590 = vmatpush3.msra.mxu1 %v6515_v3 }
0x2b95   :  { %5591 = vmatprep.subr.mxu1 %v6053_v1 }
0x2b96   :  { %5592 = vmatpush3.msra.mxu1 %v6522_v28 }
0x2b97   :  { %5593 = vmatprep.subr.mxu1 %v6053_v1 }
0x2b98   :  { %5594 = vmatpush3.msra.mxu1 %v6531_v15 }
0x2b99   :  { %5595 = vmatprep.subr.mxu1 %v6053_v1 }
0x2b9a   :  { %5596 = vmatpush3.msra.mxu1 %v6538_v14 }
0x2c4b   :  { %v5573_v21 = vpop.f32.mrf.mxu1 }
0x2c4c   :  { %v2844_v52 = vsel %vm1510_vm11, %v5573_v21, -inf }
0x2c4d   :  { %v2834_v61 = vpop.f32.mrf.mxu1 }
0x2c4e   :  { %v2843_v34 = vsel %vm1510_vm11, %v2834_v61, -inf }
0x2c4f   :  { %v2845_v55 = vmax.f32 %v2843_v34, %v2844_v52 }
0x2c51   :  { %v2846_v5 = vrot.slane %v2845_v55, 4 }
0x2c53   :  { %v2847_v36 = vmax.f32 %v2845_v55, %v2846_v5 }
0x2c55   :  { %v2848_v56 = vrot.slane %v2847_v36, 2 }
0x2c57   :  { %v2849_v57 = vmax.f32 %v2847_v36, %v2848_v56 }
0x2c59   :  { %v2850_v58 = vrot.slane %v2849_v57, 1 }
0x2c5b   :  { %v2851_v59 = vmax.f32 %v2849_v57, %v2850_v58 }
0x2c5d   :  { %v2852_v53 = vsub.f32 %v2834_v61, %v2851_v59  ;;  %v2853_v62 = vsub.f32 %v5573_v21, %v2851_v59 }
0x2c5f   :  { %v2854_v63 = vmul.f32 1.442695, %v2852_v53  ;;  %v2856_v0 = vmul.f32 1.442695, %v2853_v62 }
0x2c61   :  { %5957 = vpow2.f32 %v2854_v63 }
0x2c62   :  { %5959 = vpow2.f32 %v2856_v0 }
0x2c6e   :  { %v5958_v11 = vpop.eup %5957 }
0x2c6f   :  { %v5960_v12 = vpop.eup %5959  ;;  %2860 = vperm.xlu1 %5860, %v5958_v11  }
0x2c70   :  { %2865 = vperm.xlu0 %5856, %v5960_v12   ;;  %v6898_v12 = vld [vmem:[%s7311_s1 + $0x8] sm:$0xff] }
0x2c73   :  { %2947 = vrot.lane.b32.xlu1 %v2601_v42, %s6056_s25 }
0x2c74   :  { %5861 = vset.pattern.permute.xlu0 %v6060_v6  ;;  %5862 = vset.pattern.permute.xlu1 %v6061_v17 }
0x2c77   :  { %1171 = vperm.xlu1 %5862, %v6025_v16  }
0x2c7b   :  { %5864 = vset.pattern.permute.xlu1 %v6059_v38 }
0x2cea   :  { %v2861_v25 = vpop.permute.xlu1 %2860 }
0x2ceb   :  { %v2866_v24 = vpop.permute.xlu0 %2865  ;;  %v2868_v29 = vmul.f32 %v2861_v25, %v6404_v22  ;;  %v6812_v22 = vld [vmem:[%s7310_s4 + $0x30] sm:$0xff] }
0x2cec   :  { %v2869_v26 = vmul.f32 %v2866_v24, %v6414_v20  ;;  %v6819_v20 = vld [vmem:[%s7310_s4 + $0x28] sm:$0xff] }
0x2cee   :  { %5575 = vmatpush3.msra.mxu0 %v2869_v26  ;;  %v2948_v45 = vpop.permute.xlu1 %2947 }
0x2cef   :  { %5576 = vmatprep.subr.mxu0 %v6053_v1 }
0x2cf0   :  { %5577 = vmatpush3.msra.mxu0 %v2868_v29 }
0x2cf1   :  { %5579 = vmatmul.mubr.msk.f32.vlgmr.msra.gmra.mxu0 %vm1540_vm12, %v6460_v4  ;;  %5600 = vmatprep.subr.mxu0 %v6053_v1  ;;  %v6826_v4 = vld [vmem:[%s7310_s4 + $0x20] sm:$0xff] }
0x2cf2   :  { %5601 = vmatpush3.msra.mxu0 %v6803_v7  ;;  %5616 = vmatprep.mubr.msk.f32.mxu0 %vm6055_vm1, %v6053_v1  ;;  %v1172_v47 = vpop.permute.xlu1 %1171 }
0x2cf3   :  { %5602 = vmatprep.subr.mxu0 %v6053_v1 }
0x2cf4   :  { %5603 = vmatpush3.msra.mxu0 %v6812_v22 }
0x2cf5   :  { %5604 = vmatprep.subr.mxu0 %v6053_v1 }
0x2cf6   :  { %5605 = vmatpush3.msra.mxu0 %v6819_v20 }
0x2cf7   :  { %5606 = vmatprep.subr.mxu0 %v6053_v1 }
0x2cf8   :  { %5607 = vmatpush3.msra.mxu0 %v6826_v4 }
0x2cf9   :  { %5608 = vmatprep.subr.mxu0 %v6053_v1 }
0x2cfa   :  { %5609 = vmatpush3.msra.mxu0 %v6833_v32 }
0x2cfb   :  { %5610 = vmatprep.subr.mxu0 %v6053_v1 }
0x2cfc   :  { %5611 = vmatpush3.msra.mxu0 %v6840_v19 }
0x2cfd   :  { %5612 = vmatprep.subr.mxu0 %v6053_v1 }
0x2cfe   :  { %5613 = vmatpush3.msra.mxu0 %v6847_v35 }
0x2cff   :  { %5614 = vmatprep.subr.mxu0 %v6053_v1 }
0x2d00   :  { %5615 = vmatpush3.msra.mxu0 %v6854_v40 }
0x2d01   :  { %5624 = vmatprep.subr.msk.mxu0 %vm124_vm0, %v6431_v23  ;;  %v1180_v23 = vrot.slane %v1172_v47, %v6549_v33 }
0x2d03   :  { %v1254_v50 = vmul.f32 %v6867_v48, %v1180_v23 }
0x2db1   :  { %v2936_v13 = vpop.f32.mrf.mxu0 }
0x2db2   :  { %5961 = vrcp.f32 %v2936_v13 }
0x2db3   :  { %v5580_v42 = vpop.f32.mrf.mxu0 }
0x2dbf   :  { %v5962_v43 = vpop.eup %5961 }
0x2dc0   :  { %2943 = vperm.xlu0 %5861, %v5962_v43  }
0x2dc4   :  { %5863 = vset.pattern.permute.xlu0 %v6059_v38 }
0x2e3b   :  { %v2944_v44 = vpop.permute.xlu0 %2943 }
0x2e3c   :  { %v2946_v49 = vmul.f32 %v2944_v44, %v2936_v13 }
0x2e3e   :  { %v2950_v46 = vsel %vm206_vm5, %v2946_v49, %v2948_v45 }
0x2e3f   :  { %5598 = vmatmul.mubr.msk.f32.vlgmr.msra.gmra.mxu1 %vm1263_vm13, %v2950_v46 }
0x2e40   :  { %5621 = vmatprep.mubr.msk.f32.mxu1 %vm1336_vm10, %v6412_v18 }
0x2eff   :  { %v3020_v51 = vpop.f32.mrf.mxu1 }
0x2f00   :  { %v3021_v54 = vadd.f32 %v3020_v51, %v1254_v50 }
0x2f01   :  { %v5599_v21 = vpop.f32.mrf.mxu1 }
0x2f02   :  { %v3024_v61 = vadd.f32 %v6565_v41, %v3021_v54  ;;  %v6931_v21 = vld [vmem:[#allocation2 + $0x8] sm:$0xff] }
0x2f04   :  { %5963 = vtanh.f32 %v3024_v61 }
0x2f11   :  { %v5964_v52 = vpop.eup %5963 }
0x2f12   :  { %3030 = vrot.lane.b32.xlu0 %v5964_v52, %s6056_s25  ;;  %v3026_v34 = vadd.f32 1.0, %v5964_v52  ;;  %v6934_v52 = vld [vmem:[#allocation2] sm:$0xff] }
0x2f14   :  { %v3027_v18 = vmul.f32 0.5, %v3026_v34 }
0x2f16   :  { %v3028_v36 = vmul.f32 %v3027_v18, %v6746_v37  ;;  %v6888_v37 = vld [vmem:[%s7312_s5] sm:$0xf] }
0x2f84   :  { %v3031_v55 = vpop.permute.xlu0 %3030 }
0x2f85   :  { %v3033_v5 = vmul.f32 %v3031_v55, %v3027_v18 }
0x2f87   :  { %3035 = vrot.lane.b32.xlu1 %v3033_v5, %s6057_s26 }
0x2ff9   :  { %v3036_v56 = vpop.permute.xlu1 %3035 }
0x2ffa   :  { %v6874_v57 = vadd.f32 %v3036_v56, %v3028_v36  ;;  %v6039_v56 = vld [vmem:[%s7309_s0 + $0x8] sm:$0x3] }
0x2ffc   :  { %5965 = vtanh.f32 %v6874_v57 }
0x3009   :  { %v5966_v58 = vpop.eup %5965 }
0x300a   :  { %3041 = vrot.lane.b32.xlu0 %v5966_v58, %s6056_s25 }
0x307c   :  { %v3042_v59 = vpop.permute.xlu0 %3041 }
0x307d   :  { %v6878_v53 = vmul.f32 %v3042_v59, %v3027_v18  ;;  %v6941_v18 = vld [vmem:[%s7313_s2] sm:$0x3] }
0x307f   :  { %3046 = vrot.lane.b32.xlu1 %v6878_v53, %s6057_s26 }
0x30f1   :  { %v3047_v62 = vpop.permute.xlu1 %3046 }
0x30f2   :  { %v3049_v63 = vsel %vm206_vm5, %v3047_v62, %v6874_v57 }
0x30f3   :  { %5617 = vmatmul.mubr.msk.f32.vlgmr.msra.gmra.mxu0 %vm1263_vm13, %v3049_v63  ;;  %v6975_v63 = vld [vmem:[%s7311_s1] sm:$0xff] }
0x30f4   :  { %5625 = vmatpush3.msk.msra.mxu0 %vm124_vm0, %v6888_v37 }
0x30f5   :  { %5636 = vmatprep.subr.mxu0 %v6053_v1 }
0x31b3   :  { %v3119_v0 = vpop.f32.mrf.mxu0 }
0x31b4   :  { %5619 = vmatprep.subr.msk.mxu1 %vm1343_vm9, %v3119_v0 }
0x31b5   :  { %v5618_v11 = vpop.f32.mrf.mxu0  ;;  %5620 = vmatpush3.msk.msra.mxu1 %vm1343_vm9, %v3119_v0 }
0x31b6   :  { %5622 = vmatmul.mubr.msk.f32.vlgmr.msra.gmra.mxu1 %vm1336_vm10, %v6898_v12  ;;  %5629 = vmatprep.subr.mxu1 %v6053_v1 }
0x31b7   :  { %5633 = vmatprep.mubr.msk.f32.mxu1 %vm6055_vm1, %v6053_v1 }
0x3276   :  { %v5623_v16 = vpop.f32.mrf.mxu1 }
0x3277   :  { %v3202_v24 = vadd.f32 %v5623_v16, %v6441_v27 }
0x3278   :  { %v3192_v25 = vpop.f32.mrf.mxu1 }
0x3279   :  { %v3201_v26 = vadd.f32 %v3192_v25, %v6443_v30 }
0x327b   :  { %5967 = vtanh.f32 %v3201_v26 }
0x327c   :  { %5969 = vtanh.f32 %v3202_v24 }
0x3288   :  { %v5968_v29 = vpop.eup %5967 }
0x3289   :  { %v5970_v13 = vpop.eup %5969  ;;  %5626 = vmatprep.mubr.msk.f32.mxu0 %vm119_vm2, %v5968_v29 }
0x328a   :  { %5627 = vmatmul.mubr.msk.f32.vlgmr.msra.gmra.mxu0 %vm119_vm2, %v5970_v13 }
0x328b   :  { %5637 = vmatpush3.msra.mxu0 %v6489_v8  ;;  %5652 = vmatprep.mubr.msk.f32.mxu0 %vm6055_vm1, %v6053_v1 }
0x328c   :  { %5638 = vmatprep.subr.mxu0 %v6053_v1 }
0x328d   :  { %5639 = vmatpush3.msra.mxu0 %v6494_v2 }
0x328e   :  { %5640 = vmatprep.subr.mxu0 %v6053_v1 }
0x328f   :  { %5641 = vmatpush3.msra.mxu0 %v6501_v9 }
0x3290   :  { %5642 = vmatprep.subr.mxu0 %v6053_v1 }
0x3291   :  { %5643 = vmatpush3.msra.mxu0 %v6508_v10 }
0x3292   :  { %5644 = vmatprep.subr.mxu0 %v6053_v1 }
0x3293   :  { %5645 = vmatpush3.msra.mxu0 %v6515_v3 }
0x3294   :  { %5646 = vmatprep.subr.mxu0 %v6053_v1 }
0x3295   :  { %5647 = vmatpush3.msra.mxu0 %v6522_v28 }
0x3296   :  { %5648 = vmatprep.subr.mxu0 %v6053_v1 }
0x3297   :  { %5649 = vmatpush3.msra.mxu0 %v6531_v15 }
0x3298   :  { %5650 = vmatprep.subr.mxu0 %v6053_v1 }
0x3299   :  { %5651 = vmatpush3.msra.mxu0 %v6538_v14 }
0x334a   :  { %v5628_v8 = vpop.f32.mrf.mxu0 }
0x334b   :  { %v3287_v9 = vsel %vm1510_vm11, %v5628_v8, -inf }
0x334c   :  { %v3277_v2 = vpop.f32.mrf.mxu0 }
0x334d   :  { %v3286_v10 = vsel %vm1510_vm11, %v3277_v2, -inf }
0x334e   :  { %v3288_v42 = vmax.f32 %v3286_v10, %v3287_v9 }
0x3350   :  { %v3289_v3 = vrot.slane %v3288_v42, 4 }
0x3352   :  { %v3290_v43 = vmax.f32 %v3288_v42, %v3289_v3 }
0x3354   :  { %v3291_v44 = vrot.slane %v3290_v43, 2 }
0x3356   :  { %v3292_v49 = vmax.f32 %v3290_v43, %v3291_v44 }
0x3358   :  { %v3293_v28 = vrot.slane %v3292_v49, 1 }
0x335a   :  { %v3294_v45 = vmax.f32 %v3292_v49, %v3293_v28 }
0x335c   :  { %v3295_v46 = vsub.f32 %v3277_v2, %v3294_v45  ;;  %v3296_v47 = vsub.f32 %v5628_v8, %v3294_v45 }
0x335e   :  { %v3297_v15 = vmul.f32 1.442695, %v3295_v46  ;;  %v3299_v23 = vmul.f32 1.442695, %v3296_v47 }
0x3360   :  { %5971 = vpow2.f32 %v3297_v15 }
0x3361   :  { %5973 = vpow2.f32 %v3299_v23 }
0x336d   :  { %v5972_v14 = vpop.eup %5971 }
0x336e   :  { %v5974_v50 = vpop.eup %5973  ;;  %3303 = vperm.xlu1 %5864, %v5972_v14  }
0x336f   :  { %3308 = vperm.xlu0 %5863, %v5974_v50  }
0x3372   :  { %5865 = vset.pattern.permute.xlu1 %v6060_v6 }
0x3373   :  { %3390 = vrot.lane.b32.xlu0 %v6878_v53, %s6056_s25 }
0x33e9   :  { %v3304_v54 = vpop.permute.xlu1 %3303 }
0x33ea   :  { %v3309_v51 = vpop.permute.xlu0 %3308  ;;  %v3311_v34 = vmul.f32 %v6934_v52, %v3304_v54  ;;  %v7022_v54 = vld [vmem:[%s7308_s3 + $0x58] sm:$0xff] }
0x33eb   :  { %v3312_v61 = vmul.f32 %v6931_v21, %v3309_v51  ;;  %v7013_v51 = vld [vmem:[%s7308_s3 + $0x60] sm:$0xff] }
0x33ed   :  { %5630 = vmatpush3.msra.mxu1 %v3312_v61  ;;  %v7029_v61 = vld [vmem:[%s7308_s3 + $0x50] sm:$0xff] }
0x33ee   :  { %5631 = vmatprep.subr.mxu1 %v6053_v1  ;;  %v3391_v53 = vpop.permute.xlu0 %3390 }
0x33ef   :  { %5632 = vmatpush3.msra.mxu1 %v3311_v34  ;;  %v7036_v34 = vld [vmem:[%s7308_s3 + $0x48] sm:$0xff] }
0x33f0   :  { %5634 = vmatmul.mubr.msk.f32.vlgmr.msra.gmra.mxu1 %vm1540_vm12, %v6941_v18  ;;  %5655 = vmatprep.subr.mxu1 %v6053_v1 }
0x33f1   :  { %5656 = vmatpush3.msra.mxu1 %v6803_v7  ;;  %5671 = vmatprep.mubr.msk.f32.mxu1 %vm6055_vm1, %v6053_v1 }
0x33f2   :  { %5657 = vmatprep.subr.mxu1 %v6053_v1 }
0x33f3   :  { %5658 = vmatpush3.msra.mxu1 %v6812_v22 }
0x33f4   :  { %5659 = vmatprep.subr.mxu1 %v6053_v1 }
0x33f5   :  { %5660 = vmatpush3.msra.mxu1 %v6819_v20 }
0x33f6   :  { %5661 = vmatprep.subr.mxu1 %v6053_v1 }
0x33f7   :  { %5662 = vmatpush3.msra.mxu1 %v6826_v4 }
0x33f8   :  { %5663 = vmatprep.subr.mxu1 %v6053_v1 }
0x33f9   :  { %5664 = vmatpush3.msra.mxu1 %v6833_v32 }
0x33fa   :  { %5665 = vmatprep.subr.mxu1 %v6053_v1 }
0x33fb   :  { %5666 = vmatpush3.msra.mxu1 %v6840_v19 }
0x33fc   :  { %5667 = vmatprep.subr.mxu1 %v6053_v1 }
0x33fd   :  { %5668 = vmatpush3.msra.mxu1 %v6847_v35 }
0x33fe   :  { %5669 = vmatprep.subr.mxu1 %v6053_v1 }
0x33ff   :  { %5670 = vmatpush3.msra.mxu1 %v6854_v40 }
0x3400   :  { %5679 = vmatprep.subr.msk.mxu1 %vm124_vm0, %v6888_v37 }
0x34b0   :  { %v3379_v55 = vpop.f32.mrf.mxu1 }
0x34b1   :  { %5975 = vrcp.f32 %v3379_v55 }
0x34b2   :  { %v5635_v5 = vpop.f32.mrf.mxu1 }
0x34b3   :  { %v7050_v5 = vld [vmem:[%s7308_s3 + $0x38] sm:$0xff] }
0x34be   :  { %v5976_v36 = vpop.eup %5975 }
0x34bf   :  { %3386 = vperm.xlu1 %5865, %v5976_v36   ;;  %v7057_v36 = vld [vmem:[%s7308_s3 + $0x30] sm:$0xff] }
0x34c3   :  { %5866 = vset.pattern.permute.xlu1 %v6061_v17 }
0x34c4   :  { %1182 = vperm.xlu1 %5866, %v6039_v56   ;;  %v7064_v56 = vld [vmem:[%s7308_s3 + $0x28] sm:$0xff] }
0x34c8   :  { %5867 = vset.pattern.permute.xlu1 %v6059_v38 }
0x353a   :  { %v3387_v58 = vpop.permute.xlu1 %3386 }
0x353b   :  { %v3389_v59 = vmul.f32 %v3387_v58, %v3379_v55  ;;  %v7043_v55 = vld [vmem:[%s7308_s3 + $0x40] sm:$0xff] }
0x353d   :  { %v3393_v62 = vsel %vm206_vm5, %v3389_v59, %v3391_v53 }
0x353e   :  { %5653 = vmatmul.mubr.msk.f32.vlgmr.msra.gmra.mxu0 %vm1263_vm13, %v3393_v62 }
0x353f   :  { %5676 = vmatprep.mubr.msk.f32.mxu0 %vm1336_vm10, %v6975_v63  ;;  %v1183_v0 = vpop.permute.xlu1 %1182 }
0x3540   :  { %v1191_v11 = vrot.slane %v1183_v0, %v6549_v33 }
0x3542   :  { %v1255_v16 = vmul.f32 %v6559_v39, %v1191_v11 }
0x35fe   :  { %v3463_v24 = vpop.f32.mrf.mxu0 }
0x35ff   :  { %v3464_v25 = vadd.f32 %v3463_v24, %v1255_v16 }
0x3600   :  { %v5654_v26 = vpop.f32.mrf.mxu0 }
0x3601   :  { %v3467_v29 = vadd.f32 %v6565_v41, %v3464_v25 }
0x3603   :  { %5977 = vtanh.f32 %v3467_v29 }
0x3610   :  { %v5978_v13 = vpop.eup %5977 }
0x3611   :  { %3473 = vrot.lane.b32.xlu0 %v5978_v13, %s6056_s25  ;;  %v3469_v8 = vadd.f32 1.0, %v5978_v13 }
0x3613   :  { %v3470_v2 = vmul.f32 0.5, %v3469_v8 }
0x3615   :  { %v3471_v42 = vmul.f32 %v3470_v2, %v6874_v57 }
0x3683   :  { %v3474_v9 = vpop.permute.xlu0 %3473 }
0x3684   :  { %v3476_v10 = vmul.f32 %v3474_v9, %v3470_v2 }
0x3686   :  { %3478 = vrot.lane.b32.xlu1 %v3476_v10, %s6057_s26 }
0x36f8   :  { %v3479_v3 = vpop.permute.xlu1 %3478 }
0x36f9   :  { %v6985_v43 = vadd.f32 %v3479_v3, %v3471_v42  ;;  %v6049_v3 = vld [vmem:[%s7309_s0 + $0xa] sm:$0x3] }
0x36fb   :  { %5979 = vtanh.f32 %v6985_v43 }
0x3708   :  { %v5980_v39 = vpop.eup %5979 }
0x3709   :  { %3484 = vrot.lane.b32.xlu0 %v5980_v39, %s6056_s25 }
0x377b   :  { %v3485_v41 = vpop.permute.xlu0 %3484 }
0x377c   :  { %v6989_v44 = vmul.f32 %v3485_v41, %v3470_v2 }
0x377e   :  { %3489 = vrot.lane.b32.xlu1 %v6989_v44, %s6057_s26 }
0x37f0   :  { %v3490_v49 = vpop.permute.xlu1 %3489 }
0x37f1   :  { %v3492_v28 = vsel %vm206_vm5, %v3490_v49, %v6985_v43 }
0x37f2   :  { %5672 = vmatmul.mubr.msk.f32.vlgmr.msra.gmra.mxu1 %vm1263_vm13, %v3492_v28 }
0x37f3   :  { %5680 = vmatpush3.msk.msra.mxu1 %vm124_vm0, %v6888_v37 }
0x37f4   :  { %5691 = vmatprep.subr.mxu1 %v6053_v1 }
0x38b2   :  { %v3562_v57 = vpop.f32.mrf.mxu1 }
0x38b3   :  { %5674 = vmatprep.subr.msk.mxu0 %vm1343_vm9, %v3562_v57 }
0x38b4   :  { %v5673_v45 = vpop.f32.mrf.mxu1  ;;  %5675 = vmatpush3.msk.msra.mxu0 %vm1343_vm9, %v3562_v57 }
0x38b5   :  { %5677 = vmatmul.mubr.msk.f32.vlgmr.msra.gmra.mxu0 %vm1336_vm10, %v6898_v12  ;;  %5684 = vmatprep.subr.mxu0 %v6053_v1 }
0x38b6   :  { %5688 = vmatprep.mubr.msk.f32.mxu0 %vm6055_vm1, %v6053_v1 }
0x3975   :  { %v5678_v46 = vpop.f32.mrf.mxu0 }
0x3976   :  { %v3645_v47 = vadd.f32 %v5678_v46, %v6441_v27 }
0x3977   :  { %v3635_v15 = vpop.f32.mrf.mxu0 }
0x3978   :  { %v3644_v23 = vadd.f32 %v3635_v15, %v6443_v30 }
0x397a   :  { %5981 = vtanh.f32 %v3644_v23 }
0x397b   :  { %5983 = vtanh.f32 %v3645_v47 }
0x3987   :  { %v5982_v14 = vpop.eup %5981 }
0x3988   :  { %v5984_v50 = vpop.eup %5983  ;;  %5681 = vmatprep.mubr.msk.f32.mxu1 %vm119_vm2, %v5982_v14 }
0x3989   :  { %5682 = vmatmul.mubr.msk.f32.vlgmr.msra.gmra.mxu1 %vm119_vm2, %v5984_v50 }
0x398a   :  { %5692 = vmatpush3.msra.mxu1 %v7013_v51  ;;  %5707 = vmatprep.mubr.msk.f32.mxu1 %vm6055_vm1, %v6053_v1 }
0x398b   :  { %5693 = vmatprep.subr.mxu1 %v6053_v1 }
0x398c   :  { %5694 = vmatpush3.msra.mxu1 %v7022_v54 }
0x398d   :  { %5695 = vmatprep.subr.mxu1 %v6053_v1 }
0x398e   :  { %5696 = vmatpush3.msra.mxu1 %v7029_v61 }
0x398f   :  { %5697 = vmatprep.subr.mxu1 %v6053_v1 }
0x3990   :  { %5698 = vmatpush3.msra.mxu1 %v7036_v34 }
0x3991   :  { %5699 = vmatprep.subr.mxu1 %v6053_v1 }
0x3992   :  { %5700 = vmatpush3.msra.mxu1 %v7043_v55 }
0x3993   :  { %5701 = vmatprep.subr.mxu1 %v6053_v1 }
0x3994   :  { %5702 = vmatpush3.msra.mxu1 %v7050_v5 }
0x3995   :  { %5703 = vmatprep.subr.mxu1 %v6053_v1 }
0x3996   :  { %5704 = vmatpush3.msra.mxu1 %v7057_v36 }
0x3997   :  { %5705 = vmatprep.subr.mxu1 %v6053_v1 }
0x3998   :  { %5706 = vmatpush3.msra.mxu1 %v7064_v56 }
0x3a49   :  { %v5683_v58 = vpop.f32.mrf.mxu1 }
0x3a4a   :  { %v3730_v53 = vsel %vm1510_vm11, %v5683_v58, -inf }
0x3a4b   :  { %v3720_v59 = vpop.f32.mrf.mxu1 }
0x3a4c   :  { %v3729_v62 = vsel %vm1510_vm11, %v3720_v59, -inf }
0x3a4d   :  { %v3731_v0 = vmax.f32 %v3729_v62, %v3730_v53 }
0x3a4f   :  { %v3732_v11 = vrot.slane %v3731_v0, 4 }
0x3a51   :  { %v3733_v16 = vmax.f32 %v3731_v0, %v3732_v11  ;;  %v7112_v0 = vld [vmem:[%s7308_s3 + $0x69] ss:$0 sm:$0xff] }
0x3a53   :  { %v3734_v24 = vrot.slane %v3733_v16, 2 }
0x3a55   :  { %v3735_v25 = vmax.f32 %v3733_v16, %v3734_v24 }
0x3a57   :  { %v3736_v26 = vrot.slane %v3735_v25, 1 }
0x3a59   :  { %v3737_v29 = vmax.f32 %v3735_v25, %v3736_v26 }
0x3a5b   :  { %v3738_v13 = vsub.f32 %v3720_v59, %v3737_v29  ;;  %v3739_v8 = vsub.f32 %v5683_v58, %v3737_v29 }
0x3a5d   :  { %v3740_v2 = vmul.f32 1.442695, %v3738_v13  ;;  %v3742_v9 = vmul.f32 1.442695, %v3739_v8 }
0x3a5f   :  { %5985 = vpow2.f32 %v3740_v2 }
0x3a60   :  { %5987 = vpow2.f32 %v3742_v9 }
0x3a6c   :  { %v5986_v10 = vpop.eup %5985 }
0x3a6d   :  { %v5988_v42 = vpop.eup %5987  ;;  %3746 = vperm.xlu1 %5867, %v5986_v10  }
0x3a6e   :  { %3751 = vperm.xlu0 %5863, %v5988_v42  }
0x3a71   :  { %3833 = vrot.lane.b32.xlu1 %v6989_v44, %s6056_s25 }
0x3a72   :  { %5868 = vset.pattern.permute.xlu0 %v6060_v6  ;;  %5869 = vset.pattern.permute.xlu1 %v6061_v17 }
0x3a75   :  { %1193 = vperm.xlu1 %5869, %v6049_v3  }
0x3a79   :  { %5871 = vset.pattern.permute.xlu1 %v6059_v38 }
0x3ae8   :  { %v3747_v41 = vpop.permute.xlu1 %3746 }
0x3ae9   :  { %v3752_v39 = vpop.permute.xlu0 %3751  ;;  %v3754_v28 = vmul.f32 %v6934_v52, %v3747_v41 }
0x3aea   :  { %v3755_v49 = vmul.f32 %v6931_v21, %v3752_v39 }
0x3aec   :  { %5685 = vmatpush3.msra.mxu0 %v3755_v49  ;;  %v3834_v15 = vpop.permute.xlu1 %3833 }
0x3aed   :  { %5686 = vmatprep.subr.mxu0 %v6053_v1 }
0x3aee   :  { %5687 = vmatpush3.msra.mxu0 %v3754_v28 }
0x3aef   :  { %5689 = vmatmul.mubr.msk.f32.vlgmr.msra.gmra.mxu0 %vm1540_vm12, %v6941_v18  ;;  %5710 = vmatprep.subr.mxu0 %v6053_v1 }
0x3af0   :  { %5711 = vmatpush3.msra.mxu0 %v6803_v7  ;;  %5726 = vmatprep.mubr.msk.f32.mxu0 %vm6055_vm1, %v6053_v1  ;;  %v1194_v14 = vpop.permute.xlu1 %1193 }
0x3af1   :  { %5712 = vmatprep.subr.mxu0 %v6053_v1  ;;  %v1202_v50 = vrot.slane %v1194_v14, %v6549_v33 }
0x3af2   :  { %5713 = vmatpush3.msra.mxu0 %v6812_v22 }
0x3af3   :  { %5714 = vmatprep.subr.mxu0 %v6053_v1  ;;  %v1256_v58 = vmul.f32 %v6651_v31, %v1202_v50 }
0x3af4   :  { %5715 = vmatpush3.msra.mxu0 %v6819_v20 }
0x3af5   :  { %5716 = vmatprep.subr.mxu0 %v6053_v1 }
0x3af6   :  { %5717 = vmatpush3.msra.mxu0 %v6826_v4 }
0x3af7   :  { %5718 = vmatprep.subr.mxu0 %v6053_v1 }
0x3af8   :  { %5719 = vmatpush3.msra.mxu0 %v6833_v32 }
0x3af9   :  { %5720 = vmatprep.subr.mxu0 %v6053_v1 }
0x3afa   :  { %5721 = vmatpush3.msra.mxu0 %v6840_v19 }
0x3afb   :  { %5722 = vmatprep.subr.mxu0 %v6053_v1 }
0x3afc   :  { %5723 = vmatpush3.msra.mxu0 %v6847_v35 }
0x3afd   :  { %5724 = vmatprep.subr.mxu0 %v6053_v1 }
0x3afe   :  { %5725 = vmatpush3.msra.mxu0 %v6854_v40 }
0x3aff   :  { %5734 = vmatprep.subr.msk.mxu0 %vm124_vm0, %v6888_v37 }
0x3baf   :  { %v3822_v44 = vpop.f32.mrf.mxu0 }
0x3bb0   :  { %5989 = vrcp.f32 %v3822_v44 }
0x3bb1   :  { %v5690_v57 = vpop.f32.mrf.mxu0 }
0x3bbd   :  { %v5990_v45 = vpop.eup %5989 }
0x3bbe   :  { %3829 = vperm.xlu0 %5868, %v5990_v45  }
0x3bc2   :  { %5870 = vset.pattern.permute.xlu0 %v6059_v38 }
0x3c39   :  { %v3830_v46 = vpop.permute.xlu0 %3829 }
0x3c3a   :  { %v3832_v47 = vmul.f32 %v3830_v46, %v3822_v44 }
0x3c3c   :  { %v3836_v23 = vsel %vm206_vm5, %v3832_v47, %v3834_v15 }
0x3c3d   :  { %5708 = vmatmul.mubr.msk.f32.vlgmr.msra.gmra.mxu1 %vm1263_vm13, %v3836_v23 }
0x3c3e   :  { %5731 = vmatprep.mubr.msk.f32.mxu1 %vm1336_vm10, %v6975_v63 }
0x3cfd   :  { %v3906_v59 = vpop.f32.mrf.mxu1 }
0x3cfe   :  { %v3907_v53 = vadd.f32 %v3906_v59, %v1256_v58 }
0x3cff   :  { %v5709_v62 = vpop.f32.mrf.mxu1 }
0x3d00   :  { %v3910_v11 = vadd.f32 %v7112_v0, %v3907_v53 }
0x3d02   :  { %5991 = vtanh.f32 %v3910_v11 }
0x3d0f   :  { %v5992_v16 = vpop.eup %5991 }
0x3d10   :  { %3916 = vrot.lane.b32.xlu0 %v5992_v16, %s6056_s25  ;;  %v3912_v24 = vadd.f32 1.0, %v5992_v16 }
0x3d12   :  { %v3913_v25 = vmul.f32 0.5, %v3912_v24 }
0x3d14   :  { %v3914_v31 = vmul.f32 %v3913_v25, %v6985_v43 }
0x3d82   :  { %v3917_v26 = vpop.permute.xlu0 %3916 }
0x3d83   :  { %v3919_v29 = vmul.f32 %v3917_v26, %v3913_v25 }
0x3d85   :  { %3921 = vrot.lane.b32.xlu1 %v3919_v29, %s6057_s26 }
0x3df7   :  { %v3922_v13 = vpop.permute.xlu1 %3921 }
0x3df8   :  { %v7118_v8 = vadd.f32 %v3922_v13, %v3914_v31 }
0x3dfa   :  { %5993 = vtanh.f32 %v7118_v8 }
0x3e07   :  { %v5994_v2 = vpop.eup %5993 }
0x3e08   :  { %3927 = vrot.lane.b32.xlu0 %v5994_v2, %s6056_s25 }
0x3e7a   :  { %v3928_v9 = vpop.permute.xlu0 %3927 }
0x3e7b   :  { %v3930_v10 = vmul.f32 %v3928_v9, %v3913_v25 }
0x3e7d   :  { %3932 = vrot.lane.b32.xlu1 %v3930_v10, %s6057_s26 }
0x3eef   :  { %v3933_v42 = vpop.permute.xlu1 %3932 }
0x3ef0   :  { %v3935_v3 = vsel %vm206_vm5, %v3933_v42, %v7118_v8 }
0x3ef1   :  { %5727 = vmatmul.mubr.msk.f32.vlgmr.msra.gmra.mxu0 %vm1263_vm13, %v3935_v3 }
0x3ef2   :  { %5735 = vmatpush3.msk.msra.mxu0 %vm124_vm0, %v6888_v37 }
0x3ef3   :  { %5746 = vmatprep.subr.mxu0 %v6053_v1 }
0x3fb1   :  { %v4005_v43 = vpop.f32.mrf.mxu0 }
0x3fb2   :  { %5729 = vmatprep.subr.msk.mxu1 %vm1343_vm9, %v4005_v43 }
0x3fb3   :  { %v5728_v39 = vpop.f32.mrf.mxu0  ;;  %5730 = vmatpush3.msk.msra.mxu1 %vm1343_vm9, %v4005_v43 }
0x3fb4   :  { %5732 = vmatmul.mubr.msk.f32.vlgmr.msra.gmra.mxu1 %vm1336_vm10, %v6898_v12  ;;  %5739 = vmatprep.subr.mxu1 %v6053_v1 }
0x3fb5   :  { %5743 = vmatprep.mubr.msk.f32.mxu1 %vm6055_vm1, %v6053_v1 }
0x4074   :  { %v5733_v41 = vpop.f32.mrf.mxu1 }
0x4075   :  { %v4088_v49 = vadd.f32 %v5733_v41, %v6441_v27 }
0x4076   :  { %v4078_v28 = vpop.f32.mrf.mxu1 }
0x4077   :  { %v4087_v44 = vadd.f32 %v4078_v28, %v6443_v30 }
0x4079   :  { %5995 = vtanh.f32 %v4087_v44 }
0x407a   :  { %5997 = vtanh.f32 %v4088_v49 }
0x4086   :  { %v5996_v57 = vpop.eup %5995 }
0x4087   :  { %v5998_v45 = vpop.eup %5997  ;;  %5736 = vmatprep.mubr.msk.f32.mxu0 %vm119_vm2, %v5996_v57 }
0x4088   :  { %5737 = vmatmul.mubr.msk.f32.vlgmr.msra.gmra.mxu0 %vm119_vm2, %v5998_v45 }
0x4089   :  { %5747 = vmatpush3.msra.mxu0 %v7013_v51  ;;  %5762 = vmatprep.mubr.msk.f32.mxu0 %vm6055_vm1, %v6053_v1 }
0x408a   :  { %5748 = vmatprep.subr.mxu0 %v6053_v1 }
0x408b   :  { %5749 = vmatpush3.msra.mxu0 %v7022_v54 }
0x408c   :  { %5750 = vmatprep.subr.mxu0 %v6053_v1 }
0x408d   :  { %5751 = vmatpush3.msra.mxu0 %v7029_v61 }
0x408e   :  { %5752 = vmatprep.subr.mxu0 %v6053_v1 }
0x408f   :  { %5753 = vmatpush3.msra.mxu0 %v7036_v34 }
0x4090   :  { %5754 = vmatprep.subr.mxu0 %v6053_v1 }
0x4091   :  { %5755 = vmatpush3.msra.mxu0 %v7043_v55 }
0x4092   :  { %5756 = vmatprep.subr.mxu0 %v6053_v1 }
0x4093   :  { %5757 = vmatpush3.msra.mxu0 %v7050_v5 }
0x4094   :  { %5758 = vmatprep.subr.mxu0 %v6053_v1 }
0x4095   :  { %5759 = vmatpush3.msra.mxu0 %v7057_v36 }
0x4096   :  { %5760 = vmatprep.subr.mxu0 %v6053_v1 }
0x4097   :  { %5761 = vmatpush3.msra.mxu0 %v7064_v56 }
0x4148   :  { %v5738_v46 = vpop.f32.mrf.mxu0 }
0x4149   :  { %v4173_v15 = vsel %vm1510_vm11, %v5738_v46, -inf }
0x414a   :  { %v4163_v47 = vpop.f32.mrf.mxu0 }
0x414b   :  { %v4172_v23 = vsel %vm1510_vm11, %v4163_v47, -inf }
0x414c   :  { %v4174_v14 = vmax.f32 %v4172_v23, %v4173_v15 }
0x414e   :  { %v4175_v50 = vrot.slane %v4174_v14, 4 }
0x4150   :  { %v4176_v58 = vmax.f32 %v4174_v14, %v4175_v50 }
0x4152   :  { %v4177_v59 = vrot.slane %v4176_v58, 2 }
0x4154   :  { %v4178_v53 = vmax.f32 %v4176_v58, %v4177_v59 }
0x4156   :  { %v4179_v62 = vrot.slane %v4178_v53, 1 }
0x4158   :  { %v4180_v11 = vmax.f32 %v4178_v53, %v4179_v62 }
0x415a   :  { %v4181_v16 = vsub.f32 %v4163_v47, %v4180_v11  ;;  %v4182_v24 = vsub.f32 %v5738_v46, %v4180_v11 }
0x415c   :  { %v4183_v25 = vmul.f32 1.442695, %v4181_v16  ;;  %v4185_v26 = vmul.f32 1.442695, %v4182_v24 }
0x415e   :  { %5999 = vpow2.f32 %v4183_v25 }
0x415f   :  { %6001 = vpow2.f32 %v4185_v26 }
0x416b   :  { %v6000_v29 = vpop.eup %5999 }
0x416c   :  { %v6002_v31 = vpop.eup %6001  ;;  %4189 = vperm.xlu1 %5871, %v6000_v29  }
0x416d   :  { %4194 = vperm.xlu0 %5870, %v6002_v31  }
0x4170   :  { %5872 = vset.pattern.permute.xlu1 %v6060_v6 }
0x4171   :  { %4276 = vrot.lane.b32.xlu0 %v3930_v10, %s6056_s25 }
0x41e7   :  { %v4190_v2 = vpop.permute.xlu1 %4189 }
0x41e8   :  { %v4195_v13 = vpop.permute.xlu0 %4194  ;;  %v4197_v42 = vmul.f32 %v6934_v52, %v4190_v2 }
0x41e9   :  { %v4198_v9 = vmul.f32 %v6931_v21, %v4195_v13 }
0x41eb   :  { %5740 = vmatpush3.msra.mxu1 %v4198_v9 }
0x41ec   :  { %5741 = vmatprep.subr.mxu1 %v6053_v1 }
0x41ed   :  { %5742 = vmatpush3.msra.mxu1 %v4197_v42  ;;  %v6052_v42 = vld [vmem:[%s7309_s0 + $0xe] sm:$0x3] }
0x41ee   :  { %5744 = vmatmul.mubr.msk.f32.vlgmr.msra.gmra.mxu1 %vm1540_vm12, %v6941_v18  ;;  %5765 = vmatprep.subr.mxu1 %v6053_v1 }
0x41ef   :  { %5766 = vmatpush3.msra.mxu1 %v6803_v7  ;;  %5781 = vmatprep.mubr.msk.f32.mxu1 %vm6055_vm1, %v6053_v1 }
0x41f0   :  { %5767 = vmatprep.subr.mxu1 %v6053_v1 }
0x41f1   :  { %5768 = vmatpush3.msra.mxu1 %v6812_v22 }
0x41f2   :  { %5769 = vmatprep.subr.mxu1 %v6053_v1 }
0x41f3   :  { %5770 = vmatpush3.msra.mxu1 %v6819_v20 }
0x41f4   :  { %5771 = vmatprep.subr.mxu1 %v6053_v1 }
0x41f5   :  { %5772 = vmatpush3.msra.mxu1 %v6826_v4  ;;  %v6051_v4 = vld [vmem:[%s7309_s0 + $0xc] sm:$0x3] }
0x41f6   :  { %5773 = vmatprep.subr.mxu1 %v6053_v1 }
0x41f7   :  { %5774 = vmatpush3.msra.mxu1 %v6833_v32 }
0x41f8   :  { %5775 = vmatprep.subr.mxu1 %v6053_v1 }
0x41f9   :  { %5776 = vmatpush3.msra.mxu1 %v6840_v19 }
0x41fa   :  { %5777 = vmatprep.subr.mxu1 %v6053_v1 }
0x41fb   :  { %5778 = vmatpush3.msra.mxu1 %v6847_v35  ;;  %v4277_v35 = vpop.permute.xlu0 %4276 }
0x41fc   :  { %5779 = vmatprep.subr.mxu1 %v6053_v1 }
0x41fd   :  { %5780 = vmatpush3.msra.mxu1 %v6854_v40 }
0x41fe   :  { %5789 = vmatprep.subr.msk.mxu1 %vm124_vm0, %v6888_v37 }
0x42ae   :  { %v4265_v7 = vpop.f32.mrf.mxu1 }
0x42af   :  { %6003 = vrcp.f32 %v4265_v7 }
0x42b0   :  { %v5745_v22 = vpop.f32.mrf.mxu1 }
0x42bc   :  { %v6004_v20 = vpop.eup %6003 }
0x42bd   :  { %4272 = vperm.xlu1 %5872, %v6004_v20  }
0x42c1   :  { %5873 = vset.pattern.permute.xlu1 %v6061_v17 }
0x42c2   :  { %1204 = vperm.xlu1 %5873, %v6051_v4  }
0x42c6   :  { %5874 = vset.pattern.permute.xlu1 %v6059_v38 }
0x4338   :  { %v4273_v32 = vpop.permute.xlu1 %4272 }
0x4339   :  { %v4275_v19 = vmul.f32 %v4273_v32, %v4265_v7 }
0x433b   :  { %v4279_v40 = vsel %vm206_vm5, %v4275_v19, %v4277_v35 }
0x433c   :  { %5763 = vmatmul.mubr.msk.f32.vlgmr.msra.gmra.mxu0 %vm1263_vm13, %v4279_v40 }
0x433d   :  { %5786 = vmatprep.mubr.msk.f32.mxu0 %vm1336_vm10, %v6975_v63  ;;  %v1205_v10 = vpop.permute.xlu1 %1204 }
0x433e   :  { %v1213_v3 = vrot.slane %v1205_v10, %v6549_v33 }
0x4340   :  { %v1257_v43 = vmul.f32 %v6739_v60, %v1213_v3 }
0x43fc   :  { %v4349_v39 = vpop.f32.mrf.mxu0 }
0x43fd   :  { %v4350_v41 = vadd.f32 %v4349_v39, %v1257_v43 }
0x43fe   :  { %v5764_v49 = vpop.f32.mrf.mxu0 }
0x43ff   :  { %v4353_v28 = vadd.f32 %v7112_v0, %v4350_v41 }
0x4401   :  { %6005 = vtanh.f32 %v4353_v28 }
0x440e   :  { %v6006_v44 = vpop.eup %6005 }
0x440f   :  { %4359 = vrot.lane.b32.xlu0 %v6006_v44, %s6056_s25  ;;  %v4355_v57 = vadd.f32 1.0, %v6006_v44 }
0x4411   :  { %v4356_v45 = vmul.f32 0.5, %v4355_v57 }
0x4413   :  { %v4357_v63 = vmul.f32 %v4356_v45, %v7118_v8 }
0x4481   :  { %v4360_v46 = vpop.permute.xlu0 %4359 }
0x4482   :  { %v4362_v47 = vmul.f32 %v4360_v46, %v4356_v45 }
0x4484   :  { %4364 = vrot.lane.b32.xlu1 %v4362_v47, %s6057_s26  ;;  %v58_v47 = vld [vmem:[%s7312_s5 + $0x30] sm:$0xff] }
0x44f6   :  { %v4365_v15 = vpop.permute.xlu1 %4364 }
0x44f7   :  { %v7201_v23 = vadd.f32 %v4365_v15, %v4357_v63  ;;  %v57_v63 = vld [vmem:[%s7312_s5 + $0x28] sm:$0xff]  ;;  %v56_v15 = vld [vmem:[%s7312_s5 + $0x20] sm:$0xff] }
0x44f9   :  { %6007 = vtanh.f32 %v7201_v23 }
0x4506   :  { %v6008_v60 = vpop.eup %6007 }
0x4507   :  { %4370 = vrot.lane.b32.xlu0 %v6008_v60, %s6056_s25 }
0x4579   :  { %v4371_v14 = vpop.permute.xlu0 %4370 }
0x457a   :  { %v4373_v50 = vmul.f32 %v4371_v14, %v4356_v45  ;;  %v54_v14 = vld [vmem:[%s7312_s5 + $0x10] sm:$0xff] }
0x457c   :  { %4375 = vrot.lane.b32.xlu1 %v4373_v50, %s6057_s26 }
0x45ee   :  { %v4376_v58 = vpop.permute.xlu1 %4375 }
0x45ef   :  { %v4378_v59 = vsel %vm206_vm5, %v4376_v58, %v7201_v23 }
0x45f0   :  { %5782 = vmatmul.mubr.msk.f32.vlgmr.msra.gmra.mxu1 %vm1263_vm13, %v4378_v59 }
0x45f1   :  { %5790 = vmatpush3.msk.msra.mxu1 %vm124_vm0, %v6888_v37 }
0x45f2   :  { %5801 = vmatprep.subr.mxu1 %v6053_v1 }
0x46b0   :  { %v4448_v8 = vpop.f32.mrf.mxu1 }
0x46b1   :  { %5784 = vmatprep.subr.msk.mxu0 %vm1343_vm9, %v4448_v8 }
0x46b2   :  { %v5783_v53 = vpop.f32.mrf.mxu1  ;;  %5785 = vmatpush3.msk.msra.mxu0 %vm1343_vm9, %v4448_v8 }
0x46b3   :  { %5787 = vmatmul.mubr.msk.f32.vlgmr.msra.gmra.mxu0 %vm1336_vm10, %v6898_v12  ;;  %5794 = vmatprep.subr.mxu0 %v6053_v1 }
0x46b4   :  { %5798 = vmatprep.mubr.msk.f32.mxu0 %vm6055_vm1, %v6053_v1 }
0x4773   :  { %v5788_v62 = vpop.f32.mrf.mxu0 }
0x4774   :  { %v4531_v11 = vadd.f32 %v5788_v62, %v6441_v27 }
0x4775   :  { %v4521_v37 = vpop.f32.mrf.mxu0 }
0x4776   :  { %v4530_v16 = vadd.f32 %v4521_v37, %v6443_v30 }
0x4778   :  { %6009 = vtanh.f32 %v4530_v16 }
0x4779   :  { %6011 = vtanh.f32 %v4531_v11  ;;  %v5000_v11 = vld [vmem:[%s7312_s5 + $0x48] ss:$0 sm:$0xff] }
0x4785   :  { %v6010_v24 = vpop.eup %6009 }
0x4786   :  { %v6012_v25 = vpop.eup %6011  ;;  %5791 = vmatprep.mubr.msk.f32.mxu1 %vm119_vm2, %v6010_v24 }
0x4787   :  { %5792 = vmatmul.mubr.msk.f32.vlgmr.msra.gmra.mxu1 %vm119_vm2, %v6012_v25 }
0x4788   :  { %5802 = vmatpush3.msra.mxu1 %v7013_v51  ;;  %5817 = vmatprep.mubr.msk.f32.mxu1 %vm6055_vm1, %v6053_v1 }
0x4789   :  { %5803 = vmatprep.subr.mxu1 %v6053_v1 }
0x478a   :  { %5804 = vmatpush3.msra.mxu1 %v7022_v54 }
0x478b   :  { %5805 = vmatprep.subr.mxu1 %v6053_v1 }
0x478c   :  { %5806 = vmatpush3.msra.mxu1 %v7029_v61 }
0x478d   :  { %5807 = vmatprep.subr.mxu1 %v6053_v1 }
0x478e   :  { %5808 = vmatpush3.msra.mxu1 %v7036_v34 }
0x478f   :  { %5809 = vmatprep.subr.mxu1 %v6053_v1 }
0x4790   :  { %5810 = vmatpush3.msra.mxu1 %v7043_v55 }
0x4791   :  { %5811 = vmatprep.subr.mxu1 %v6053_v1 }
0x4792   :  { %5812 = vmatpush3.msra.mxu1 %v7050_v5 }
0x4793   :  { %5813 = vmatprep.subr.mxu1 %v6053_v1 }
0x4794   :  { %5814 = vmatpush3.msra.mxu1 %v7057_v36 }
0x4795   :  { %5815 = vmatprep.subr.mxu1 %v6053_v1 }
0x4796   :  { %5816 = vmatpush3.msra.mxu1 %v7064_v56 }
0x4847   :  { %v5793_v27 = vpop.f32.mrf.mxu1 }
0x4848   :  { %v4616_v12 = vsel %vm1510_vm11, %v5793_v27, -inf }
0x4849   :  { %v4606_v30 = vpop.f32.mrf.mxu1 }
0x484a   :  { %v4615_v51 = vsel %vm1510_vm11, %v4606_v30, -inf }
0x484b   :  { %v4617_v54 = vmax.f32 %v4615_v51, %v4616_v12 }
0x484d   :  { %v4618_v61 = vrot.slane %v4617_v54, 4 }
0x484f   :  { %v4619_v34 = vmax.f32 %v4617_v54, %v4618_v61 }
0x4851   :  { %v4620_v55 = vrot.slane %v4619_v34, 2 }
0x4853   :  { %v4621_v26 = vmax.f32 %v4619_v34, %v4620_v55 }
0x4855   :  { %v4622_v5 = vrot.slane %v4621_v26, 1 }
0x4857   :  { %v4623_v29 = vmax.f32 %v4621_v26, %v4622_v5 }
0x4859   :  { %v4624_v31 = vsub.f32 %v4606_v30, %v4623_v29  ;;  %v4625_v13 = vsub.f32 %v5793_v27, %v4623_v29 }
0x485b   :  { %v4626_v36 = vmul.f32 1.442695, %v4624_v31  ;;  %v4628_v2 = vmul.f32 1.442695, %v4625_v13 }
0x485d   :  { %6013 = vpow2.f32 %v4626_v36 }
0x485e   :  { %6015 = vpow2.f32 %v4628_v2 }
0x486a   :  { %v6014_v56 = vpop.eup %6013 }
0x486b   :  { %v6016_v9 = vpop.eup %6015  ;;  %4632 = vperm.xlu1 %5874, %v6014_v56  }
0x486c   :  { %4637 = vperm.xlu0 %5870, %v6016_v9  }
0x486f   :  { %4719 = vrot.lane.b32.xlu1 %v4373_v50, %s6056_s25  ;;  %v53_v50 = vld [vmem:[%s7312_s5 + $0x8] sm:$0xff] }
0x4870   :  { %5875 = vset.pattern.permute.xlu0 %v6060_v6  ;;  %5876 = vset.pattern.permute.xlu1 %v6061_v17 }
0x4873   :  { %1215 = vperm.xlu1 %5876, %v6052_v42  }
0x4877   :  { %5877 = vset.pattern.permute.xlu1 %v6059_v38 }
0x48e6   :  { %v4633_v22 = vpop.permute.xlu1 %4632 }
0x48e7   :  { %v4638_v7 = vpop.permute.xlu0 %4637  ;;  %v4640_v4 = vmul.f32 %v6934_v52, %v4633_v22 }
0x48e8   :  { %v4641_v20 = vmul.f32 %v6931_v21, %v4638_v7 }
0x48ea   :  { %5795 = vmatpush3.msra.mxu0 %v4641_v20  ;;  %v4720_v19 = vpop.permute.xlu1 %4719 }
0x48eb   :  { %5796 = vmatprep.subr.mxu0 %v6053_v1 }
0x48ec   :  { %5797 = vmatpush3.msra.mxu0 %v4640_v4 }
0x48ed   :  { %5799 = vmatmul.mubr.msk.f32.vlgmr.msra.gmra.mxu0 %vm1540_vm12, %v6941_v18  ;;  %5820 = vmatprep.subr.mxu0 %v6053_v1 }
0x48ee   :  { %5836 = vmatprep.mubr.msk.f32.mxu0 %vm6055_vm1, %v6053_v1  ;;  %v1216_v18 = vpop.permute.xlu1 %1215 }
0x48ef   :  { %v1224_v40 = vrot.slane %v1216_v18, %v6549_v33 }
0x48f1   :  { %v1258_v10 = vmul.f32 %v6867_v48, %v1224_v40  ;;  %v60_v48 = vld [vmem:[%s7312_s5 + $0x40] sm:$0xff] }
0x48f2   :  { %5821 = vmatpush3.msra.mxu0 %v60_v48 }
0x48f3   :  { %5822 = vmatprep.subr.mxu0 %v6053_v1 }
0x49ad   :  { %v4708_v6 = vpop.f32.mrf.mxu0 }
0x49ae   :  { %6017 = vrcp.f32 %v4708_v6 }
0x49af   :  { %v5800_v17 = vpop.f32.mrf.mxu0 }
0x49bb   :  { %v6018_v32 = vpop.eup %6017 }
0x49bc   :  { %4715 = vperm.xlu0 %5875, %v6018_v32  }
0x49c0   :  { %5878 = vset.pattern.permute.xlu0 %v6059_v38 }
0x4a37   :  { %v4716_v21 = vpop.permute.xlu0 %4715 }
0x4a38   :  { %v4718_v52 = vmul.f32 %v4716_v21, %v4708_v6 }
0x4a3a   :  { %v4722_v35 = vsel %vm206_vm5, %v4718_v52, %v4720_v19 }
0x4a3b   :  { %5818 = vmatmul.mubr.msk.f32.vlgmr.msra.gmra.mxu1 %vm1263_vm13, %v4722_v35 }
0x4afb   :  { %v4792_v3 = vpop.f32.mrf.mxu1 }
0x4afc   :  { %v4793_v43 = vadd.f32 %v4792_v3, %v1258_v10 }
0x4afd   :  { %v5819_v39 = vpop.f32.mrf.mxu1 }
0x4afe   :  { %v4796_v41 = vadd.f32 %v7112_v0, %v4793_v43  ;;  %v59_v0 = vld [vmem:[%s7312_s5 + $0x38] sm:$0xff] }
0x4aff   :  { %5823 = vmatpush3.msra.mxu0 %v59_v0 }
0x4b00   :  { %6019 = vtanh.f32 %v4796_v41  ;;  %5824 = vmatprep.subr.mxu0 %v6053_v1 }
0x4b01   :  { %5825 = vmatpush3.msra.mxu0 %v58_v47 }
0x4b02   :  { %5826 = vmatprep.subr.mxu0 %v6053_v1 }
0x4b03   :  { %5827 = vmatpush3.msra.mxu0 %v57_v63 }
0x4b04   :  { %5828 = vmatprep.subr.mxu0 %v6053_v1 }
0x4b05   :  { %5829 = vmatpush3.msra.mxu0 %v56_v15 }
0x4b06   :  { %5830 = vmatprep.subr.mxu0 %v6053_v1 }
0x4b0d   :  { %v6020_v49 = vpop.eup %6019 }
0x4b0e   :  { %4802 = vrot.lane.b32.xlu0 %v6020_v49, %s6056_s25  ;;  %v4798_v38 = vadd.f32 1.0, %v6020_v49 }
0x4b10   :  { %v4799_v28 = vmul.f32 0.5, %v4798_v38 }
0x4b12   :  { %v4800_v45 = vmul.f32 %v4799_v28, %v7201_v23  ;;  %v55_v23 = vld [vmem:[%s7312_s5 + $0x18] sm:$0xff] }
0x4b13   :  { %5831 = vmatpush3.msra.mxu0 %v55_v23 }
0x4b14   :  { %5832 = vmatprep.subr.mxu0 %v6053_v1 }
0x4b15   :  { %5833 = vmatpush3.msra.mxu0 %v54_v14 }
0x4b16   :  { %5834 = vmatprep.subr.mxu0 %v6053_v1 }
0x4b17   :  { %5835 = vmatpush3.msra.mxu0 %v53_v50 }
0x4b80   :  { %v4803_v44 = vpop.permute.xlu0 %4802 }
0x4b81   :  { %v4805_v57 = vmul.f32 %v4803_v44, %v4799_v28 }
0x4b83   :  { %4807 = vrot.lane.b32.xlu1 %v4805_v57, %s6057_s26 }
0x4bf5   :  { %v4808_v33 = vpop.permute.xlu1 %4807 }
0x4bf6   :  { %v4810_v46 = vadd.f32 %v4808_v33, %v4800_v45 }
0x4bf8   :  { %6021 = vtanh.f32 %v4810_v46 }
0x4c05   :  { %v6022_v60 = vpop.eup %6021 }
0x4c06   :  { %4813 = vrot.lane.b32.xlu0 %v6022_v60, %s6056_s25 }
0x4c0a   :  { %4822 = vrot.lane.b32.xlu0 %v4718_v52, %s6057_s26 }
0x4c78   :  { %v4814_v58 = vpop.permute.xlu0 %4813 }
0x4c79   :  { %v4816_v59 = vmul.f32 %v4814_v58, %v4799_v28 }
0x4c7b   :  { %4818 = vrot.lane.b32.xlu1 %v4816_v59, %s6057_s26 }
0x4c7c   :  { %v4823_v8 = vpop.permute.xlu0 %4822 }
0x4ced   :  { %v4819_v53 = vpop.permute.xlu1 %4818 }
0x4cee   :  { %v4825_v62 = vsel %vm206_vm5, %v4819_v53, %v4823_v8 }
0x4cef   :  { %5837 = vmatmul.mubr.msk.f32.vlgmr.msra.gmra.mxu0 %vm1263_vm13, %v4825_v62 }
0x4daf   :  { %v4899_v1 = vpop.f32.mrf.mxu0 }
0x4db0   :  { %v4900_v37 = vadd.f32 %v5000_v11, %v4899_v1 }
0x4db1   :  { %v5838_v16 = vpop.f32.mrf.mxu0 }
0x4db2   :  { %4905 = vperm.xlu1 %5877, %v4900_v37  }
0x4e2d   :  { %v4906_v24 = vpop.permute.xlu1 %4905 }
0x4e2e   :  { %4908 = vst [vmem:[%s7314_s6] sm:$0x3] %v4906_v24 }

</bundles_post_ra>
